<compile_context>
chip_gen: v7x
topology: tpu7x:2x2x1
jax: 0.10.0
libtpu: 0.0.40
codegen_flags: <defaults>
</compile_context>

<pallas_src>
import functools

import jax
import jax.numpy as jnp
from jax.experimental import pallas as pl
from jax.experimental.pallas import tpu as pltpu


# ----------------------------------------------------------------------------
# Kernel
# ----------------------------------------------------------------------------
def _pointnet_feat_kernel(
    pts_ref,                                    # [Bt, N, 3]    f32
    w1, b1, w2, b2, w3, b3, w4, b4, w5, b5,     # folded conv+BN params
    g_ref,                                      # [Bt, 1, 1024] f32  pooled feature
    feat_ref,                                   # [Bt, 64, N]   f32  concat_feat
    h4_ref,                                     # scratch [Bt, N, 128] f32
    gacc_ref,                                   # scratch [Bt, 1024]   f32 running max
    *, point_chunk,
):
    Bt, N, _ = pts_ref.shape
    M = Bt * N
    C5 = gacc_ref.shape[-1]

    x = pts_ref[...].reshape(M, 3)              # [M, 3] f32

    # conv1 (K=3): three VPU broadcast-FMAs -- avoids a badly under-filled MXU
    # pass and the relayout of a 3-lane operand.  Kept in f32 (VPU path).
    w1v = w1[...]                               # [3, 64] f32
    h1 = (x[:, 0:1] * w1v[0:1, :]
          + x[:, 1:2] * w1v[1:2, :]
          + x[:, 2:3] * w1v[2:3, :]
          + b1[...])
    h1 = jnp.maximum(h1, 0.0)                   # [M, 64] f32

    def mm_relu(h, w_ref, b_ref):
        # bf16 MXU operands, f32 accumulation, f32 bias/ReLU.
        o = jnp.dot(h.astype(w_ref.dtype), w_ref[...],
                    preferred_element_type=jnp.float32)
        return jnp.maximum(o + b_ref[...], 0.0)

    h2 = mm_relu(h1, w2, b2)                    # [M, 64]  == concat_feat rows
    h3 = mm_relu(h2, w3, b3)                    # [M, 64]

    # concat_feat channel-first ([Bt, 64, N]): lane-dense stores, no wrapper
    # transpose pass over HBM.  Bt is a static Python int -> fully unrolled.
    # (XLU use here is small; review item 8 is a measure-first concern.)
    for i in range(Bt):
        feat_ref[i] = h2[i * N:(i + 1) * N, :].T.astype(feat_ref.dtype)

    h4 = mm_relu(h3, w4, b4)                    # [M, 128]
    h4_ref[...] = h4.reshape(Bt, N, 128)        # park in VMEM scratch (8x
                                                # smaller than the old h5)

    # conv5 fused with the max-pool over points: chunk the 128->1024 matmul
    # along the point axis and keep a running per-batch max, so the [M,1024]
    # f32 activation never exists.  Bias + ReLU are applied AFTER the pool,
    # which is exact (per-channel constant bias, monotone ReLU).
    gacc_ref[...] = jnp.full((Bt, C5), -jnp.inf, dtype=jnp.float32)
    n_chunks = N // point_chunk                 # point_chunk always divides N

    @pl.loop(0, n_chunks)
    def _(c):
        start = pl.multiple_of(c * point_chunk, point_chunk)
        blk = h4_ref[:, pl.ds(start, point_chunk), :]             # [Bt, CN, 128]
        blk2 = blk.reshape(Bt * point_chunk, 128).astype(w5.dtype)
        part = jnp.dot(blk2, w5[...],
                       preferred_element_type=jnp.float32)        # [Bt*CN, C5]
        part = jnp.max(part.reshape(Bt, point_chunk, C5), axis=1) # [Bt, C5]
        gacc_ref[...] = jnp.maximum(gacc_ref[...], part)

    g = jnp.maximum(gacc_ref[...] + b5[...], 0.0)                 # [Bt, C5]
    g_ref[...] = g.reshape(Bt, 1, C5).astype(g_ref.dtype)


# ----------------------------------------------------------------------------
# Blocking / config helpers
# ----------------------------------------------------------------------------
def _const_spec(shape):
    return pl.BlockSpec(shape, lambda b: (0,) * len(shape))


def _device_config():
    """Generation-aware blocking / VMEM budget."""
    try:
        kind = jax.devices()[0].device_kind.lower()
    except Exception:  # pragma: no cover
        kind = ""
    if "v7" in kind:
        # 64 MiB VMEM per TC, 2 TCs: conservative Bt, even grid-step count.
        return dict(max_bt=8, max_rows=2048, vmem_bytes=32 * 1024 * 1024,
                    prefer_even_grid=True)
    if "v5" in kind or "v6" in kind:
        # 128 MiB physical VMEM, single TC: fewer, fatter grid steps.
        return dict(max_bt=32, max_rows=4096, vmem_bytes=64 * 1024 * 1024,
                    prefer_even_grid=False)
    # Unknown chip: use the conservative (v7x-safe) settings.
    return dict(max_bt=8, max_rows=2048, vmem_bytes=32 * 1024 * 1024,
                prefer_even_grid=True)


def _choose_block_b(B, N, cfg):
    """Largest divisor of B with Bt <= max_bt and Bt*N <= max_rows.

    On v7x we additionally prefer an even number of grid steps so both
    TensorCores get equal work under dimension_semantics=('parallel',).
    """
    cap = max(1, min(cfg["max_bt"], cfg["max_rows"] // max(N, 1), B))
    divisors = [d for d in range(1, cap + 1) if B % d == 0]
    if cfg["prefer_even_grid"]:
        even = [d for d in divisors if (B // d) % 2 == 0]
        if even:
            return max(even)
    return max(divisors)


def _choose_point_chunk(N, Bt, max_rows_per_chunk=512):
    """Points per conv5 chunk: divisor of N, multiple of 8 if possible,
    with roughly <= max_rows_per_chunk MXU rows per chunk."""
    cap = min(N, max(8, max_rows_per_chunk // max(Bt, 1)))
    best_aligned, best_any = None, None
    for d in range(1, cap + 1):
        if N % d == 0:
            best_any = d
            if d % 8 == 0:
                best_aligned = d
    if best_aligned is not None:
        return best_aligned
    if best_any is not None and best_any >= 32:
        return best_any
    return N


# ----------------------------------------------------------------------------
# Wrapper
# ----------------------------------------------------------------------------
@functools.partial(jax.jit, static_argnames=("num_classes",))
def pointnet_cls_forward(pointcloud, params, num_classes):
    """pointcloud [B,N,3] f32 -> (logits [B,num_classes], concat_feat [B,64,N])."""
    B, N, _ = pointcloud.shape
    cfg = _device_config()
    Bt = _choose_block_b(B, N, cfg)
    grid = (B // Bt,)
    point_chunk = _choose_point_chunk(N, Bt)
    C5 = params["w5"].shape[1]                  # 1024
    assert params["fw3"].shape[1] == num_classes

    def bf16(p):
        return p.astype(jnp.bfloat16)

    # MXU operands in bf16; conv1 weights stay f32 (VPU path); biases stay f32.
    conv_params = [
        params["w1"].astype(jnp.float32), params["b1"],
        bf16(params["w2"]), params["b2"],
        bf16(params["w3"]), params["b3"],
        bf16(params["w4"]), params["b4"],
        bf16(params["w5"]), params["b5"],
    ]
    # With the FC head hoisted, the resident conv weights total ~0.3 MiB, so
    # default double-buffering of the constant-index specs is negligible.

    in_specs = [pl.BlockSpec((Bt, N, 3), lambda b: (b, 0, 0))]
    in_specs += [_const_spec(p.shape) for p in conv_params]

    out_shape = (
        jax.ShapeDtypeStruct((B, 1, C5), jnp.float32),   # pooled feature g
        jax.ShapeDtypeStruct((B, 64, N), jnp.float32),   # concat_feat
    )
    out_specs = (
        pl.BlockSpec((Bt, 1, C5), lambda b: (b, 0, 0)),
        pl.BlockSpec((Bt, 64, N), lambda b: (b, 0, 0)),
    )
    scratch_shapes = [
        pltpu.VMEM((Bt, N, 128), jnp.float32),   # h4
        pltpu.VMEM((Bt, C5), jnp.float32),       # running max
    ]

    conv_flops = 2 * N * (3 * 64 + 64 * 64 + 64 * 64 + 64 * 128 + 128 * C5)
    param_bytes = sum(int(p.size) * p.dtype.itemsize for p in conv_params)
    cost = pl.CostEstimate(
        flops=B * conv_flops,
        transcendentals=0,
        bytes_accessed=(int(pointcloud.size) * 4
                        + B * C5 * 4 + B * 64 * N * 4 + param_bytes),
    )

    g3, concat_feat = pl.pallas_call(
        functools.partial(_pointnet_feat_kernel, point_chunk=point_chunk),
        out_shape=out_shape,
        grid=grid,
        in_specs=in_specs,
        out_specs=out_specs,
        scratch_shapes=scratch_shapes,
        compiler_params=pltpu.CompilerParams(
            dimension_semantics=("parallel",),
            vmem_limit_bytes=cfg["vmem_bytes"],
        ),
        cost_estimate=cost,
    )(pointcloud, *conv_params)

    g = g3.reshape(B, C5)

    # FC head: M = B rows -> <4% MXU fill inside the kernel, so run it as one
    # full-batch f32 XLA GEMM here instead (BN already folded into fw*/fb*).
    f1 = jax.nn.relu(g @ params["fw1"] + params["fb1"])
    f2 = jax.nn.relu(f1 @ params["fw2"] + params["fb2"])
    # Dropout(p=0.3) is identity in inference mode.
    logits = f2 @ params["fw3"] + params["fb3"]
    return logits, concat_feat


# ----------------------------------------------------------------------------
# Deterministic parameter construction (Conv1d/Linear weights + BatchNorm fold)
# ----------------------------------------------------------------------------
def _fold_bn(w, b, gamma, beta, mean, var, eps=1e-5):
    """Fold eval-mode BatchNorm1d into the preceding matmul.

    w: [Cin, Cout], b/gamma/beta/mean/var: [Cout].
    y = (x@w + b - mean) * gamma / sqrt(var + eps) + beta
    """
    scale = gamma / jnp.sqrt(var + eps)
    w_f = w * scale[None, :]
    b_f = (b - mean) * scale + beta
    return w_f.astype(jnp.float32), b_f[None, :].astype(jnp.float32)


def make_params(key, num_classes):
    layer_dims = [
        ("1", 3, 64, True), ("2", 64, 64, True), ("3", 64, 64, True),
        ("4", 64, 128, True), ("5", 128, 1024, True),
        ("f1", 1024, 512, True), ("f2", 512, 256, True),
        ("f3", 256, num_classes, False),
    ]
    params = {}
    for name, cin, cout, has_bn in layer_dims:
        key, kw, kb, kg, kbeta, km, kv = jax.random.split(key, 7)
        scale = 1.0 / jnp.sqrt(jnp.float32(cin))
        w = jax.random.uniform(kw, (cin, cout), jnp.float32, -scale, scale)
        b = jax.random.uniform(kb, (cout,), jnp.float32, -scale, scale)
        if has_bn:
            gamma = 1.0 + 0.05 * jax.random.normal(kg, (cout,), jnp.float32)
            beta = 0.05 * jax.random.normal(kbeta, (cout,), jnp.float32)
            mean = 0.05 * jax.random.normal(km, (cout,), jnp.float32)
            var = 1.0 + 0.1 * jax.random.uniform(kv, (cout,), jnp.float32)
            w_f, b_f = _fold_bn(w, b, gamma, beta, mean, var)
        else:
            w_f, b_f = w, b[None, :]
        prefix = "w" if not name.startswith("f") else "fw"
        bprefix = "b" if not name.startswith("f") else "fb"
        idx = name if not name.startswith("f") else name[1:]
        params[prefix + idx] = w_f
        params[bprefix + idx] = b_f
    return params


# ----------------------------------------------------------------------------
# Pure-JAX f32 reference for a sanity check
# ----------------------------------------------------------------------------
def reference_forward(pointcloud, params):
    x = pointcloud                                    # [B, N, 3]
    h1 = jax.nn.relu(x @ params["w1"] + params["b1"])
    h2 = jax.nn.relu(h1 @ params["w2"] + params["b2"])
    h3 = jax.nn.relu(h2 @ params["w3"] + params["b3"])
    h4 = jax.nn.relu(h3 @ params["w4"] + params["b4"])
    h5 = jax.nn.relu(h4 @ params["w5"] + params["b5"])
    g = jnp.max(h5, axis=1)                           # [B, 1024]
    f1 = jax.nn.relu(g @ params["fw1"] + params["fb1"])
    f2 = jax.nn.relu(f1 @ params["fw2"] + params["fb2"])
    logits = f2 @ params["fw3"] + params["fb3"]
    concat_feat = jnp.transpose(h2, (0, 2, 1))        # [B, 64, N]
    return logits, concat_feat


if __name__ == "__main__":
    B, N, NUM_CLASSES = 4, 128, 10
    key = jax.random.PRNGKey(0)
    key_p, key_x = jax.random.split(key)
    params = make_params(key_p, NUM_CLASSES)
    pointcloud = jax.random.normal(key_x, (B, N, 3), jnp.float32)

    logits, concat_feat = pointnet_cls_forward(pointcloud, params,
                                               num_classes=NUM_CLASSES)
    jax.block_until_ready((logits, concat_feat))

    ref_logits, ref_feat = reference_forward(pointcloud, params)
    assert logits.shape == (B, NUM_CLASSES)
    assert concat_feat.shape == (B, 64, N)
    # Kernel matmuls run with bf16 operands (f32 accumulation); compare against
    # the pure-f32 reference with a correspondingly loosened tolerance.
    assert jnp.allclose(concat_feat, ref_feat, atol=5e-2, rtol=5e-2), \
        float(jnp.max(jnp.abs(concat_feat - ref_feat)))
    assert jnp.allclose(logits, ref_logits, atol=5e-2, rtol=5e-2), \
        float(jnp.max(jnp.abs(logits - ref_logits)))

    print("KERNEL_OK")
</pallas_src>

<mosaic_0001>
module attributes {stable_mosaic.version = 11 : i64} {
  func.func @_pointnet_feat_kernel(%arg0: i32, %arg1: memref<2x128x3xf32, #tpu.memory_space<vmem>>, %arg2: memref<3x64xf32, #tpu.memory_space<vmem>>, %arg3: memref<1x64xf32, #tpu.memory_space<vmem>>, %arg4: memref<64x64xbf16, #tpu.memory_space<vmem>>, %arg5: memref<1x64xf32, #tpu.memory_space<vmem>>, %arg6: memref<64x64xbf16, #tpu.memory_space<vmem>>, %arg7: memref<1x64xf32, #tpu.memory_space<vmem>>, %arg8: memref<64x128xbf16, #tpu.memory_space<vmem>>, %arg9: memref<1x128xf32, #tpu.memory_space<vmem>>, %arg10: memref<128x1024xbf16, #tpu.memory_space<vmem>>, %arg11: memref<1x1024xf32, #tpu.memory_space<vmem>>, %arg12: memref<2x1x1024xf32, #tpu.memory_space<vmem>>, %arg13: memref<2x64x128xf32, #tpu.memory_space<vmem>>, %arg14: memref<2x128x128xf32, #tpu.memory_space<vmem>>, %arg15: memref<2x1024xf32, #tpu.memory_space<vmem>>) attributes {dimension_semantics = [#tpu.dimension_semantics<parallel>], iteration_bounds = array<i64: 2>, scalar_prefetch = 0 : i64, scratch_operands = 2 : i64, tpu.core_type = #tpu.core_type<tc>, window_params = [{transform_indices = @transform_0, window_bounds = array<i64: 2, 128, 3>}, {pipeline_mode = #tpu.pipeline_mode<synchronous>, transform_indices = @transform_1, window_bounds = array<i64: 3, 64>}, {pipeline_mode = #tpu.pipeline_mode<synchronous>, transform_indices = @transform_2, window_bounds = array<i64: 1, 64>}, {pipeline_mode = #tpu.pipeline_mode<synchronous>, transform_indices = @transform_3, window_bounds = array<i64: 64, 64>}, {pipeline_mode = #tpu.pipeline_mode<synchronous>, transform_indices = @transform_4, window_bounds = array<i64: 1, 64>}, {pipeline_mode = #tpu.pipeline_mode<synchronous>, transform_indices = @transform_5, window_bounds = array<i64: 64, 64>}, {pipeline_mode = #tpu.pipeline_mode<synchronous>, transform_indices = @transform_6, window_bounds = array<i64: 1, 64>}, {pipeline_mode = #tpu.pipeline_mode<synchronous>, transform_indices = @transform_7, window_bounds = array<i64: 64, 128>}, {pipeline_mode = #tpu.pipeline_mode<synchronous>, transform_indices = @transform_8, window_bounds = array<i64: 1, 128>}, {pipeline_mode = #tpu.pipeline_mode<synchronous>, transform_indices = @transform_9, window_bounds = array<i64: 128, 1024>}, {pipeline_mode = #tpu.pipeline_mode<synchronous>, transform_indices = @transform_10, window_bounds = array<i64: 1, 1024>}, {transform_indices = @transform_11, window_bounds = array<i64: 2, 1, 1024>}, {transform_indices = @transform_12, window_bounds = array<i64: 2, 64, 128>}]} {
    %c0 = arith.constant 0 : index
    %c0_0 = arith.constant 0 : index
    %c0_1 = arith.constant 0 : index
    %0 = vector.load %arg1[%c0, %c0_0, %c0_1] : memref<2x128x3xf32, #tpu.memory_space<vmem>>, vector<2x128x3xf32>
    %1 = vector.shape_cast %0 : vector<2x128x3xf32> to vector<256x3xf32>
    %c0_2 = arith.constant 0 : index
    %c0_3 = arith.constant 0 : index
    %2 = vector.load %arg2[%c0_2, %c0_3] : memref<3x64xf32, #tpu.memory_space<vmem>>, vector<3x64xf32>
    %3 = vector.extract_strided_slice %1 {offsets = [0, 0], sizes = [256, 1], strides = [1, 1]} : vector<256x3xf32> to vector<256x1xf32>
    %4 = vector.extract_strided_slice %2 {offsets = [0, 0], sizes = [1, 64], strides = [1, 1]} : vector<3x64xf32> to vector<1x64xf32>
    %5 = vector.broadcast %3 : vector<256x1xf32> to vector<256x64xf32>
    %6 = vector.broadcast %4 : vector<1x64xf32> to vector<256x64xf32>
    %7 = arith.mulf %5, %6 : vector<256x64xf32>
    %8 = vector.extract_strided_slice %1 {offsets = [0, 1], sizes = [256, 1], strides = [1, 1]} : vector<256x3xf32> to vector<256x1xf32>
    %9 = vector.extract_strided_slice %2 {offsets = [1, 0], sizes = [1, 64], strides = [1, 1]} : vector<3x64xf32> to vector<1x64xf32>
    %10 = vector.broadcast %8 : vector<256x1xf32> to vector<256x64xf32>
    %11 = vector.broadcast %9 : vector<1x64xf32> to vector<256x64xf32>
    %12 = arith.mulf %10, %11 : vector<256x64xf32>
    %13 = arith.addf %7, %12 : vector<256x64xf32>
    %14 = vector.extract_strided_slice %1 {offsets = [0, 2], sizes = [256, 1], strides = [1, 1]} : vector<256x3xf32> to vector<256x1xf32>
    %15 = vector.extract_strided_slice %2 {offsets = [2, 0], sizes = [1, 64], strides = [1, 1]} : vector<3x64xf32> to vector<1x64xf32>
    %16 = vector.broadcast %14 : vector<256x1xf32> to vector<256x64xf32>
    %17 = vector.broadcast %15 : vector<1x64xf32> to vector<256x64xf32>
    %18 = arith.mulf %16, %17 : vector<256x64xf32>
    %19 = arith.addf %13, %18 : vector<256x64xf32>
    %c0_4 = arith.constant 0 : index
    %c0_5 = arith.constant 0 : index
    %20 = vector.load %arg3[%c0_4, %c0_5] : memref<1x64xf32, #tpu.memory_space<vmem>>, vector<1x64xf32>
    %21 = vector.broadcast %20 : vector<1x64xf32> to vector<256x64xf32>
    %22 = arith.addf %19, %21 : vector<256x64xf32>
    %cst = arith.constant 0.000000e+00 : f32
    %23 = vector.broadcast %cst : f32 to vector<256x64xf32>
    %24 = arith.maximumf %22, %23 : vector<256x64xf32>
    %25 = arith.truncf %24 : vector<256x64xf32> to vector<256x64xbf16>
    %c0_6 = arith.constant 0 : index
    %c0_7 = arith.constant 0 : index
    %26 = vector.load %arg4[%c0_6, %c0_7] : memref<64x64xbf16, #tpu.memory_space<vmem>>, vector<64x64xbf16>
    %cst_8 = arith.constant dense<0.000000e+00> : vector<256x64xf32>
    %27 = tpu.matmul %25, %26, %cst_8 {dimension_numbers = #tpu.dot_dimension_numbers<[1], [0], [0], [1], [0, 0, 1, 1], [], []>} : vector<256x64xbf16>, vector<64x64xbf16>, vector<256x64xf32> -> vector<256x64xf32>
    %c0_9 = arith.constant 0 : index
    %c0_10 = arith.constant 0 : index
    %28 = vector.load %arg5[%c0_9, %c0_10] : memref<1x64xf32, #tpu.memory_space<vmem>>, vector<1x64xf32>
    %29 = vector.broadcast %28 : vector<1x64xf32> to vector<256x64xf32>
    %30 = arith.addf %27, %29 : vector<256x64xf32>
    %cst_11 = arith.constant 0.000000e+00 : f32
    %31 = vector.broadcast %cst_11 : f32 to vector<256x64xf32>
    %32 = arith.maximumf %30, %31 : vector<256x64xf32>
    %33 = arith.truncf %32 : vector<256x64xf32> to vector<256x64xbf16>
    %c0_12 = arith.constant 0 : index
    %c0_13 = arith.constant 0 : index
    %34 = vector.load %arg6[%c0_12, %c0_13] : memref<64x64xbf16, #tpu.memory_space<vmem>>, vector<64x64xbf16>
    %cst_14 = arith.constant dense<0.000000e+00> : vector<256x64xf32>
    %35 = tpu.matmul %33, %34, %cst_14 {dimension_numbers = #tpu.dot_dimension_numbers<[1], [0], [0], [1], [0, 0, 1, 1], [], []>} : vector<256x64xbf16>, vector<64x64xbf16>, vector<256x64xf32> -> vector<256x64xf32>
    %c0_15 = arith.constant 0 : index
    %c0_16 = arith.constant 0 : index
    %36 = vector.load %arg7[%c0_15, %c0_16] : memref<1x64xf32, #tpu.memory_space<vmem>>, vector<1x64xf32>
    %37 = vector.broadcast %36 : vector<1x64xf32> to vector<256x64xf32>
    %38 = arith.addf %35, %37 : vector<256x64xf32>
    %cst_17 = arith.constant 0.000000e+00 : f32
    %39 = vector.broadcast %cst_17 : f32 to vector<256x64xf32>
    %40 = arith.maximumf %38, %39 : vector<256x64xf32>
    %41 = vector.extract_strided_slice %32 {offsets = [0, 0], sizes = [128, 64], strides = [1, 1]} : vector<256x64xf32> to vector<128x64xf32>
    %42 = tpu.transpose %41, [1, 0] : vector<128x64xf32> -> vector<64x128xf32>
    %c0_18 = arith.constant 0 : index
    %c0_19 = arith.constant 0 : index
    %c0_20 = arith.constant 0 : index
    %43 = vector.load %arg13[%c0_18, %c0_19, %c0_20] : memref<2x64x128xf32, #tpu.memory_space<vmem>>, vector<1x64x128xf32>
    %44 = vector.shape_cast %43 : vector<1x64x128xf32> to vector<64x128xf32>
    %45 = vector.shape_cast %42 : vector<64x128xf32> to vector<1x64x128xf32>
    tpu.vector_store %arg13[%c0_18, %c0_19, %c0_20], %45 {strides = array<i32>} : memref<2x64x128xf32, #tpu.memory_space<vmem>>, vector<1x64x128xf32>,
    %46 = vector.extract_strided_slice %32 {offsets = [128, 0], sizes = [128, 64], strides = [1, 1]} : vector<256x64xf32> to vector<128x64xf32>
    %47 = tpu.transpose %46, [1, 0] : vector<128x64xf32> -> vector<64x128xf32>
    %c1 = arith.constant 1 : index
    %c0_21 = arith.constant 0 : index
    %c0_22 = arith.constant 0 : index
    %48 = vector.load %arg13[%c1, %c0_21, %c0_22] : memref<2x64x128xf32, #tpu.memory_space<vmem>>, vector<1x64x128xf32>
    %49 = vector.shape_cast %48 : vector<1x64x128xf32> to vector<64x128xf32>
    %50 = vector.shape_cast %47 : vector<64x128xf32> to vector<1x64x128xf32>
    tpu.vector_store %arg13[%c1, %c0_21, %c0_22], %50 {strides = array<i32>} : memref<2x64x128xf32, #tpu.memory_space<vmem>>, vector<1x64x128xf32>,
    %51 = arith.truncf %40 : vector<256x64xf32> to vector<256x64xbf16>
    %c0_23 = arith.constant 0 : index
    %c0_24 = arith.constant 0 : index
    %52 = vector.load %arg8[%c0_23, %c0_24] : memref<64x128xbf16, #tpu.memory_space<vmem>>, vector<64x128xbf16>
    %cst_25 = arith.constant dense<0.000000e+00> : vector<256x128xf32>
    %53 = tpu.matmul %51, %52, %cst_25 {dimension_numbers = #tpu.dot_dimension_numbers<[1], [0], [0], [1], [0, 0, 1, 1], [], []>} : vector<256x64xbf16>, vector<64x128xbf16>, vector<256x128xf32> -> vector<256x128xf32>
    %c0_26 = arith.constant 0 : index
    %c0_27 = arith.constant 0 : index
    %54 = vector.load %arg9[%c0_26, %c0_27] : memref<1x128xf32, #tpu.memory_space<vmem>>, vector<1x128xf32>
    %55 = vector.broadcast %54 : vector<1x128xf32> to vector<256x128xf32>
    %56 = arith.addf %53, %55 : vector<256x128xf32>
    %cst_28 = arith.constant 0.000000e+00 : f32
    %57 = vector.broadcast %cst_28 : f32 to vector<256x128xf32>
    %58 = arith.maximumf %56, %57 : vector<256x128xf32>
    %59 = vector.shape_cast %58 : vector<256x128xf32> to vector<2x128x128xf32>
    %c0_29 = arith.constant 0 : index
    %c0_30 = arith.constant 0 : index
    %c0_31 = arith.constant 0 : index
    %60 = vector.load %arg14[%c0_29, %c0_30, %c0_31] : memref<2x128x128xf32, #tpu.memory_space<vmem>>, vector<2x128x128xf32>
    tpu.vector_store %arg14[%c0_29, %c0_30, %c0_31], %59 {strides = array<i32>} : memref<2x128x128xf32, #tpu.memory_space<vmem>>, vector<2x128x128xf32>,
    %cst_32 = arith.constant 0xFF800000 : f32
    %61 = vector.broadcast %cst_32 : f32 to vector<2x1024xf32>
    %c0_33 = arith.constant 0 : index
    %c0_34 = arith.constant 0 : index
    %62 = vector.load %arg15[%c0_33, %c0_34] : memref<2x1024xf32, #tpu.memory_space<vmem>>, vector<2x1024xf32>
    tpu.vector_store %arg15[%c0_33, %c0_34], %61 {strides = array<i32>} : memref<2x1024xf32, #tpu.memory_space<vmem>>, vector<2x1024xf32>,
    %c0_i32 = arith.constant 0 : i32
    %c1_i32 = arith.constant 1 : i32
    %63 = arith.muli %c0_i32, %c1_i32 : i32
    %c0_i32_35 = arith.constant 0 : i32
    %64 = arith.addi %c0_i32_35, %63 : i32
    %c128_i32 = arith.constant 128 : i32
    %65 = arith.muli %64, %c128_i32 : i32
    %66 = tpu.assume_multiple %65, 128 : i32
    %c0_36 = arith.constant 0 : index
    %67 = arith.index_cast %66 : i32 to index
    %c0_37 = arith.constant 0 : index
    %68 = vector.load %arg14[%c0_36, %67, %c0_37] : memref<2x128x128xf32, #tpu.memory_space<vmem>>, vector<2x128x128xf32>
    %69 = vector.shape_cast %68 : vector<2x128x128xf32> to vector<256x128xf32>
    %70 = arith.truncf %69 : vector<256x128xf32> to vector<256x128xbf16>
    %c0_38 = arith.constant 0 : index
    %c0_39 = arith.constant 0 : index
    %71 = vector.load %arg10[%c0_38, %c0_39] : memref<128x1024xbf16, #tpu.memory_space<vmem>>, vector<128x1024xbf16>
    %cst_40 = arith.constant dense<0.000000e+00> : vector<256x1024xf32>
    %72 = tpu.matmul %70, %71, %cst_40 {dimension_numbers = #tpu.dot_dimension_numbers<[1], [0], [0], [1], [0, 0, 1, 1], [], []>} : vector<256x128xbf16>, vector<128x1024xbf16>, vector<256x1024xf32> -> vector<256x1024xf32>
    %73 = vector.shape_cast %72 : vector<256x1024xf32> to vector<2x128x1024xf32>
    %cst_41 = arith.constant dense<0xFF800000> : vector<2x1024xf32>
    %74 = vector.multi_reduction <maximumf>, %73, %cst_41 [1] : vector<2x128x1024xf32> to vector<2x1024xf32>
    %c0_42 = arith.constant 0 : index
    %c0_43 = arith.constant 0 : index
    %75 = vector.load %arg15[%c0_42, %c0_43] : memref<2x1024xf32, #tpu.memory_space<vmem>>, vector<2x1024xf32>
    %76 = arith.maximumf %75, %74 : vector<2x1024xf32>
    %c0_44 = arith.constant 0 : index
    %c0_45 = arith.constant 0 : index
    %77 = vector.load %arg15[%c0_44, %c0_45] : memref<2x1024xf32, #tpu.memory_space<vmem>>, vector<2x1024xf32>
    tpu.vector_store %arg15[%c0_44, %c0_45], %76 {strides = array<i32>} : memref<2x1024xf32, #tpu.memory_space<vmem>>, vector<2x1024xf32>,
    %c1_i32_46 = arith.constant 1 : i32
    %c0_47 = arith.constant 0 : index
    %c0_48 = arith.constant 0 : index
    %78 = vector.load %arg15[%c0_47, %c0_48] : memref<2x1024xf32, #tpu.memory_space<vmem>>, vector<2x1024xf32>
    %c0_49 = arith.constant 0 : index
    %c0_50 = arith.constant 0 : index
    %79 = vector.load %arg11[%c0_49, %c0_50] : memref<1x1024xf32, #tpu.memory_space<vmem>>, vector<1x1024xf32>
    %80 = vector.broadcast %79 : vector<1x1024xf32> to vector<2x1024xf32>
    %81 = arith.addf %78, %80 : vector<2x1024xf32>
    %cst_51 = arith.constant 0.000000e+00 : f32
    %82 = vector.broadcast %cst_51 : f32 to vector<2x1024xf32>
    %83 = arith.maximumf %81, %82 : vector<2x1024xf32>
    %84 = vector.shape_cast %83 : vector<2x1024xf32> to vector<2x1x1024xf32>
    %c0_52 = arith.constant 0 : index
    %c0_53 = arith.constant 0 : index
    %c0_54 = arith.constant 0 : index
    %85 = vector.load %arg12[%c0_52, %c0_53, %c0_54] : memref<2x1x1024xf32, #tpu.memory_space<vmem>>, vector<2x1x1024xf32>
    tpu.vector_store %arg12[%c0_52, %c0_53, %c0_54], %84 {strides = array<i32>} : memref<2x1x1024xf32, #tpu.memory_space<vmem>>, vector<2x1x1024xf32>,
    return
  }
  func.func @transform_0(%arg0: i32) -> (i32, i32, i32) {
    %c0_i32 = arith.constant 0 : i32
    %c0_i32_0 = arith.constant 0 : i32
    %c0_i32_1 = arith.constant 0 : i32
    return %arg0, %c0_i32, %c0_i32_0 : i32, i32, i32
  }
  func.func @transform_1(%arg0: i32) -> (i32, i32) {
    %c0_i32 = arith.constant 0 : i32
    %c0_i32_0 = arith.constant 0 : i32
    %c0_i32_1 = arith.constant 0 : i32
    return %c0_i32, %c0_i32_0 : i32, i32
  }
  func.func @transform_2(%arg0: i32) -> (i32, i32) {
    %c0_i32 = arith.constant 0 : i32
    %c0_i32_0 = arith.constant 0 : i32
    %c0_i32_1 = arith.constant 0 : i32
    return %c0_i32, %c0_i32_0 : i32, i32
  }
  func.func @transform_3(%arg0: i32) -> (i32, i32) {
    %c0_i32 = arith.constant 0 : i32
    %c0_i32_0 = arith.constant 0 : i32
    %c0_i32_1 = arith.constant 0 : i32
    return %c0_i32, %c0_i32_0 : i32, i32
  }
  func.func @transform_4(%arg0: i32) -> (i32, i32) {
    %c0_i32 = arith.constant 0 : i32
    %c0_i32_0 = arith.constant 0 : i32
    %c0_i32_1 = arith.constant 0 : i32
    return %c0_i32, %c0_i32_0 : i32, i32
  }
  func.func @transform_5(%arg0: i32) -> (i32, i32) {
    %c0_i32 = arith.constant 0 : i32
    %c0_i32_0 = arith.constant 0 : i32
    %c0_i32_1 = arith.constant 0 : i32
    return %c0_i32, %c0_i32_0 : i32, i32
  }
  func.func @transform_6(%arg0: i32) -> (i32, i32) {
    %c0_i32 = arith.constant 0 : i32
    %c0_i32_0 = arith.constant 0 : i32
    %c0_i32_1 = arith.constant 0 : i32
    return %c0_i32, %c0_i32_0 : i32, i32
  }
  func.func @transform_7(%arg0: i32) -> (i32, i32) {
    %c0_i32 = arith.constant 0 : i32
    %c0_i32_0 = arith.constant 0 : i32
    %c0_i32_1 = arith.constant 0 : i32
    return %c0_i32, %c0_i32_0 : i32, i32
  }
  func.func @transform_8(%arg0: i32) -> (i32, i32) {
    %c0_i32 = arith.constant 0 : i32
    %c0_i32_0 = arith.constant 0 : i32
    %c0_i32_1 = arith.constant 0 : i32
    return %c0_i32, %c0_i32_0 : i32, i32
  }
  func.func @transform_9(%arg0: i32) -> (i32, i32) {
    %c0_i32 = arith.constant 0 : i32
    %c0_i32_0 = arith.constant 0 : i32
    %c0_i32_1 = arith.constant 0 : i32
    return %c0_i32, %c0_i32_0 : i32, i32
  }
  func.func @transform_10(%arg0: i32) -> (i32, i32) {
    %c0_i32 = arith.constant 0 : i32
    %c0_i32_0 = arith.constant 0 : i32
    %c0_i32_1 = arith.constant 0 : i32
    return %c0_i32, %c0_i32_0 : i32, i32
  }
  func.func @transform_11(%arg0: i32) -> (i32, i32, i32) {
    %c0_i32 = arith.constant 0 : i32
    %c0_i32_0 = arith.constant 0 : i32
    %c0_i32_1 = arith.constant 0 : i32
    return %arg0, %c0_i32, %c0_i32_0 : i32, i32, i32
  }
  func.func @transform_12(%arg0: i32) -> (i32, i32, i32) {
    %c0_i32 = arith.constant 0 : i32
    %c0_i32_0 = arith.constant 0 : i32
    %c0_i32_1 = arith.constant 0 : i32
    return %arg0, %c0_i32, %c0_i32_0 : i32, i32, i32
  }
}

</mosaic_0001>

<bundles_post_ra>
// kernel: pointnet_cls_forward.1
= control target key start
LH: loop header
LB: loop body
LE: loop exit
PB: predicated region body
PF: predicated region fallthrough
CT: control target
= control target key end

     0   :  { %s6194_s0 = inlined_call_operand.vmem [shape: f32[4,128,3], index: 0, kind: input, shape index: {}]   ;;  %s6195_s1 = inlined_call_operand.hbm [shape: f32[3,64], index: 1, kind: input, shape index: {}]   ;;  %s6196_s2 = inlined_call_operand.hbm [shape: f32[1,64], index: 2, kind: input, shape index: {}]   ;;  %s6197_s3 = inlined_call_operand.vmem [shape: bf16[64,64], index: 3, kind: input, shape index: {}]   ;;  %s6198_s4 = inlined_call_operand.hbm [shape: f32[1,64], index: 4, kind: input, shape index: {}]   ;;  %s6199_s5 = inlined_call_operand.vmem [shape: bf16[64,64], index: 5, kind: input, shape index: {}]   ;;  %s6200_s6 = inlined_call_operand.hbm [shape: f32[1,64], index: 6, kind: input, shape index: {}]   ;;  %s6201_s7 = inlined_call_operand.vmem [shape: bf16[64,128], index: 7, kind: input, shape index: {}]   ;;  %s6202_s8 = inlined_call_operand.hbm [shape: f32[1,128], index: 8, kind: input, shape index: {}]   ;;  %s6203_s9 = inlined_call_operand.vmem [shape: bf16[128,1024], index: 9, kind: input, shape index: {}]   ;;  %s6204_s10 = inlined_call_operand.hbm [shape: f32[1,1024], index: 10, kind: input, shape index: {}]   ;;  %s6205_s11 = inlined_call_operand.vmem [shape: f32[4,1,1024], index: 11, kind: output, shape index: {0}]   ;;  %s6206_s12 = inlined_call_operand.hbm [shape: f32[4,64,128], index: 12, kind: output, shape index: {1}]  }
   0x1   :  { %6216 = sst [smem:[#allocation27_spill]] %s6196_s2 }
   0x2   :  { %18 = vsyncpa [#allocation5], 0 }
   0x3   :  { %19 = vsyncpa [#allocation8], 0 }
   0x4   :  { %20 = vsyncpa [#allocation11], 0 }
   0x5   :  { %21 = vsyncpa [#allocation14], 0 }
   0x6   :  { %22 = vsyncpa [#allocation6], 0 }
   0x7   :  { %24 = vsyncpa [#allocation6 + $0x1], 0  ;;  %s4974_s21 = smov 0   ;;  %s4976_s22 = smov 0  }
   0x8   :  { %s4978_s23 = smov 0   ;;  %s4980_s24 = smov 0  }
   0x9 LB: > { %6217 = sst [smem:[#allocation21_spill]] %s4881_s21  ;;  %s4995_s25 = sadd.s32 4294967295, %s4893_s24   ;;  %s4893_s24 = sphi %s4980_s24, %s6243_s24   ;;  %s4889_s23 = sphi %s4978_s23, %s6245_s23   ;;  %s4885_s22 = sphi %s4976_s22, %s6247_s22   ;;  %s4881_s21 = sphi %s4974_s21, %s6246_s21  }
   0xa   : > { %6218 = sst [smem:[#allocation22_spill]] %s4889_s23  ;;  %s4126_s26 = sadd.s32 4294967294, %s4893_s24  }
   0xb   : > { %6219 = sst [smem:[#allocation23_spill]] %s4893_s24  ;;  %s4999_s27 = sadd.s32 1, %s4893_s24  }
   0xc   : > { %6220 = sst [smem:[#allocation24_spill]] %s4999_s27  ;;  %s299_s28 = sadd.s32 1, %s4889_s23 }
   0xd   : > { %s296_s29 = ssub.s32 %s4893_s24, %s4999_s27  ;;  %p309_p0 = scmp.ne.s32.totalorder %s4889_s23, %s4885_s22 }
   0xe   : > { %p297_p1 = scmp.eq.s32.totalorder %s296_s29, 0  ;;  %p310_p2 = scmp.eq.s32.totalorder %s4995_s25, 1 }
   0xf   : > { %p315_p3 = scmp.ne.s32.totalorder %s4885_s22, %s4881_s21  ;;  %p316_p4 = scmp.eq.s32.totalorder %s4126_s26, 1 }
  0x10   : > { %s5010_s30 = scalar_select %p297_p1, %s4889_s23, %s299_s28  }
  0x11   : > { %p5012_p5 = por %p310_p2, %p309_p0  ;;  %p5016_p6 = por %p316_p4, %p315_p3 }
  0x12   : > { %6221 = sst [smem:[#allocation25_spill]] %s5010_s30  ;;  %p4127_p7 = scmp.ge.s32.totalorder %s4893_s24, 1 }
  0x13   : > { %s6222_s13 = scalar_select %p5012_p5, 1, 0 }
  0x14   : > { %s6223_s14 = scalar_select %p5016_p6, 1, 0 }
  0x15   : > { %p323_p8 = scmp.lt.s32.totalorder %s4893_s24, 3  ;;  %p6211_p9 = scmp.eq.s32.totalorder %s4995_s25, 0 }
  0x16   : > { %6224 = sst [smem:[#allocation26_spill]] %s6223_s14  ;;  %s4895_s16 = smov [#allocation7]  }
  0x17   : > { %p5023_p10 = pnand %p4127_p7, %p323_p8  ;;  %s347_s17 = sshll.u32 %s4895_s16, 4  ;;  %s348_s17 = int_to_ptr.vmem [resolvable:$true] %s347_s17 }
  0x18   : > { %s4896_s18 = smov [#allocation10]   ;;  %s4897_s26 = smov [#allocation4]  }
  0x19   : > { %s6225_s15 = scalar_select %p5023_p10, 1, 0 }
  0x1a   : > { %p4507_p11 = pneg %p5023_p10  ;;  %s375_s19 = sshll.u32 %s4896_s18, 4  ;;  %s5035_s19 = int_to_ptr.vmem [resolvable:$true] %s375_s19 }
  0x1b   : > { %s336_s28 = sshll.u32 %s4897_s26, 4  ;;  %s6227_s2 = sld [smem:[#allocation27_spill]]  ;;  %s5037_s28 = int_to_ptr.vmem [resolvable:$true] %s336_s28 }
  0x1c   : > { %p5031_p12 = pnand %p6211_p9, %p4507_p11 }
  0x1e   : > { %p5047_p0 = pneg %p5031_p12 }
  0x21   : > { %s4647_s16 = scalar_lea.hbm %s6227_s2, 16 }
  0x22   : > { %p4648_p13 = scmp.ne.s32.totalorder %s6227_s2, %s4647_s16  ;;  %p4654_p3 = scmp.lt.u32.totalorder %s4647_s16, %s6227_s2 }
  0x24   : > { %p4650_p1 = pnand %p5047_p0, %p4648_p13 }
  0x26   : > { %p4651_p2 = pneg %p4650_p1 }
  0x28   : > { %p4656_p4 = pnand %p4654_p3, %p4651_p2 }
  0x2a   : > { %4659 = shalt.err (!%p4656_p4)
}
  0x2b   : > { %s4660_s30 = scalar_lea.vmem %s348_s17, 16  ;;  %s4667_s23 = scalar_lea.vmem %s348_s17, 32 }
  0x2c   : > { %p4661_p7 = scmp.ne.s32.totalorder %s348_s17, %s4660_s30  ;;  %p4668_p9 = scmp.lt.s32.totalorder %s348_s17, %s348_s17 }
  0x2d   : > { %p4669_p6 = scmp.lt.s32.totalorder %s4667_s23, %s4660_s30 }
  0x2e   : > { %p4663_p8 = pnand %p4661_p7, %p5047_p0 }
  0x2f   : > { %p4670_p5 = por %p4669_p6, %p4668_p9 }
  0x30   : > { %p4664_p11 = pneg %p4663_p8 }
  0x32   : > { %p4671_p10 = pnand %p4670_p5, %p4664_p11 }
  0x34   : > { %4674 = shalt.err (!%p4671_p10)
}
  0x35   : > { %4513 = dma.hbm_to_vmem [thread:$0]  (!%p5031_p12), %s6227_s2, 16, %s348_s17, [#allocation8]  }
  0x36   : > { %s4675_s26 = scalar_lea.hbm %s6200_s6, 16 }
  0x37   : > { %p4676_p13 = scmp.ne.s32.totalorder %s6200_s6, %s4675_s26  ;;  %p4682_p5 = scmp.lt.u32.totalorder %s4675_s26, %s6200_s6 }
  0x39   : > { %p4678_p1 = pnand %p4676_p13, %p5047_p0 }
  0x3b   : > { %p4679_p6 = pneg %p4678_p1 }
  0x3d   : > { %p4684_p9 = pnand %p4682_p5, %p4679_p6 }
  0x3f   : > { %4687 = shalt.err (!%p4684_p9)
}
  0x40   : > { %s4688_s17 = scalar_lea.vmem %s5035_s19, 16  ;;  %s4695_s21 = scalar_lea.vmem %s5035_s19, 32 }
  0x41   : > { %p4689_p10 = scmp.ne.s32.totalorder %s5035_s19, %s4688_s17  ;;  %p4696_p4 = scmp.lt.s32.totalorder %s5035_s19, %s5035_s19 }
  0x42   : > { %p4697_p7 = scmp.lt.s32.totalorder %s4695_s21, %s4688_s17 }
  0x43   : > { %p4691_p2 = pnand %p4689_p10, %p5047_p0 }
  0x44   : > { %p4698_p8 = por %p4697_p7, %p4696_p4 }
  0x45   : > { %p4692_p3 = pneg %p4691_p2 }
  0x47   : > { %p4699_p11 = pnand %p4698_p8, %p4692_p3 }
  0x49   : > { %4702 = shalt.err (!%p4699_p11)
}
  0x4a   : > { %4519 = dma.hbm_to_vmem [thread:$0]  (!%p5031_p12), %s6200_s6, 16, %s5035_s19, [#allocation11]  }
  0x4b   : > { %s4703_s16 = scalar_lea.hbm %s6195_s1, 64 }
  0x4c   : > { %p4704_p13 = scmp.ne.s32.totalorder %s6195_s1, %s4703_s16  ;;  %p4710_p5 = scmp.lt.u32.totalorder %s4703_s16, %s6195_s1 }
  0x4e   : > { %p4706_p1 = pnand %p4704_p13, %p5047_p0 }
  0x50   : > { %p4707_p6 = pneg %p4706_p1 }
  0x52   : > { %p4712_p9 = pnand %p4710_p5, %p4707_p6 }
  0x54   : > { %4715 = shalt.err (!%p4712_p9)
}
  0x55   : > { %s4716_s19 = scalar_lea.vmem %s5037_s28, 64  ;;  %p4724_p4 = scmp.lt.s32.totalorder %s5037_s28, %s5037_s28 }
  0x56   : > { %p4717_p10 = scmp.ne.s32.totalorder %s5037_s28, %s4716_s19  ;;  %p4725_p7 = scmp.lt.s32.totalorder %s4716_s19, %s4716_s19 }
  0x58   : > { %p4719_p2 = pnand %p4717_p10, %p5047_p0  ;;  %p4726_p8 = por %p4725_p7, %p4724_p4 }
  0x5a   : > { %p4720_p3 = pneg %p4719_p2 }
  0x5c   : > { %p4727_p11 = pnand %p4726_p8, %p4720_p3 }
  0x5e   : > { %4730 = shalt.err (!%p4727_p11)
}
  0x5f   : > { %4510 = dma.hbm_to_vmem [thread:$0]  (!%p5031_p12), %s6195_s1, 64, %s5037_s28, [#allocation5]  }
  0x60   : > { %s4898_s27 = smov [#allocation9]   ;;  %s4899_s14 = smov [#allocation12]  }
  0x61   : > { %s361_s29 = sshll.u32 %s4898_s27, 4  ;;  %s389_s16 = sshll.u32 %s4899_s14, 4  ;;  %s362_s29 = int_to_ptr.vmem [resolvable:$true] %s361_s29  ;;  %s390_s16 = int_to_ptr.vmem [resolvable:$true] %s389_s16 }
  0x62   : > { %s4731_s23 = scalar_lea.hbm %s6198_s4, 16 }
  0x63   : > { %p4732_p13 = scmp.ne.s32.totalorder %s6198_s4, %s4731_s23  ;;  %p4738_p5 = scmp.lt.u32.totalorder %s4731_s23, %s6198_s4 }
  0x65   : > { %p4734_p1 = pnand %p4732_p13, %p5047_p0 }
  0x67   : > { %p4735_p6 = pneg %p4734_p1 }
  0x69   : > { %p4740_p9 = pnand %p4738_p5, %p4735_p6 }
  0x6b   : > { %4743 = shalt.err (!%p4740_p9)
}
  0x6c   : > { %s4744_s28 = scalar_lea.vmem %s362_s29, 16  ;;  %s4751_s24 = scalar_lea.vmem %s362_s29, 32 }
  0x6d   : > { %p4745_p10 = scmp.ne.s32.totalorder %s362_s29, %s4744_s28  ;;  %p4752_p4 = scmp.lt.s32.totalorder %s362_s29, %s362_s29 }
  0x6e   : > { %p4753_p7 = scmp.lt.s32.totalorder %s4751_s24, %s4744_s28 }
  0x6f   : > { %p4747_p2 = pnand %p4745_p10, %p5047_p0 }
  0x70   : > { %p4754_p8 = por %p4753_p7, %p4752_p4 }
  0x71   : > { %p4748_p3 = pneg %p4747_p2 }
  0x73   : > { %p4755_p11 = pnand %p4754_p8, %p4748_p3 }
  0x75   : > { %4758 = shalt.err (!%p4755_p11)
}
  0x76   : > { %4516 = dma.hbm_to_vmem [thread:$0]  (!%p5031_p12), %s6198_s4, 16, %s362_s29, [#allocation8]  }
  0x77   : > { %s4759_s30 = scalar_lea.hbm %s6202_s8, 16 }
  0x78   : > { %p4760_p13 = scmp.ne.s32.totalorder %s6202_s8, %s4759_s30  ;;  %p4766_p5 = scmp.lt.u32.totalorder %s4759_s30, %s6202_s8 }
  0x7a   : > { %p4762_p1 = pnand %p4760_p13, %p5047_p0 }
  0x7c   : > { %p4763_p6 = pneg %p4762_p1 }
  0x7e   : > { %p4768_p9 = pnand %p4766_p5, %p4763_p6 }
  0x80   : > { %4771 = shalt.err (!%p4768_p9)
}
  0x81   : > { %s4772_s28 = scalar_lea.vmem %s390_s16, 16  ;;  %s4779_s29 = scalar_lea.vmem %s390_s16, 32 }
  0x82   : > { %p4773_p10 = scmp.ne.s32.totalorder %s390_s16, %s4772_s28  ;;  %p4780_p4 = scmp.lt.s32.totalorder %s390_s16, %s390_s16 }
  0x83   : > { %p4781_p7 = scmp.lt.s32.totalorder %s4779_s29, %s4772_s28 }
  0x84   : > { %p4775_p2 = pnand %p4773_p10, %p5047_p0 }
  0x85   : > { %p4782_p8 = por %p4781_p7, %p4780_p4 }
  0x86   : > { %p4776_p3 = pneg %p4775_p2 }
  0x88   : > { %p4783_p11 = pnand %p4782_p8, %p4776_p3 }
  0x8a   : > { %4786 = shalt.err (!%p4783_p11)
}
  0x8b   : > { %4522 = dma.hbm_to_vmem [thread:$0]  (!%p5031_p12), %s6202_s8, 16, %s390_s16, [#allocation11]  }
  0x8c   : > { %s4900_s14 = smov [#allocation13]   ;;  %s4787_s23 = scalar_lea.hbm %s6204_s10, 128 }
  0x8d   : > { %s403_s2 = sshll.u32 %s4900_s14, 4  ;;  %p4788_p13 = scmp.ne.s32.totalorder %s6204_s10, %s4787_s23  ;;  %s404_s2 = int_to_ptr.vmem [resolvable:$true] %s403_s2 }
  0x8e   : > { %p4794_p5 = scmp.lt.u32.totalorder %s4787_s23, %s6204_s10 }
  0x8f   : > { %p4790_p1 = pnand %p4788_p13, %p5047_p0 }
  0x91   : > { %p4791_p6 = pneg %p4790_p1 }
  0x93   : > { %p4796_p9 = pnand %p4794_p5, %p4791_p6 }
  0x95   : > { %4799 = shalt.err (!%p4796_p9)
}
  0x96   : > { %s4800_s16 = scalar_lea.vmem %s404_s2, 128  ;;  %p4808_p4 = scmp.lt.s32.totalorder %s404_s2, %s404_s2 }
  0x97   : > { %p4801_p10 = scmp.ne.s32.totalorder %s404_s2, %s4800_s16  ;;  %p4809_p7 = scmp.lt.s32.totalorder %s4800_s16, %s4800_s16 }
  0x99   : > { %p4803_p2 = pnand %p4801_p10, %p5047_p0  ;;  %p4810_p8 = por %p4809_p7, %p4808_p4 }
  0x9b   : > { %p4804_p3 = pneg %p4803_p2 }
  0x9d   : > { %p4811_p11 = pnand %p4810_p8, %p4804_p3 }
  0x9f   : > { %4814 = shalt.err (!%p4811_p11)
}
  0xa0   : > { %4525 = dma.hbm_to_vmem [thread:$0]  (!%p5031_p12), %s6204_s10, 128, %s404_s2, [#allocation14]  }
  0xa1   : > { %p6229_p13 = scmp.ne.s32.totalorder %s6225_s15, 0 }
  0xa2   : > { %p6230_p1 = scmp.eq.s32.totalorder (!%p6229_p13), %s4995_s25, 0 }
  0xa3   : > { %426 = sbr.rel (%p6229_p13) target bundleno = 1647 (0x66f), region = 64 }
  0xaa   : > { %4860 = dma.done.wait (%p6230_p1), [#allocation5], 64   ;;  %p6231_p0 = pmov %p6230_p1 }
  0xac   : > { %4862 = vsyncadd (%p6231_p0), [#allocation5], 4294967232  ;;  %p6232_p6 = pmov %p6231_p0 }
  0xad   : > { %p6233_p5 = pmov %p6231_p0 }
  0xae   : > { %4864 = dma.done.wait (%p6232_p6), [#allocation8], 32  }
  0xaf   : > { %4866 = vsyncadd (%p6233_p5), [#allocation8], 4294967264  ;;  %p6234_p9 = pmov %p6231_p0 }
  0xb0   : > { %p6235_p12 = pmov %p6231_p0 }
  0xb1   : > { %4868 = dma.done.wait (%p6234_p9), [#allocation11], 32  }
  0xb2   : > { %4870 = vsyncadd (%p6235_p12), [#allocation11], 4294967264  ;;  %p6236_p10 = pmov %p6231_p0 }
  0xb3   : > { %p6237_p2 = pmov %p6231_p0 }
  0xb4   : > { %4872 = dma.done.wait (%p6236_p10), [#allocation14], 128  }
  0xb5   : > { %4874 = vsyncadd (%p6237_p2), [#allocation14], 4294967168  ;;  %s4143_s15 = sshll.u32 %s4995_s25, 1  ;;  %v4901_v0 = vmov 1   ;;  %v4902_v4 = vmov 2   ;;  %v4903_v7 = vmov 0   ;;  %v702_v37 = vlaneseq }
  0xb6   : > { %4590 = vset.pattern.permute.xlu0 %v4901_v0  ;;  %4588 = vset.pattern.permute.xlu1 %v4901_v0  ;;  %p495_p3 = scmp.lt.s32.totalorder %s4143_s15, 3  ;;  %v4635_v10 = vld [vmem:[%s6197_s3] sm:$0xff]   ;;  %v4636_v11 = vld [vmem:[%s6197_s3 + $0x8] sm:$0xff]   ;;  %v4637_v13 = vld [vmem:[%s6197_s3 + $0x10] sm:$0xff]   ;;  %vm1256_vm0 = vcmask 523264   ;;  %s491_s30 = sand.u32 1, %s4885_s22  }
  0xb7   : > { %4353 = vmatprep.subr.bf16.mxu0 %v4635_v10  ;;  %4473 = vmatprep.subr.bf16.mxu1 %v4635_v10  ;;  %v4638_v14 = vld [vmem:[%s6197_s3 + $0x18] sm:$0xff]   ;;  %v5298_v41 = vshrl.u32 %v702_v37, 7  ;;  %v541_v46 = vld [vmem:[#allocation4] sm:$0x7]  ;;  %s4142_s23 = sshll.u32 %s491_s30, 7  ;;  %vm3836_vm1 = vcmask 1041409  }
  0xb8   : > { %s6249_s15 = smov (!%p495_p3, %s4143_s15), 3  ;;  %4354 = vmatpush3.bf16.msra.mxu0 %v4635_v10  ;;  %4477 = vmatpush3.bf16.msra.mxu1 %v4635_v10  ;;  %s6075_s17 = scalar_lea.vmem [#allocation15], %s4142_s23  ;;  %vm3838_vm2 = vcmask 1043459   ;;  %vm3840_vm3 = vcmask 1045509   ;;  %vm3842_vm4 = vcmask 1047559  }
  0xb9   : > { %s4290_s20 = sshll.u32 %s6249_s15, 7  ;;  %4355 = vmatprep.subr.bf16.mxu0 %v4636_v11  ;;  %4474 = vmatprep.subr.bf16.mxu1 %v4636_v11  ;;  %v868_v45 = vsub.s32 1, %v5298_v41  ;;  %v1064_v47 = vsub.s32 2, %v5298_v41  ;;  %v704_v48 = vsub.s32 0, %v5298_v41  ;;  %s4292_s19 = sshll.u32 %s4995_s25, 11 }
  0xba   : > { %s5191_s14 = scalar_lea.vmem %s6194_s0, %s4290_s20  ;;  %s3979_s21 = sshll.u32 %s6075_s17, 4  ;;  %s6109_s21 = int_to_ptr.vmem [resolvable:$true] %s3979_s21 }
  0xbb   : > { %v511_v1 = vld [vmem:[%s5191_s14 + $0x10] sm:$0xff]  ;;  %v509_v2 = vld [vmem:[%s5191_s14] sm:$0xff]  ;;  %v510_v3 = vld [vmem:[%s5191_s14 + $0x8] sm:$0xff]  ;;  %v5316_v50 = vrot.slane %v541_v46, %v868_v45  ;;  %v5323_v53 = vrot.slane %v541_v46, %v1064_v47  ;;  %v5327_v54 = vrot.slane %v541_v46, %v704_v48  ;;  %s6107_s29 = scalar_lea.hbm %s6206_s12, %s4292_s19  ;;  %s6115_s25 = scalar_lea.sflag [#allocation6], %s491_s30 }
  0xbc   : > { %747 = vperm.xlu0 %4590, %v511_v1   ;;  %739 = vperm.xlu1 %4588, %v509_v2   ;;  %v513_v5 = vld [vmem:[%s5191_s14 + $0x20] sm:$0xff]  ;;  %v512_v6 = vld [vmem:[%s5191_s14 + $0x18] sm:$0xff]  ;;  %v5203_v9 = vld [vmem:[%s5191_s14 + $0x48] sm:$0xff]  ;;  %s4815_s24 = scalar_lea.vmem %s6109_s21, 2048  ;;  %p6238_p7 = scmp.ne.s32.totalorder %s6222_s13, 0 }
  0xbd   : > { %v516_v8 = vld [vmem:[%s5191_s14 + $0x38] sm:$0xff]  ;;  %v514_v12 = vld [vmem:[%s5191_s14 + $0x28] sm:$0xff]  ;;  %4356 = vmatpush3.bf16.msra.mxu0 %v4636_v11  ;;  %4478 = vmatpush3.bf16.msra.mxu1 %v4636_v11  ;;  %v519_v15 = vld [vmem:[%s5191_s14 + $0x50] sm:$0xff]  ;;  %p4816_p4 = scmp.ne.s32.totalorder %s6109_s21, %s4815_s24  ;;  %s4905_s20 = smov [#allocation15]  }
  0xbe   : > { %4357 = vmatprep.subr.bf16.mxu0 %v4637_v13  ;;  %4475 = vmatprep.subr.bf16.mxu1 %v4637_v13  ;;  %v515_v16 = vld [vmem:[%s5191_s14 + $0x30] sm:$0xff]  ;;  %v521_v17 = vld [vmem:[%s5191_s14 + $0x60] sm:$0xff]  ;;  %v5229_v18 = vld [vmem:[%s5191_s14 + $0x88] sm:$0xff]  ;;  %s4819_s18 = sshll.u32 %s4905_s20, 4  ;;  %s4820_s18 = int_to_ptr.vmem [resolvable:$false] %s4819_s18 }
  0xbf   : > { %v5234_v19 = vld [vmem:[%s5191_s14 + $0x90] sm:$0xff]  ;;  %v517_v20 = vld [vmem:[%s5191_s14 + $0x40] sm:$0xff]  ;;  %v522_v21 = vld [vmem:[%s5191_s14 + $0x68] sm:$0xff]  ;;  %p4817_p8 = pnand %p4816_p4, %p6238_p7  ;;  %s4821_s27 = scalar_lea.vmem %s4820_s18, 4096 }
  0xc0   : > { %4593 = vset.pattern.permute.xlu0 %v4902_v4  ;;  %743 = vperm.xlu1 %4588, %v510_v3   ;;  %v523_v22 = vld [vmem:[%s5191_s14 + $0x70] sm:$0xff]  ;;  %v520_v23 = vld [vmem:[%s5191_s14 + $0x58] sm:$0xff]  ;;  %v5249_v24 = vld [vmem:[%s5191_s14 + $0xa8] sm:$0xff]  ;;  %p4822_p13 = scmp.lt.s32.totalorder %s6109_s21, %s4820_s18  ;;  %p4823_p1 = scmp.lt.s32.totalorder %s4821_s27, %s4815_s24 }
  0xc1   : > { %939 = vperm.xlu0 %4593, %v510_v3   ;;  %4358 = vmatpush3.bf16.msra.mxu0 %v4637_v13  ;;  %v5254_v25 = vld [vmem:[%s5191_s14 + $0xb0] sm:$0xff]  ;;  %v524_v26 = vld [vmem:[%s5191_s14 + $0x78] sm:$0xff]  ;;  %v5263_v27 = vld [vmem:[%s5191_s14 + $0xa0] sm:$0xff]  ;;  %p4818_p11 = pneg %p4817_p8 }
  0xc2   : > { %4479 = vmatpush3.bf16.msra.mxu1 %v4637_v13  ;;  %4359 = vmatprep.subr.bf16.mxu0 %v4638_v14  ;;  %v5267_v28 = vld [vmem:[%s5191_s14 + $0xb8] sm:$0xff]  ;;  %v5272_v29 = vld [vmem:[%s5191_s14 + $0xc8] sm:$0xff]  ;;  %v5281_v30 = vld [vmem:[%s5191_s14 + $0xd0] sm:$0xff]  ;;  %p4824_p0 = por %p4823_p1, %p4822_p13 }
  0xc3   : > { %4476 = vmatprep.subr.bf16.mxu1 %v4638_v14  ;;  %v5286_v31 = vld [vmem:[%s5191_s14 + $0xe0] sm:$0xff]  ;;  %v5294_v38 = vld [vmem:[%s5191_s14 + $0xe8] sm:$0xff]  ;;  %v5303_v42 = vld [vmem:[%s5191_s14 + $0xf0] sm:$0xff] }
  0xc4   : > { %4589 = vset.pattern.permute.xlu1 %v4903_v7  ;;  %v525_v36 = vld [vmem:[%s5191_s14 + $0x80] sm:$0xff]  ;;  %v528_v52 = vld [vmem:[%s5191_s14 + $0x98] sm:$0xff]  ;;  %p4825_p6 = pnand %p4824_p0, %p4818_p11 }
  0xc5   : > { %951 = vperm.xlu0 %4593, %v513_v5   ;;  %559 = vperm.xlu1 %4589, %v512_v6   ;;  %v5333_v59 = vld [vmem:[%s5191_s14 + $0xf8] sm:$0xff] }
  0xc6   : > { %4360 = vmatpush3.bf16.msra.mxu0 %v4638_v14  ;;  %4480 = vmatpush3.bf16.msra.mxu1 %v4638_v14 }
  0xc9   : > { %963 = vperm.xlu0 %4593, %v516_v8   ;;  %4591 = vset.pattern.permute.xlu1 %v4901_v0 }
  0xca   : > { %751 = vperm.xlu1 %4591, %v512_v6  }
  0xcd   : > { %971 = vperm.xlu0 %4593, %v5203_v9  }
  0xce   : > { %4592 = vset.pattern.permute.xlu1 %v4902_v4 }
  0xcf   : > { %935 = vperm.xlu1 %4592, %v509_v2  }
  0xd1   : > { %4604 = vset.pattern.permute.xlu0 %v4903_v7 }
  0xd2   : > { %544 = vperm.xlu0 %4604, %v509_v2  }
  0xd3   : > { %943 = vperm.xlu1 %4592, %v511_v1  }
  0xd6   : > { %549 = vperm.xlu0 %4604, %v510_v3  }
  0xd7   : > { %947 = vperm.xlu1 %4592, %v512_v6  }
  0xda   : > { %554 = vperm.xlu0 %4604, %v511_v1  }
  0xdb   : > { %4594 = vset.pattern.permute.xlu1 %v4903_v7 }
  0xdc   : > { %569 = vperm.xlu1 %4594, %v514_v12  }
  0xde   : > { %564 = vperm.xlu0 %4604, %v513_v5  }
  0xe0   : > { %4595 = vset.pattern.permute.xlu1 %v4901_v0 }
  0xe1   : > { %755 = vperm.xlu1 %4595, %v513_v5  }
  0xe2   : > { %589 = vperm.xlu0 %4604, %v5203_v9  }
  0xe5   : > { %4596 = vset.pattern.permute.xlu1 %v4903_v7 }
  0xe6   : > { %594 = vperm.xlu0 %4604, %v519_v15   ;;  %574 = vperm.xlu1 %4596, %v515_v16  }
  0xea   : > { %604 = vperm.xlu0 %4604, %v521_v17   ;;  %579 = vperm.xlu1 %4596, %v516_v8  }
  0xee   : > { %629 = vperm.xlu0 %4604, %v5229_v18   ;;  %4597 = vset.pattern.permute.xlu1 %v4901_v0 }
  0xef   : > { %767 = vperm.xlu1 %4597, %v516_v8  }
  0xf2   : > { %634 = vperm.xlu0 %4604, %v5234_v19  }
  0xf3   : > { %4598 = vset.pattern.permute.xlu1 %v4902_v4 }
  0xf4   : > { %955 = vperm.xlu1 %4598, %v514_v12  }
  0xf6   : > { %4612 = vset.pattern.permute.xlu0 %v4901_v0 }
  0xf7   : > { %759 = vperm.xlu0 %4612, %v514_v12  }
  0xf8   : > { %959 = vperm.xlu1 %4598, %v515_v16  }
  0xfb   : > { %763 = vperm.xlu0 %4612, %v515_v16  }
  0xfc   : > { %4599 = vset.pattern.permute.xlu1 %v4903_v7 }
  0xfd   : > { %584 = vperm.xlu1 %4599, %v517_v20  }
  0xff   : > { %779 = vperm.xlu0 %4612, %v519_v15  }
 0x101   : > { %4600 = vset.pattern.permute.xlu1 %v4901_v0 }
 0x102   : > { %771 = vperm.xlu1 %4600, %v517_v20  }
 0x103   : > { %791 = vperm.xlu0 %4612, %v522_v21  }
 0x106   : > { %775 = vperm.xlu1 %4600, %v5203_v9   ;;  %v5343_v9 = vld [vmem:[#allocation7] ss:$0 sm:$0xff] }
 0x107   : > { %795 = vperm.xlu0 %4612, %v523_v22  }
 0x10a   : > { %4601 = vset.pattern.permute.xlu1 %v4903_v7 }
 0x10b   : > { %599 = vperm.xlu1 %4601, %v520_v23   ;;  %811 = vperm.xlu0 %4612, %v5234_v19  }
 0x10f   : > { %4602 = vset.pattern.permute.xlu1 %v4901_v0  ;;  %823 = vperm.xlu0 %4612, %v5249_v24  }
 0x110   : > { %783 = vperm.xlu1 %4602, %v520_v23  }
 0x113   : > { %827 = vperm.xlu0 %4612, %v5254_v25  }
 0x114   : > { %4603 = vset.pattern.permute.xlu1 %v4902_v4 }
 0x115   : > { %967 = vperm.xlu1 %4603, %v517_v20  }
 0x117   : > { %4619 = vset.pattern.permute.xlu0 %v4902_v4 }
 0x118   : > { %983 = vperm.xlu0 %4619, %v521_v17  }
 0x119   : > { %975 = vperm.xlu1 %4603, %v519_v15  }
 0x11c   : > { %995 = vperm.xlu0 %4619, %v524_v26  }
 0x11d   : > { %979 = vperm.xlu1 %4603, %v520_v23  }
 0x120   : > { %1003 = vperm.xlu0 %4619, %v5229_v18  }
 0x121   : > { %4605 = vset.pattern.permute.xlu1 %v4903_v7 }
 0x122   : > { %609 = vperm.xlu1 %4605, %v522_v21  }
 0x124   : > { %1015 = vperm.xlu0 %4619, %v5263_v27  }
 0x126   : > { %4606 = vset.pattern.permute.xlu1 %v4901_v0 }
 0x127   : > { %787 = vperm.xlu1 %4606, %v521_v17  }
 0x128   : > { %1027 = vperm.xlu0 %4619, %v5267_v28  }
 0x12b   : > { %4607 = vset.pattern.permute.xlu1 %v4903_v7 }
 0x12c   : > { %614 = vperm.xlu1 %4607, %v523_v22   ;;  %1035 = vperm.xlu0 %4619, %v5272_v29  }
 0x130   : > { %619 = vperm.xlu1 %4607, %v524_v26   ;;  %4627 = vset.pattern.permute.xlu0 %v4903_v7 }
 0x131   : > { %644 = vperm.xlu0 %4627, %v5263_v27  }
 0x134   : > { %4608 = vset.pattern.permute.xlu1 %v4901_v0 }
 0x135   : > { %799 = vperm.xlu1 %4608, %v524_v26   ;;  %669 = vperm.xlu0 %4627, %v5272_v29  }
 0x139   : > { %4609 = vset.pattern.permute.xlu1 %v4902_v4  ;;  %674 = vperm.xlu0 %4627, %v5281_v30  }
 0x13a   : > { %987 = vperm.xlu1 %4609, %v522_v21  }
 0x13b   : > { %v740_v32 = vpop.permute.xlu1 %739  ;;  %v748_v33 = vpop.permute.xlu0 %747 }
 0x13c   : > { %v870_v56 = vmul.f32 %v5316_v50, %v740_v32  ;;  %v872_v11 = vmul.f32 %v5316_v50, %v748_v33 }
 0x13d   : > { %684 = vperm.xlu0 %4627, %v5286_v31  }
 0x13e   : > { %991 = vperm.xlu1 %4609, %v523_v22  }
 0x13f   : > { %v744_v34 = vpop.permute.xlu1 %743 }
 0x140   : > { %v940_v35 = vpop.permute.xlu0 %939  ;;  %v871_v63 = vmul.f32 %v5316_v50, %v744_v34 }
 0x141   : > { %4628 = vset.pattern.permute.xlu0 %v4901_v0  ;;  %v1067_v2 = vmul.f32 %v5323_v53, %v940_v35 }
 0x142   : > { %4610 = vset.pattern.permute.xlu1 %v4903_v7  ;;  %843 = vperm.xlu0 %4628, %v5281_v30  }
 0x143   : > { %624 = vperm.xlu1 %4610, %v525_v36  }
 0x144   : > { %v560_v39 = vpop.permute.xlu1 %559  ;;  %v5296_v40 = vpop.permute.xlu0 %951 }
 0x145   : > { %v709_v3 = vmul.f32 %v5327_v54, %v560_v39 }
 0x146   : > { %855 = vperm.xlu0 %4628, %v5294_v38  }
 0x147   : > { %4611 = vset.pattern.permute.xlu1 %v4901_v0 }
 0x148   : > { %803 = vperm.xlu1 %4611, %v525_v36   ;;  %v5305_v43 = vpop.permute.xlu0 %963 }
 0x149   : > { %v752_v44 = vpop.permute.xlu1 %751 }
 0x14a   : > { %859 = vperm.xlu0 %4628, %v5303_v42   ;;  %v873_v60 = vmul.f32 %v5316_v50, %v752_v44 }
 0x14c   : > { %807 = vperm.xlu1 %4611, %v5229_v18   ;;  %v5312_v49 = vpop.permute.xlu0 %971  ;;  %v905_v12 = vadd.f32 %v873_v60, %v709_v3 }
 0x14e   : > { %v936_v51 = vpop.permute.xlu1 %935  ;;  %4633 = vset.pattern.permute.xlu0 %v4902_v4 }
 0x14f   : > { %1047 = vperm.xlu0 %4633, %v5286_v31   ;;  %v1066_v61 = vmul.f32 %v5323_v53, %v936_v51 }
 0x150   : > { %4613 = vset.pattern.permute.xlu1 %v4903_v7 }
 0x151   : > { %v545_v55 = vpop.permute.xlu0 %544  ;;  %639 = vperm.xlu1 %4613, %v528_v52  }
 0x152   : > { %v706_v57 = vmul.f32 %v5327_v54, %v545_v55  ;;  %v944_v58 = vpop.permute.xlu1 %943 }
 0x153   : > { %1059 = vperm.xlu0 %4633, %v5333_v59   ;;  %v1068_v21 = vmul.f32 %v5323_v53, %v944_v58 }
 0x154   : > { %v902_v62 = vadd.f32 %v870_v56, %v706_v57 }
 0x155   : > { %v550_v1 = vpop.permute.xlu0 %549  ;;  %4614 = vset.pattern.permute.xlu1 %v4901_v0 }
 0x156   : > { %v1098_v5 = vadd.f32 %v1066_v61, %v902_v62  ;;  %v707_v6 = vmul.f32 %v5327_v54, %v550_v1  ;;  %815 = vperm.xlu1 %4614, %v528_v52   ;;  %v948_v8 = vpop.permute.xlu1 %947  ;;  %v1070_v1 = vmul.f32 %v5323_v53, %v5296_v40 }
 0x157   : > { %v1069_v10 = vmul.f32 %v5323_v53, %v948_v8 }
 0x158   : > { %v903_v13 = vadd.f32 %v871_v63, %v707_v6  ;;  %v1137_v18 = vadd.f32 %v5343_v9, %v1098_v5  ;;  %v1073_v6 = vmul.f32 %v5323_v53, %v5305_v43 }
 0x159   : > { %v555_v14 = vpop.permute.xlu0 %554  ;;  %v1101_v16 = vadd.f32 %v1069_v10, %v905_v12 }
 0x15a   : > { %v1099_v15 = vadd.f32 %v1067_v2, %v903_v13  ;;  %v708_v17 = vmul.f32 %v5327_v54, %v555_v14  ;;  %4615 = vset.pattern.permute.xlu1 %v4902_v4  ;;  %v1169_v34 = vmax.f32 %v1137_v18, 0.0 }
 0x15b   : > { %999 = vperm.xlu1 %4615, %v525_v36   ;;  %v570_v20 = vpop.permute.xlu1 %569  ;;  %v1140_v32 = vadd.f32 %v5343_v9, %v1101_v16 }
 0x15c   : > { %v904_v22 = vadd.f32 %v872_v11, %v708_v17  ;;  %v1138_v23 = vadd.f32 %v5343_v9, %v1099_v15  ;;  %v711_v10 = vmul.f32 %v5327_v54, %v570_v20 }
 0x15d   : > { %v565_v26 = vpop.permute.xlu0 %564  ;;  %v1172_v46 = vmax.f32 %v1140_v32, 0.0 }
 0x15e   : > { %v1100_v33 = vadd.f32 %v1068_v21, %v904_v22  ;;  %v1170_v35 = vmax.f32 %v1138_v23, 0.0  ;;  %v710_v61 = vmul.f32 %v5327_v54, %v565_v26 }
 0x15f   : > { %1007 = vperm.xlu1 %4615, %v5234_v19  }
 0x160   : > { %v1139_v37 = vadd.f32 %v5343_v9, %v1100_v33  ;;  %v756_v39 = vpop.permute.xlu1 %755  ;;  %v1201_v44 = vpack.c.bf16 %v1170_v35, %v1169_v34 }
 0x161   : > { %v5355_v36 = vpop.permute.xlu0 %589  ;;  %v874_v62 = vmul.f32 %v5316_v50, %v756_v39 }
 0x162   : > { %v1171_v51 = vmax.f32 %v1139_v37, 0.0  ;;  %4361 = vmatprep.mubr.msk.bf16.mxu0 %vm1256_vm0, %v1201_v44 }
 0x163   : > { %1011 = vperm.xlu1 %4615, %v528_v52   ;;  %v906_v2 = vadd.f32 %v874_v62, %v710_v61 }
 0x164   : > { %v1202_v55 = vpack.c.bf16 %v1172_v46, %v1171_v51 }
 0x165   : > { %v575_v56 = vpop.permute.xlu1 %574  ;;  %v5358_v57 = vpop.permute.xlu0 %594  ;;  %v1102_v11 = vadd.f32 %v1070_v1, %v906_v2 }
 0x166   : > { %4362 = vmatmul.mubr.msk.bf16.vlgmr.msra.gmra.mrb[0].mxu0 %vm1256_vm0, %v1202_v55  ;;  %v712_v16 = vmul.f32 %v5327_v54, %v575_v56 }
 0x167   : > { %4616 = vset.pattern.permute.xlu1 %v4903_v7  ;;  %v1141_v43 = vadd.f32 %v5343_v9, %v1102_v11  ;;  %v536_v11 = vld [vmem:[%s5191_s14 + $0xd8] sm:$0xff] }
 0x168   : > { %649 = vperm.xlu1 %4616, %v5249_v24  }
 0x169   : > { %v580_v19 = vpop.permute.xlu1 %579  ;;  %v5363_v58 = vpop.permute.xlu0 %604  ;;  %v1173_v33 = vmax.f32 %v1141_v43, 0.0 }
 0x16a   : > { %v713_v5 = vmul.f32 %v5327_v54, %v580_v19  ;;  %v533_v19 = vld [vmem:[%s5191_s14 + $0xc0] sm:$0xff] }
 0x16c   : > { %4617 = vset.pattern.permute.xlu1 %v4901_v0 }
 0x16d   : > { %819 = vperm.xlu1 %4617, %v5263_v27   ;;  %v5367_v60 = vpop.permute.xlu0 %629 }
 0x16e   : > { %v768_v52 = vpop.permute.xlu1 %767 }
 0x16f   : > { %v877_v3 = vmul.f32 %v5316_v50, %v768_v52 }
 0x171   : > { %4618 = vset.pattern.permute.xlu1 %v4903_v7  ;;  %v5372_v63 = vpop.permute.xlu0 %634  ;;  %v909_v12 = vadd.f32 %v877_v3, %v713_v5 }
 0x172   : > { %654 = vperm.xlu1 %4618, %v5254_v25  }
 0x173   : > { %v956_v27 = vpop.permute.xlu1 %955  ;;  %v1105_v18 = vadd.f32 %v1073_v6, %v909_v12 }
 0x174   : > { %v1071_v40 = vmul.f32 %v5323_v53, %v956_v27  ;;  %v716_v27 = vmul.f32 %v5327_v54, %v5358_v57 }
 0x175   : > { %v1144_v34 = vadd.f32 %v5343_v9, %v1105_v18 }
 0x176   : > { %v760_v8 = vpop.permute.xlu0 %759  ;;  %659 = vperm.xlu1 %4618, %v5267_v28  }
 0x177   : > { %v875_v13 = vmul.f32 %v5316_v50, %v760_v8  ;;  %v960_v14 = vpop.permute.xlu1 %959  ;;  %v1176_v46 = vmax.f32 %v1144_v34, 0.0 }
 0x178   : > { %v1072_v26 = vmul.f32 %v5323_v53, %v960_v14 }
 0x179   : > { %v907_v15 = vadd.f32 %v875_v13, %v711_v10 }
 0x17a   : > { %v764_v17 = vpop.permute.xlu0 %763  ;;  %4620 = vset.pattern.permute.xlu1 %v4901_v0 }
 0x17b   : > { %v1103_v21 = vadd.f32 %v1071_v40, %v907_v15  ;;  %v876_v22 = vmul.f32 %v5316_v50, %v764_v17  ;;  %831 = vperm.xlu1 %4620, %v5267_v28  }
 0x17c   : > { %v585_v20 = vpop.permute.xlu1 %584 }
 0x17d   : > { %v1142_v23 = vadd.f32 %v5343_v9, %v1103_v21  ;;  %v908_v32 = vadd.f32 %v876_v22, %v712_v16 }
 0x17e   : > { %v780_v62 = vpop.permute.xlu0 %779 }
 0x17f   : > { %v1174_v35 = vmax.f32 %v1142_v23, 0.0  ;;  %v1104_v37 = vadd.f32 %v1072_v26, %v908_v32  ;;  %4621 = vset.pattern.permute.xlu1 %v4902_v4  ;;  %v880_v6 = vmul.f32 %v5316_v50, %v780_v62 }
 0x180   : > { %1019 = vperm.xlu1 %4621, %v5249_v24   ;;  %v715_v24 = vmul.f32 %v5327_v54, %v5355_v36  ;;  %v714_v36 = vmul.f32 %v5327_v54, %v585_v20 }
 0x181   : > { %v1143_v39 = vadd.f32 %v5343_v9, %v1104_v37  ;;  %v772_v44 = vpop.permute.xlu1 %771  ;;  %v1203_v28 = vpack.c.bf16 %v1174_v35, %v1173_v33  ;;  %v912_v14 = vadd.f32 %v880_v6, %v716_v27 }
 0x182   : > { %v878_v3 = vmul.f32 %v5316_v50, %v772_v44  ;;  %v792_v8 = vpop.permute.xlu0 %791 }
 0x183   : > { %v1175_v51 = vmax.f32 %v1143_v39, 0.0  ;;  %4365 = vmatprep.mubr.msk.bf16.mxu0 %vm1256_vm0, %v1203_v28  ;;  %v883_v27 = vmul.f32 %v5316_v50, %v792_v8 }
 0x184   : > { %1023 = vperm.xlu1 %4621, %v5254_v25   ;;  %v1075_v25 = vmul.f32 %v5323_v53, %v5312_v49  ;;  %v910_v12 = vadd.f32 %v878_v3, %v714_v36 }
 0x185   : > { %v776_v55 = vpop.permute.xlu1 %775  ;;  %v1204_v56 = vpack.c.bf16 %v1176_v46, %v1175_v51 }
 0x186   : > { %v879_v61 = vmul.f32 %v5316_v50, %v776_v55  ;;  %v796_v16 = vpop.permute.xlu0 %795 }
 0x187   : > { %4366 = vmatmul.mubr.msk.bf16.gmra.mrb[4].mxu0 %vm1256_vm0, %v1204_v56 }
 0x188   : > { %4622 = vset.pattern.permute.xlu1 %v4903_v7  ;;  %v911_v1 = vadd.f32 %v879_v61, %v715_v24  ;;  %v718_v24 = vmul.f32 %v5327_v54, %v5363_v58 }
 0x189   : > { %664 = vperm.xlu1 %4622, %v533_v19  }
 0x18a   : > { %v600_v52 = vpop.permute.xlu1 %599  ;;  %v1107_v5 = vadd.f32 %v1075_v25, %v911_v1  ;;  %v5424_v34 = vpop.permute.xlu0 %811 }
 0x18b   : > { %v717_v18 = vmul.f32 %v5327_v54, %v600_v52 }
 0x18c   : > { %v1146_v13 = vadd.f32 %v5343_v9, %v1107_v5 }
 0x18d   : > { %4623 = vset.pattern.permute.xlu1 %v4901_v0 }
 0x18e   : > { %835 = vperm.xlu1 %4623, %v533_v19   ;;  %v1178_v43 = vmax.f32 %v1146_v13, 0.0  ;;  %v5429_v51 = vpop.permute.xlu0 %823 }
 0x18f   : > { %v784_v2 = vpop.permute.xlu1 %783 }
 0x190   : > { %v881_v57 = vmul.f32 %v5316_v50, %v784_v2 }
 0x192   : > { %839 = vperm.xlu1 %4623, %v5272_v29   ;;  %v913_v23 = vadd.f32 %v881_v57, %v717_v18  ;;  %v5433_v56 = vpop.permute.xlu0 %827 }
 0x194   : > { %v968_v10 = vpop.permute.xlu1 %967 }
 0x195   : > { %v1074_v49 = vmul.f32 %v5323_v53, %v968_v10 }
 0x196   : > { %4624 = vset.pattern.permute.xlu1 %v4903_v7 }
 0x197   : > { %v1106_v29 = vadd.f32 %v1074_v49, %v910_v12  ;;  %679 = vperm.xlu1 %4624, %v536_v11   ;;  %v984_v62 = vpop.permute.xlu0 %983 }
 0x198   : > { %v976_v40 = vpop.permute.xlu1 %975  ;;  %v1078_v25 = vmul.f32 %v5323_v53, %v984_v62 }
 0x199   : > { %v1145_v15 = vadd.f32 %v5343_v9, %v1106_v29  ;;  %v1076_v17 = vmul.f32 %v5323_v53, %v976_v40 }
 0x19b   : > { %v1177_v21 = vmax.f32 %v1145_v15, 0.0  ;;  %v1108_v22 = vadd.f32 %v1076_v17, %v912_v14  ;;  %4625 = vset.pattern.permute.xlu1 %v4901_v0  ;;  %v996_v3 = vpop.permute.xlu0 %995 }
 0x19c   : > { %847 = vperm.xlu1 %4625, %v536_v11   ;;  %v980_v20 = vpop.permute.xlu1 %979  ;;  %v1081_v10 = vmul.f32 %v5323_v53, %v996_v3 }
 0x19d   : > { %v1205_v26 = vpack.c.bf16 %v1178_v43, %v1177_v21  ;;  %v1077_v32 = vmul.f32 %v5323_v53, %v980_v20  ;;  %v1147_v33 = vadd.f32 %v5343_v9, %v1108_v22 }
 0x19f   : > { %v1109_v35 = vadd.f32 %v1077_v32, %v913_v23  ;;  %4369 = vmatprep.mubr.msk.bf16.mxu0 %vm1256_vm0, %v1205_v26  ;;  %v1179_v44 = vmax.f32 %v1147_v33, 0.0 }
 0x1a0   : > { %4626 = vset.pattern.permute.xlu1 %v4902_v4 }
 0x1a1   : > { %v1148_v37 = vadd.f32 %v5343_v9, %v1109_v35  ;;  %1031 = vperm.xlu1 %4626, %v533_v19   ;;  %v610_v39 = vpop.permute.xlu1 %609 }
 0x1a2   : > { %v719_v36 = vmul.f32 %v5327_v54, %v610_v39 }
 0x1a3   : > { %v1180_v28 = vmax.f32 %v1148_v37, 0.0 }
 0x1a4   : > { %v915_v12 = vadd.f32 %v883_v27, %v719_v36 }
 0x1a5   : > { %v1206_v46 = vpack.c.bf16 %v1180_v28, %v1179_v44  ;;  %1039 = vperm.xlu1 %4626, %v5281_v30   ;;  %v1004_v44 = vpop.permute.xlu0 %1003 }
 0x1a6   : > { %v788_v55 = vpop.permute.xlu1 %787 }
 0x1a7   : > { %4370 = vmatmul.mubr.msk.bf16.gmra.mrb[8].mxu0 %vm1256_vm0, %v1206_v46  ;;  %v882_v61 = vmul.f32 %v5316_v50, %v788_v55 }
 0x1a9   : > { %1043 = vperm.xlu1 %4626, %v536_v11   ;;  %v914_v30 = vadd.f32 %v882_v61, %v718_v24  ;;  %v884_v11 = vmul.f32 %v5316_v50, %v796_v16  ;;  %v724_v24 = vmul.f32 %v5327_v54, %v5372_v63  ;;  %v888_v61 = vmul.f32 %v5316_v50, %v5424_v34 }
 0x1ab   : > { %v615_v52 = vpop.permute.xlu1 %614  ;;  %v1110_v5 = vadd.f32 %v1078_v25, %v914_v30 }
 0x1ac   : > { %v720_v49 = vmul.f32 %v5327_v54, %v615_v52 }
 0x1ad   : > { %4629 = vset.pattern.permute.xlu1 %v4903_v7  ;;  %v1149_v13 = vadd.f32 %v5343_v9, %v1110_v5  ;;  %v1016_v5 = vpop.permute.xlu0 %1015 }
 0x1ae   : > { %689 = vperm.xlu1 %4629, %v5294_v38   ;;  %v916_v57 = vadd.f32 %v884_v11, %v720_v49 }
 0x1af   : > { %v620_v19 = vpop.permute.xlu1 %619  ;;  %v1181_v43 = vmax.f32 %v1149_v13, 0.0 }
 0x1b0   : > { %v721_v58 = vmul.f32 %v5327_v54, %v620_v19 }
 0x1b2   : > { %4630 = vset.pattern.permute.xlu1 %v4901_v0 }
 0x1b3   : > { %851 = vperm.xlu1 %4630, %v5286_v31  }
 0x1b4   : > { %v800_v1 = vpop.permute.xlu1 %799 }
 0x1b5   : > { %v885_v2 = vmul.f32 %v5316_v50, %v800_v1 }
 0x1b7   : > { %4631 = vset.pattern.permute.xlu1 %v4903_v7  ;;  %v917_v6 = vadd.f32 %v885_v2, %v721_v58  ;;  %v920_v2 = vadd.f32 %v888_v61, %v724_v24 }
 0x1b8   : > { %694 = vperm.xlu1 %4631, %v5303_v42  }
 0x1b9   : > { %v988_v31 = vpop.permute.xlu1 %987  ;;  %v1113_v14 = vadd.f32 %v1081_v10, %v917_v6 }
 0x1ba   : > { %v1079_v8 = vmul.f32 %v5323_v53, %v988_v31 }
 0x1bb   : > { %v1152_v16 = vadd.f32 %v5343_v9, %v1113_v14  ;;  %v1028_v14 = vpop.permute.xlu0 %1027 }
 0x1bc   : > { %v1111_v29 = vadd.f32 %v1079_v8, %v915_v12  ;;  %699 = vperm.xlu1 %4631, %v5333_v59  }
 0x1bd   : > { %v992_v40 = vpop.permute.xlu1 %991  ;;  %v1184_v26 = vmax.f32 %v1152_v16, 0.0 }
 0x1be   : > { %v1150_v15 = vadd.f32 %v5343_v9, %v1111_v29  ;;  %v1080_v17 = vmul.f32 %v5323_v53, %v992_v40 }
 0x1bf   : > { %v1036_v16 = vpop.permute.xlu0 %1035 }
 0x1c0   : > { %v1182_v18 = vmax.f32 %v1150_v15, 0.0  ;;  %v1112_v21 = vadd.f32 %v1080_v17, %v916_v57  ;;  %4632 = vset.pattern.permute.xlu1 %v4901_v0  ;;  %v4639_v0 = vld [vmem:[%s6199_s5] sm:$0xff]   ;;  %v4640_v17 = vld [vmem:[%s6199_s5 + $0x8] sm:$0xff]  }
 0x1c1   : > { %863 = vperm.xlu1 %4632, %v5333_v59   ;;  %4393 = vmatprep.subr.bf16.mxu1 %v4639_v0 }
 0x1c2   : > { %v1207_v22 = vpack.c.bf16 %v1182_v18, %v1181_v43  ;;  %v1151_v20 = vadd.f32 %v5343_v9, %v1112_v21  ;;  %v625_v23 = vpop.permute.xlu1 %624  ;;  %v4641_v18 = vld [vmem:[%s6199_s5 + $0x10] sm:$0xff]  }
 0x1c4   : > { %v1183_v32 = vmax.f32 %v1151_v20, 0.0  ;;  %4373 = vmatprep.mubr.msk.bf16.mxu0 %vm1256_vm0, %v1207_v22  ;;  %v645_v22 = vpop.permute.xlu0 %644  ;;  %v4642_v20 = vld [vmem:[%s6199_s5 + $0x18] sm:$0xff]  }
 0x1c5   : > { %4634 = vset.pattern.permute.xlu1 %v4902_v4  ;;  %v723_v4 = vmul.f32 %v5327_v54, %v5367_v60 }
 0x1c6   : > { %v1208_v33 = vpack.c.bf16 %v1184_v26, %v1183_v32  ;;  %1051 = vperm.xlu1 %4634, %v5294_v38   ;;  %v1083_v38 = vmul.f32 %v5323_v53, %v1004_v44  ;;  %v726_v26 = vmul.f32 %v5327_v54, %v645_v22  ;;  %v891_v44 = vmul.f32 %v5316_v50, %v5429_v51 }
 0x1c7   : > { %v804_v35 = vpop.permute.xlu1 %803 }
 0x1c8   : > { %4374 = vmatmul.mubr.msk.bf16.gmra.mrb[12].mxu0 %vm1256_vm0, %v1208_v33  ;;  %v886_v55 = vmul.f32 %v5316_v50, %v804_v35  ;;  %v1086_v33 = vmul.f32 %v5323_v53, %v1016_v5 }
 0x1ca   : > { %1055 = vperm.xlu1 %4634, %v5303_v42   ;;  %v722_v42 = vmul.f32 %v5327_v54, %v625_v23 }
 0x1cb   : > { %v808_v59 = vpop.permute.xlu1 %807 }
 0x1cc   : > { %v887_v39 = vmul.f32 %v5316_v50, %v808_v59  ;;  %v918_v62 = vadd.f32 %v886_v55, %v722_v42 }
 0x1ce   : > { %v919_v28 = vadd.f32 %v887_v39, %v723_v4  ;;  %v1089_v4 = vmul.f32 %v5323_v53, %v1028_v14 }
 0x1d0   : > { %v640_v37 = vpop.permute.xlu1 %639  ;;  %v1115_v52 = vadd.f32 %v1083_v38, %v919_v28 }
 0x1d1   : > { %v725_v58 = vmul.f32 %v5327_v54, %v640_v37 }
 0x1d2   : > { %v1154_v25 = vadd.f32 %v5343_v9, %v1115_v52 }
 0x1d4   : > { %v1186_v34 = vmax.f32 %v1154_v25, 0.0 }
 0x1d5   : > { %v816_v46 = vpop.permute.xlu1 %815 }
 0x1d6   : > { %v889_v3 = vmul.f32 %v5316_v50, %v816_v46 }
 0x1d8   : > { %v921_v31 = vadd.f32 %v889_v3, %v725_v58 }
 0x1da   : > { %v1000_v19 = vpop.permute.xlu1 %999 }
 0x1db   : > { %v1082_v30 = vmul.f32 %v5323_v53, %v1000_v19  ;;  %v892_v19 = vmul.f32 %v5316_v50, %v5433_v56 }
 0x1dd   : > { %v1114_v60 = vadd.f32 %v1082_v30, %v918_v62 }
 0x1de   : > { %v1008_v1 = vpop.permute.xlu1 %1007 }
 0x1df   : > { %v1084_v27 = vmul.f32 %v5323_v53, %v1008_v1  ;;  %v1153_v36 = vadd.f32 %v5343_v9, %v1114_v60 }
 0x1e1   : > { %v1116_v63 = vadd.f32 %v1084_v27, %v920_v2  ;;  %v1185_v6 = vmax.f32 %v1153_v36, 0.0 }
 0x1e2   : > { %v1012_v10 = vpop.permute.xlu1 %1011 }
 0x1e3   : > { %v1085_v11 = vmul.f32 %v5323_v53, %v1012_v10  ;;  %v1209_v12 = vpack.c.bf16 %v1186_v34, %v1185_v6  ;;  %v1155_v49 = vadd.f32 %v5343_v9, %v1116_v63  ;;  %v670_v34 = vpop.permute.xlu0 %669 }
 0x1e5   : > { %v1117_v8 = vadd.f32 %v1085_v11, %v921_v31  ;;  %4377 = vmatprep.mubr.msk.bf16.mxu1 %vm1256_vm0, %v1209_v12  ;;  %v1187_v40 = vmax.f32 %v1155_v49, 0.0 }
 0x1e7   : > { %v1156_v13 = vadd.f32 %v5343_v9, %v1117_v8  ;;  %v650_v29 = vpop.permute.xlu1 %649  ;;  %v675_v31 = vpop.permute.xlu0 %674  ;;  %v731_v8 = vmul.f32 %v5327_v54, %v670_v34 }
 0x1e8   : > { %v727_v37 = vmul.f32 %v5327_v54, %v650_v29 }
 0x1e9   : > { %v1188_v57 = vmax.f32 %v1156_v13, 0.0 }
 0x1ea   : > { %v923_v55 = vadd.f32 %v891_v44, %v727_v37 }
 0x1eb   : > { %v1210_v15 = vpack.c.bf16 %v1188_v57, %v1187_v40  ;;  %v685_v49 = vpop.permute.xlu0 %684  ;;  %v1091_v57 = vmul.f32 %v5323_v53, %v1036_v16 }
 0x1ec   : > { %v820_v43 = vpop.permute.xlu1 %819 }
 0x1ed   : > { %4378 = vmatmul.mubr.msk.bf16.vlgmr.msra.gmra.mrb[0].mxu1 %vm1256_vm0, %v1210_v15  ;;  %v890_v32 = vmul.f32 %v5316_v50, %v820_v43 }
 0x1ee   : > { %4394 = vmatpush3.bf16.msra.mxu1 %v4639_v0 }
 0x1ef   : > { %4395 = vmatprep.subr.bf16.mxu1 %v4640_v17  ;;  %v922_v35 = vadd.f32 %v890_v32, %v726_v26  ;;  %v844_v40 = vpop.permute.xlu0 %843 }
 0x1f1   : > { %v655_v21 = vpop.permute.xlu1 %654  ;;  %v1118_v28 = vadd.f32 %v1086_v33, %v922_v35 }
 0x1f2   : > { %4396 = vmatpush3.bf16.msra.mxu1 %v4640_v17  ;;  %v728_v42 = vmul.f32 %v5327_v54, %v655_v21  ;;  %v896_v21 = vmul.f32 %v5316_v50, %v844_v40 }
 0x1f3   : > { %4397 = vmatprep.subr.bf16.mxu1 %v4641_v18  ;;  %v1157_v24 = vadd.f32 %v5343_v9, %v1118_v28 }
 0x1f4   : > { %v924_v60 = vadd.f32 %v892_v19, %v728_v42 }
 0x1f5   : > { %v660_v23 = vpop.permute.xlu1 %659  ;;  %v1189_v1 = vmax.f32 %v1157_v24, 0.0 }
 0x1f6   : > { %4398 = vmatpush3.bf16.msra.mxu1 %v4641_v18  ;;  %v729_v39 = vmul.f32 %v5327_v54, %v660_v23  ;;  %v732_v18 = vmul.f32 %v5327_v54, %v675_v31 }
 0x1f7   : > { %4399 = vmatprep.subr.bf16.mxu1 %v4642_v20 }
 0x1f8   : > { %v928_v33 = vadd.f32 %v896_v21, %v732_v18 }
 0x1fa   : > { %v832_v0 = vpop.permute.xlu1 %831  ;;  %4400 = vmatpush3.bf16.msra.mxu1 %v4642_v20 }
 0x1fb   : > { %v893_v59 = vmul.f32 %v5316_v50, %v832_v0 }
 0x1fd   : > { %v925_v38 = vadd.f32 %v893_v59, %v729_v39 }
 0x1ff   : > { %v1020_v46 = vpop.permute.xlu1 %1019  ;;  %v1121_v61 = vadd.f32 %v1089_v4, %v925_v38 }
 0x200   : > { %v1087_v52 = vmul.f32 %v5323_v53, %v1020_v46 }
 0x201   : > { %v1160_v2 = vadd.f32 %v5343_v9, %v1121_v61 }
 0x202   : > { %v1119_v62 = vadd.f32 %v1087_v52, %v923_v55 }
 0x203   : > { %v1024_v30 = vpop.permute.xlu1 %1023  ;;  %v1192_v56 = vmax.f32 %v1160_v2, 0.0  ;;  %v5537_v2 = vld [vmem:[#allocation9] ss:$0 sm:$0xff] }
 0x204   : > { %v1158_v51 = vadd.f32 %v5343_v9, %v1119_v62  ;;  %v1088_v25 = vmul.f32 %v5323_v53, %v1024_v30 }
 0x206   : > { %v1190_v3 = vmax.f32 %v1158_v51, 0.0  ;;  %v1120_v27 = vadd.f32 %v1088_v25, %v924_v60  ;;  %v856_v60 = vpop.permute.xlu0 %855 }
 0x207   : > { %v899_v21 = vmul.f32 %v5316_v50, %v856_v60 }
 0x208   : > { %v1211_v36 = vpack.c.bf16 %v1190_v3, %v1189_v1  ;;  %v1159_v58 = vadd.f32 %v5343_v9, %v1120_v27  ;;  %v665_v63 = vpop.permute.xlu1 %664 }
 0x209   : > { %v730_v17 = vmul.f32 %v5327_v54, %v665_v63 }
 0x20a   : > { %v1191_v5 = vmax.f32 %v1159_v58, 0.0  ;;  %4381 = vmatprep.mubr.msk.bf16.mxu1 %vm1256_vm0, %v1211_v36  ;;  %v860_v25 = vpop.permute.xlu0 %859 }
 0x20c   : > { %v1212_v6 = vpack.c.bf16 %v1192_v56, %v1191_v5 }
 0x20d   : > { %v836_v10 = vpop.permute.xlu1 %835 }
 0x20e   : > { %4382 = vmatmul.mubr.msk.bf16.gmra.mrb[4].mxu1 %vm1256_vm0, %v1212_v6  ;;  %v894_v15 = vmul.f32 %v5316_v50, %v836_v10  ;;  %v1048_v10 = vpop.permute.xlu0 %1047 }
 0x20f   : > { %v1094_v40 = vmul.f32 %v5323_v53, %v1048_v10 }
 0x210   : > { %v926_v20 = vadd.f32 %v894_v15, %v730_v17 }
 0x211   : > { %v840_v11 = vpop.permute.xlu1 %839 }
 0x212   : > { %v895_v13 = vmul.f32 %v5316_v50, %v840_v11  ;;  %v1060_v18 = vpop.permute.xlu0 %1059 }
 0x214   : > { %v927_v14 = vadd.f32 %v895_v13, %v731_v8 }
 0x216   : > { %v680_v12 = vpop.permute.xlu1 %679  ;;  %v1123_v43 = vadd.f32 %v1091_v57, %v927_v14 }
 0x217   : > { %v733_v39 = vmul.f32 %v5327_v54, %v680_v12  ;;  %v734_v12 = vmul.f32 %v5327_v54, %v685_v49 }
 0x218   : > { %v1162_v26 = vadd.f32 %v5343_v9, %v1123_v43 }
 0x21a   : > { %v1194_v37 = vmax.f32 %v1162_v26, 0.0  ;;  %v1097_v26 = vmul.f32 %v5323_v53, %v1060_v18 }
 0x21b   : > { %v848_v29 = vpop.permute.xlu1 %847 }
 0x21c   : > { %v897_v16 = vmul.f32 %v5316_v50, %v848_v29 }
 0x21e   : > { %v929_v38 = vadd.f32 %v897_v16, %v733_v39 }
 0x220   : > { %v1032_v22 = vpop.permute.xlu1 %1031 }
 0x221   : > { %v1090_v23 = vmul.f32 %v5323_v53, %v1032_v22 }
 0x223   : > { %v1122_v32 = vadd.f32 %v1090_v23, %v926_v20 }
 0x224   : > { %v1040_v35 = vpop.permute.xlu1 %1039 }
 0x225   : > { %v1161_v0 = vadd.f32 %v5343_v9, %v1122_v32  ;;  %v1092_v59 = vmul.f32 %v5323_v53, %v1040_v35  ;;  %v900_v35 = vmul.f32 %v5316_v50, %v860_v25 }
 0x227   : > { %v1193_v44 = vmax.f32 %v1161_v0, 0.0  ;;  %v1124_v4 = vadd.f32 %v1092_v59, %v928_v33 }
 0x228   : > { %v1044_v28 = vpop.permute.xlu1 %1043 }
 0x229   : > { %v1213_v46 = vpack.c.bf16 %v1194_v37, %v1193_v44  ;;  %v1093_v55 = vmul.f32 %v5323_v53, %v1044_v28  ;;  %v1163_v42 = vadd.f32 %v5343_v9, %v1124_v4 }
 0x22b   : > { %v1125_v52 = vadd.f32 %v1093_v55, %v929_v38  ;;  %4385 = vmatprep.mubr.msk.bf16.mxu1 %vm1256_vm0, %v1213_v46  ;;  %v1195_v61 = vmax.f32 %v1163_v42, 0.0 }
 0x22d   : > { %v1164_v19 = vadd.f32 %v5343_v9, %v1125_v52  ;;  %v690_v24 = vpop.permute.xlu1 %689 }
 0x22e   : > { %v735_v22 = vmul.f32 %v5327_v54, %v690_v24 }
 0x22f   : > { %v1196_v62 = vmax.f32 %v1164_v19, 0.0 }
 0x230   : > { %v931_v33 = vadd.f32 %v899_v21, %v735_v22 }
 0x231   : > { %v1214_v30 = vpack.c.bf16 %v1196_v62, %v1195_v61 }
 0x232   : > { %v852_v51 = vpop.permute.xlu1 %851 }
 0x233   : > { %4386 = vmatmul.mubr.msk.bf16.gmra.mrb[8].mxu1 %vm1256_vm0, %v1214_v30  ;;  %v898_v5 = vmul.f32 %v5316_v50, %v852_v51 }
 0x235   : > { %v930_v29 = vadd.f32 %v898_v5, %v734_v12 }
 0x237   : > { %v695_v1 = vpop.permute.xlu1 %694  ;;  %v1126_v49 = vadd.f32 %v1094_v40, %v930_v29 }
 0x238   : > { %v736_v16 = vmul.f32 %v5327_v54, %v695_v1 }
 0x239   : > { %v4363_v3 = vpop.f32.mrb[0].mxu0  ;;  %v1165_v59 = vadd.f32 %v5343_v9, %v1126_v49 }
 0x23a   : > { %v1348_v27 = vadd.f32 %v4363_v3, %v5537_v2  ;;  %v1339_v36 = vpop.f32.mrb[1].mxu0  ;;  %v932_v4 = vadd.f32 %v900_v35, %v736_v16 }
 0x23b   : > { %v1340_v58 = vadd.f32 %v5537_v2, %v1339_v36  ;;  %v4364_v63 = vpop.f32.mrb[2].mxu0  ;;  %v700_v56 = vpop.permute.xlu1 %699  ;;  %v1197_v46 = vmax.f32 %v1165_v59, 0.0  ;;  %v4643_v59 = vld [vmem:[%s6201_s7] sm:$0xff]  }
 0x23c   : > { %v1351_v6 = vadd.f32 %v4364_v63, %v5537_v2  ;;  %v1342_v34 = vpop.f32.mrb[3].mxu0  ;;  %v1468_v8 = vmax.f32 %v1348_v27, 0.0  ;;  %v737_v20 = vmul.f32 %v5327_v54, %v700_v56  ;;  %4433 = vmatprep.subr.bf16.mxu0 %v4643_v59 }
 0x23d   : > { %v1466_v31 = vmax.f32 %v1340_v58, 0.0  ;;  %v1343_v11 = vadd.f32 %v5537_v2, %v1342_v34  ;;  %4434 = vmatpush3.bf16.msra.mxu0 %v4643_v59  ;;  %v5615_v59 = vld [vmem:[#allocation10] ss:$0 sm:$0xff] }
 0x23e   : > { %v1469_v13 = vmax.f32 %v1351_v6, 0.0 }
 0x23f   : > { %v1467_v14 = vmax.f32 %v1343_v11, 0.0  ;;  %1794 = vxpose.xlu1.b32.start [1/16] (narrow) %v1466_v31, 64 }
 0x240   : > { %v1499_v57 = vpack.c.bf16 %v1469_v13, %v1468_v8  ;;  %v864_v15 = vpop.permute.xlu1 %863 }
 0x241   : > { %v1498_v17 = vpack.c.bf16 %v1467_v14, %v1466_v31  ;;  %v901_v43 = vmul.f32 %v5316_v50, %v864_v15 }
 0x243   : > { %1795 = vxpose.xlu1.b32.cont [2/16] (narrow) %v1467_v14, 64  ;;  %v933_v23 = vadd.f32 %v901_v43, %v737_v20 }
 0x245   : > { %v1052_v32 = vpop.permute.xlu1 %1051  ;;  %v1129_v37 = vadd.f32 %v1097_v26, %v933_v23 }
 0x246   : > { %v1095_v0 = vmul.f32 %v5323_v53, %v1052_v32 }
 0x247   : > { %1796 = vxpose.xlu1.b32.cont [3/16] (narrow) %v1468_v8, 64  ;;  %v1168_v55 = vadd.f32 %v5343_v9, %v1129_v37  ;;  %v4644_v37 = vld [vmem:[%s6201_s7 + $0x8] sm:$0xff]  }
 0x248   : > { %v1127_v39 = vadd.f32 %v1095_v0, %v931_v33  ;;  %4435 = vmatprep.subr.bf16.mxu0 %v4644_v37 }
 0x249   : > { %v1056_v44 = vpop.permute.xlu1 %1055  ;;  %v1200_v19 = vmax.f32 %v1168_v55, 0.0  ;;  %4436 = vmatpush3.bf16.msra.mxu0 %v4644_v37 }
 0x24a   : > { %v1166_v28 = vadd.f32 %v5343_v9, %v1127_v39  ;;  %v1096_v38 = vmul.f32 %v5323_v53, %v1056_v44  ;;  %v4645_v39 = vld [vmem:[%s6201_s7 + $0x10] sm:$0xff]   ;;  %v4646_v44 = vld [vmem:[%s6201_s7 + $0x18] sm:$0xff]  }
 0x24b   : > { %1797 = vxpose.xlu1.b32.cont [4/16] (narrow) %v1469_v13, 64  ;;  %4437 = vmatprep.subr.bf16.mxu0 %v4645_v39 }
 0x24c   : > { %v1198_v50 = vmax.f32 %v1166_v28, 0.0  ;;  %v1128_v42 = vadd.f32 %v1096_v38, %v932_v4 }
 0x24d   : > { %4438 = vmatpush3.bf16.msra.mxu0 %v4645_v39 }
 0x24e   : > { %v1215_v54 = vpack.c.bf16 %v1198_v50, %v1197_v46  ;;  %v1167_v52 = vadd.f32 %v5343_v9, %v1128_v42  ;;  %4439 = vmatprep.subr.bf16.mxu0 %v4646_v44 }
 0x250   : > { %v1199_v24 = vmax.f32 %v1167_v52, 0.0  ;;  %4389 = vmatprep.mubr.msk.bf16.mxu1 %vm1256_vm0, %v1215_v54 }
 0x251   : > { %4440 = vmatpush3.bf16.msra.mxu0 %v4646_v44 }
 0x252   : > { %v1216_v61 = vpack.c.bf16 %v1200_v19, %v1199_v24 }
 0x254   : > { %4390 = vmatmul.mubr.msk.bf16.gmra.mrb[12].mxu1 %vm1256_vm0, %v1216_v61 }
 0x255   : > { %4401 = vmatprep.mubr.msk.bf16.mxu1 %vm1256_vm0, %v1498_v17 }
 0x25a   : > { %v4367_v62 = vpop.f32.mrb[4].mxu0 }
 0x25b   : > { %v1364_v53 = vadd.f32 %v4367_v62, %v5537_v2  ;;  %v1355_v30 = vpop.f32.mrb[5].mxu0 }
 0x25c   : > { %v1356_v60 = vadd.f32 %v5537_v2, %v1355_v30  ;;  %v4368_v51 = vpop.f32.mrb[6].mxu0  ;;  %4402 = vmatmul.mubr.msk.bf16.vlgmr.msra.gmra.mrb[16].mxu1 %vm1256_vm0, %v1499_v57 }
 0x25d   : > { %v1367_v9 = vadd.f32 %v4368_v51, %v5537_v2  ;;  %v1358_v25 = vpop.f32.mrb[7].mxu0  ;;  %v1472_v27 = vmax.f32 %v1364_v53, 0.0 }
 0x25e   : > { %v1470_v1 = vmax.f32 %v1356_v60, 0.0  ;;  %v1359_v3 = vadd.f32 %v5537_v2, %v1358_v25 }
 0x25f   : > { %v1473_v36 = vmax.f32 %v1367_v9, 0.0 }
 0x260   : > { %v1471_v58 = vmax.f32 %v1359_v3, 0.0  ;;  %1798 = vxpose.xlu1.b32.cont [5/16] (narrow) %v1470_v1, 64 }
 0x261   : > { %v1501_v63 = vpack.c.bf16 %v1473_v36, %v1472_v27 }
 0x262   : > { %v1500_v56 = vpack.c.bf16 %v1471_v58, %v1470_v1 }
 0x264   : > { %1799 = vxpose.xlu1.b32.cont [6/16] (narrow) %v1471_v58, 64  ;;  %4405 = vmatprep.mubr.msk.bf16.mxu1 %vm1256_vm0, %v1500_v56 }
 0x265   : > { %4406 = vmatmul.mubr.msk.bf16.gmra.mrb[20].mxu1 %vm1256_vm0, %v1501_v63 }
 0x268   : > { %1800 = vxpose.xlu1.b32.cont [7/16] (narrow) %v1472_v27, 64 }
 0x26c   : > { %1801 = vxpose.xlu1.b32.cont [8/16] (narrow) %v1473_v36, 64 }
 0x27a   : > { %v4371_v5 = vpop.f32.mrb[8].mxu0 }
 0x27b   : > { %v1380_v6 = vadd.f32 %v4371_v5, %v5537_v2  ;;  %v1371_v34 = vpop.f32.mrb[9].mxu0 }
 0x27c   : > { %v1372_v10 = vadd.f32 %v5537_v2, %v1371_v34  ;;  %v4372_v31 = vpop.f32.mrb[10].mxu0 }
 0x27d   : > { %v1383_v11 = vadd.f32 %v4372_v31, %v5537_v2  ;;  %v1374_v12 = vpop.f32.mrb[11].mxu0  ;;  %v1476_v14 = vmax.f32 %v1380_v6, 0.0 }
 0x27e   : > { %v1474_v8 = vmax.f32 %v1372_v10, 0.0  ;;  %v1375_v13 = vadd.f32 %v5537_v2, %v1374_v12 }
 0x27f   : > { %v1477_v29 = vmax.f32 %v1383_v11, 0.0 }
 0x280   : > { %v1475_v40 = vmax.f32 %v1375_v13, 0.0  ;;  %1802 = vxpose.xlu1.b32.cont [9/16] (narrow) %v1474_v8, 64 }
 0x281   : > { %v1503_v57 = vpack.c.bf16 %v1477_v29, %v1476_v14 }
 0x282   : > { %v1502_v15 = vpack.c.bf16 %v1475_v40, %v1474_v8 }
 0x284   : > { %1803 = vxpose.xlu1.b32.cont [10/16] (narrow) %v1475_v40, 64  ;;  %4409 = vmatprep.mubr.msk.bf16.mxu1 %vm1256_vm0, %v1502_v15 }
 0x285   : > { %4410 = vmatmul.mubr.msk.bf16.gmra.mrb[24].mxu1 %vm1256_vm0, %v1503_v57 }
 0x288   : > { %1804 = vxpose.xlu1.b32.cont [11/16] (narrow) %v1476_v14, 64 }
 0x28c   : > { %1805 = vxpose.xlu1.b32.cont [12/16] (narrow) %v1477_v29, 64 }
 0x29b   : > { %v4375_v17 = vpop.f32.mrb[12].mxu0 }
 0x29c   : > { %v1396_v43 = vadd.f32 %v4375_v17, %v5537_v2  ;;  %v1387_v18 = vpop.f32.mrb[13].mxu0 }
 0x29d   : > { %v1388_v21 = vadd.f32 %v5537_v2, %v1387_v18  ;;  %v4376_v22 = vpop.f32.mrb[14].mxu0 }
 0x29e   : > { %v1399_v20 = vadd.f32 %v4376_v22, %v5537_v2  ;;  %v1390_v49 = vpop.f32.mrb[15].mxu0  ;;  %v1480_v32 = vmax.f32 %v1396_v43, 0.0 }
 0x29f   : > { %v1478_v23 = vmax.f32 %v1388_v21, 0.0  ;;  %v1391_v26 = vadd.f32 %v5537_v2, %v1390_v49 }
 0x2a0   : > { %v1481_v33 = vmax.f32 %v1399_v20, 0.0 }
 0x2a1   : > { %v1479_v35 = vmax.f32 %v1391_v26, 0.0  ;;  %1806 = vxpose.xlu1.b32.cont [13/16] (narrow) %v1478_v23, 64 }
 0x2a2   : > { %v1505_v16 = vpack.c.bf16 %v1481_v33, %v1480_v32 }
 0x2a3   : > { %v1504_v0 = vpack.c.bf16 %v1479_v35, %v1478_v23 }
 0x2a5   : > { %1807 = vxpose.xlu1.b32.cont [14/16] (narrow) %v1479_v35, 64  ;;  %4413 = vmatprep.mubr.msk.bf16.mxu1 %vm1256_vm0, %v1504_v0 }
 0x2a6   : > { %4414 = vmatmul.mubr.msk.bf16.gmra.mrb[28].mxu1 %vm1256_vm0, %v1505_v16 }
 0x2a9   : > { %1808 = vxpose.xlu1.b32.cont [15/16] (narrow) %v1480_v32, 64 }
 0x2ad   : > { %1809 = vxpose.xlu1.b32.end [16/16] (narrow) %v1481_v33, 64 }
 0x2c0   : > { %v4379_v4 = vpop.f32.mrb[0].mxu1 }
 0x2c1   : > { %v1412_v28 = vadd.f32 %v4379_v4, %v5537_v2  ;;  %v1403_v38 = vpop.f32.mrb[1].mxu1 }
 0x2c2   : > { %v1404_v46 = vadd.f32 %v5537_v2, %v1403_v38  ;;  %v4380_v55 = vpop.f32.mrb[2].mxu1 }
 0x2c3   : > { %v1415_v50 = vadd.f32 %v4380_v55, %v5537_v2  ;;  %v1406_v42 = vpop.f32.mrb[3].mxu1  ;;  %v1484_v19 = vmax.f32 %v1412_v28, 0.0 }
 0x2c4   : > { %v1482_v54 = vmax.f32 %v1404_v46, 0.0  ;;  %v1407_v52 = vadd.f32 %v5537_v2, %v1406_v42 }
 0x2c5   : > { %v1485_v24 = vmax.f32 %v1415_v50, 0.0 }
 0x2c6   : > { %v1483_v61 = vmax.f32 %v1407_v52, 0.0  ;;  %1834 = vxpose.xlu0.b32.start [1/16] (narrow) %v1482_v54, 64 }
 0x2c7   : > { %v1507_v62 = vpack.c.bf16 %v1485_v24, %v1484_v19 }
 0x2c8   : > { %v1506_v53 = vpack.c.bf16 %v1483_v61, %v1482_v54 }
 0x2ca   : > { %1835 = vxpose.xlu0.b32.cont [2/16] (narrow) %v1483_v61, 64  ;;  %4417 = vmatprep.mubr.msk.bf16.mxu1 %vm1256_vm0, %v1506_v53 }
 0x2cb   : > { %4418 = vmatmul.mubr.msk.bf16.gmra.mrb[32].mxu1 %vm1256_vm0, %v1507_v62 }
 0x2ce   : > { %1836 = vxpose.xlu0.b32.cont [3/16] (narrow) %v1484_v19, 64 }
 0x2d2   : > { %1837 = vxpose.xlu0.b32.cont [4/16] (narrow) %v1485_v24, 64 }
 0x2e1   : > { %v4383_v30 = vpop.f32.mrb[4].mxu1 }
 0x2e2   : > { %v1428_v60 = vadd.f32 %v4383_v30, %v5537_v2  ;;  %v1419_v51 = vpop.f32.mrb[5].mxu1 }
 0x2e3   : > { %v1420_v9 = vadd.f32 %v5537_v2, %v1419_v51  ;;  %v4384_v25 = vpop.f32.mrb[6].mxu1 }
 0x2e4   : > { %v1431_v1 = vadd.f32 %v4384_v25, %v5537_v2  ;;  %v1422_v3 = vpop.f32.mrb[7].mxu1  ;;  %v1488_v58 = vmax.f32 %v1428_v60, 0.0 }
 0x2e5   : > { %v1486_v27 = vmax.f32 %v1420_v9, 0.0  ;;  %v1423_v36 = vadd.f32 %v5537_v2, %v1422_v3 }
 0x2e6   : > { %v1489_v63 = vmax.f32 %v1431_v1, 0.0 }
 0x2e7   : > { %v1487_v56 = vmax.f32 %v1423_v36, 0.0  ;;  %1838 = vxpose.xlu0.b32.cont [5/16] (narrow) %v1486_v27, 64 }
 0x2e8   : > { %v1509_v5 = vpack.c.bf16 %v1489_v63, %v1488_v58 }
 0x2e9   : > { %v1508_v6 = vpack.c.bf16 %v1487_v56, %v1486_v27 }
 0x2eb   : > { %1839 = vxpose.xlu0.b32.cont [6/16] (narrow) %v1487_v56, 64  ;;  %4421 = vmatprep.mubr.msk.bf16.mxu1 %vm1256_vm0, %v1508_v6 }
 0x2ec   : > { %4422 = vmatmul.mubr.msk.bf16.gmra.mrb[36].mxu1 %vm1256_vm0, %v1509_v5 }
 0x2ef   : > { %1840 = vxpose.xlu0.b32.cont [7/16] (narrow) %v1488_v58, 64 }
 0x2f3   : > { %1841 = vxpose.xlu0.b32.cont [8/16] (narrow) %v1489_v63, 64 }
 0x306   : > { %v4387_v34 = vpop.f32.mrb[8].mxu1 }
 0x307   : > { %v1444_v10 = vadd.f32 %v4387_v34, %v5537_v2  ;;  %v1435_v31 = vpop.f32.mrb[9].mxu1 }
 0x308   : > { %v1436_v11 = vadd.f32 %v5537_v2, %v1435_v31  ;;  %v4388_v12 = vpop.f32.mrb[10].mxu1 }
 0x309   : > { %v1447_v8 = vadd.f32 %v4388_v12, %v5537_v2  ;;  %v1438_v13 = vpop.f32.mrb[11].mxu1  ;;  %v1492_v40 = vmax.f32 %v1444_v10, 0.0 }
 0x30a   : > { %v1490_v14 = vmax.f32 %v1436_v11, 0.0  ;;  %v1439_v29 = vadd.f32 %v5537_v2, %v1438_v13 }
 0x30b   : > { %v1493_v57 = vmax.f32 %v1447_v8, 0.0 }
 0x30c   : > { %v1491_v15 = vmax.f32 %v1439_v29, 0.0  ;;  %1842 = vxpose.xlu0.b32.cont [9/16] (narrow) %v1490_v14, 64 }
 0x30d   : > { %v1511_v17 = vpack.c.bf16 %v1493_v57, %v1492_v40 }
 0x30e   : > { %v1510_v43 = vpack.c.bf16 %v1491_v15, %v1490_v14 }
 0x310   : > { %1843 = vxpose.xlu0.b32.cont [10/16] (narrow) %v1491_v15, 64  ;;  %4425 = vmatprep.mubr.msk.bf16.mxu1 %vm1256_vm0, %v1510_v43  ;;  %v2257_v43 = vld [vmem:[%s6203_s9 + $0x20] sm:$0xff] }
 0x311   : > { %4426 = vmatmul.mubr.msk.bf16.gmra.mrb[40].mxu1 %vm1256_vm0, %v1511_v17  ;;  %v2253_v17 = vld [vmem:[%s6203_s9] sm:$0xff] }
 0x314   : > { %1844 = vxpose.xlu0.b32.cont [11/16] (narrow) %v1492_v40, 64 }
 0x318   : > { %1845 = vxpose.xlu0.b32.cont [12/16] (narrow) %v1493_v57, 64 }
 0x327   : > { %v4391_v18 = vpop.f32.mrb[12].mxu1 }
 0x328   : > { %v1460_v21 = vadd.f32 %v4391_v18, %v5537_v2  ;;  %v1451_v22 = vpop.f32.mrb[13].mxu1  ;;  %v2254_v18 = vld [vmem:[%s6203_s9 + $0x8] sm:$0xff] }
 0x329   : > { %v1452_v20 = vadd.f32 %v5537_v2, %v1451_v22  ;;  %v4392_v49 = vpop.f32.mrb[14].mxu1  ;;  %v4221_v22 = vcombine.high %v2253_v17, %v2257_v43 }
 0x32a   : > { %v1463_v23 = vadd.f32 %v4392_v49, %v5537_v2  ;;  %v1454_v26 = vpop.f32.mrb[15].mxu1  ;;  %v1496_v35 = vmax.f32 %v1460_v21, 0.0  ;;  %v4220_v21 = vcombine.low %v2253_v17, %v2257_v43  ;;  %v2261_v49 = vld [vmem:[%s6203_s9 + $0x40] sm:$0xff]  ;;  %v2298_v17 = vld [vmem:[%s6203_s9 + $0x168] sm:$0xff] }
 0x32b   : > { %v1494_v32 = vmax.f32 %v1452_v20, 0.0  ;;  %v1455_v33 = vadd.f32 %v5537_v2, %v1454_v26  ;;  %v2258_v20 = vld [vmem:[%s6203_s9 + $0x28] sm:$0xff]  ;;  %2637 = vmatprep.subr.bf16.mxu1 %v4221_v22  ;;  %v2301_v22 = vld [vmem:[%s6203_s9 + $0x180] sm:$0xff] }
 0x32c   : > { %v1497_v16 = vmax.f32 %v1463_v23, 0.0  ;;  %v2265_v23 = vld [vmem:[%s6203_s9 + $0x60] sm:$0xff]  ;;  %v4222_v26 = vcombine.low %v2254_v18, %v2258_v20  ;;  %2638 = vmatpush1.bf16.msra.mxu1 %v4220_v21 }
 0x32d   : > { %v1495_v0 = vmax.f32 %v1455_v33, 0.0  ;;  %1846 = vxpose.xlu0.b32.cont [13/16] (narrow) %v1494_v32, 64  ;;  %v4229_v33 = vcombine.high %v2261_v49, %v2265_v23 }
 0x32e   : > { %v1513_v37 = vpack.c.bf16 %v1497_v16, %v1496_v35 }
 0x32f   : > { %v1512_v39 = vpack.c.bf16 %v1495_v0, %v1494_v32  ;;  %v4403_v44 = vpop.f32.mrb[16].mxu1  ;;  %v4223_v32 = vcombine.high %v2254_v18, %v2258_v20  ;;  %2639 = vmatprep.subr.bf16.mxu1 %v4229_v33  ;;  %v2305_v20 = vld [vmem:[%s6203_s9 + $0x1a0] sm:$0xff] }
 0x330   : > { %v1644_v4 = vadd.f32 %v4403_v44, %v5615_v59  ;;  %v1635_v28 = vpop.f32.mrb[17].mxu1  ;;  %v2270_v44 = vld [vmem:[%s6203_s9 + $0x88] sm:$0xff] }
 0x331   : > { %v1636_v38 = vadd.f32 %v5615_v59, %v1635_v28  ;;  %v4404_v46 = vpop.f32.mrb[18].mxu1  ;;  %1847 = vxpose.xlu0.b32.cont [14/16] (narrow) %v1495_v0, 64  ;;  %4429 = vmatprep.mubr.msk.bf16.mxu1 %vm1256_vm0, %v1512_v39  ;;  %v2269_v0 = vld [vmem:[%s6203_s9 + $0x80] sm:$0xff]  ;;  %v4228_v28 = vcombine.low %v2261_v49, %v2265_v23  ;;  %v4269_v49 = vcombine.high %v2301_v22, %v2305_v20  ;;  %v2302_v23 = vld [vmem:[%s6203_s9 + $0x188] sm:$0xff] }
 0x332   : > { %v1647_v2 = vadd.f32 %v4404_v46, %v5615_v59  ;;  %v1638_v55 = vpop.f32.mrb[19].mxu1  ;;  %4430 = vmatmul.mubr.msk.bf16.gmra.mrb[44].mxu1 %vm1256_vm0, %v1513_v37  ;;  %v1764_v42 = vmax.f32 %v1644_v4, 0.0  ;;  %v2273_v39 = vld [vmem:[%s6203_s9 + $0xa0] sm:$0xff]  ;;  %v2274_v4 = vld [vmem:[%s6203_s9 + $0xa8] sm:$0xff]  ;;  %2830 = vmatprep.subr.bf16.mxu0 %v4223_v32  ;;  %v4268_v32 = vcombine.low %v2301_v22, %v2305_v20  ;;  %v5761_v22 = vld [vmem:[%s6203_s9 + $0x10] sm:$0xff] }
 0x333   : > { %v1639_v50 = vadd.f32 %v5615_v59, %v1638_v55  ;;  %2669 = vmatprep.mubr.bf16.mxu1 %v4903_v7  ;;  %v1762_v52 = vmax.f32 %v1636_v38, 0.0  ;;  %v4237_v46 = vcombine.high %v2269_v0, %v2273_v39  ;;  %v2277_v55 = vld [vmem:[%s6203_s9 + $0xc0] sm:$0xff]  ;;  %2640 = vmatpush1.bf16.msra.mxu1 %v4228_v28  ;;  %v2259_v20 = vld [vmem:[%s6203_s9 + $0x30] sm:$0xff] }
 0x334   : > { %v1765_v54 = vmax.f32 %v1647_v2, 0.0  ;;  %v4239_v2 = vcombine.high %v2270_v44, %v2274_v4 }
 0x335   : > { %v1763_v19 = vmax.f32 %v1639_v50, 0.0  ;;  %1848 = vxpose.xlu0.b32.cont [15/16] (narrow) %v1496_v35, 64  ;;  %v2262_v35 = vld [vmem:[%s6203_s9 + $0x48] sm:$0xff]  ;;  %v2281_v50 = vld [vmem:[%s6203_s9 + $0xe0] sm:$0xff]  ;;  %2641 = vmatprep.subr.bf16.mxu1 %v4237_v46 }
 0x336   : > { %v1876_v24 = vpack.c.bf16 %v1765_v54, %v1764_v42  ;;  %v2278_v42 = vld [vmem:[%s6203_s9 + $0xc8] sm:$0xff] }
 0x337   : > { %v1875_v61 = vpack.c.bf16 %v1763_v19, %v1762_v52  ;;  %v2282_v54 = vld [vmem:[%s6203_s9 + $0xe8] sm:$0xff]  ;;  %v4236_v52 = vcombine.low %v2269_v0, %v2273_v39  ;;  %v4238_v19 = vcombine.low %v2270_v44, %v2274_v4  ;;  %v2313_v0 = vld [vmem:[%s6203_s9 + $0x1e0] sm:$0xff] }
 0x338   : > { %v4407_v62 = vpop.f32.mrb[20].mxu1  ;;  %v2310_v39 = vld [vmem:[%s6203_s9 + $0x1c8] sm:$0xff] }
 0x339   : > { %v1660_v53 = vadd.f32 %v4407_v62, %v5615_v59  ;;  %v1651_v30 = vpop.f32.mrb[21].mxu1  ;;  %4441 = vmatprep.mubr.msk.bf16.mxu0 %vm1256_vm0, %v1875_v61  ;;  %1849 = vxpose.xlu0.b32.end [16/16] (narrow) %v1497_v16, 64  ;;  %v2266_v16 = vld [vmem:[%s6203_s9 + $0x68] sm:$0xff]  ;;  %v4247_v62 = vcombine.high %v2278_v42, %v2282_v54 }
 0x33a   : > { %v1652_v60 = vadd.f32 %v5615_v59, %v1651_v30  ;;  %v4408_v51 = vpop.f32.mrb[22].mxu1  ;;  %4442 = vmatmul.mubr.msk.bf16.vlgmr.msra.gmra.mrb[16].mxu0 %vm1256_vm0, %v1876_v24  ;;  %v4231_v37 = vcombine.high %v2262_v35, %v2266_v16  ;;  %v4230_v38 = vcombine.low %v2262_v35, %v2266_v16  ;;  %v4245_v24 = vcombine.high %v2277_v55, %v2281_v50  ;;  %v2309_v16 = vld [vmem:[%s6203_s9 + $0x1c0] sm:$0xff]  ;;  %v2314_v44 = vld [vmem:[%s6203_s9 + $0x1e8] sm:$0xff] }
 0x33b   : > { %v1663_v9 = vadd.f32 %v4408_v51, %v5615_v59  ;;  %v1654_v25 = vpop.f32.mrb[23].mxu1  ;;  %v1768_v3 = vmax.f32 %v1660_v53, 0.0  ;;  %2831 = vmatpush1.bf16.msra.mxu0 %v4222_v26  ;;  %2642 = vmatpush1.bf16.msra.mxu1 %v4236_v52  ;;  %v2306_v26 = vld [vmem:[%s6203_s9 + $0x1a8] sm:$0xff]  ;;  %v4276_v4 = vcombine.low %v2309_v16, %v2313_v0  ;;  %v4279_v28 = vcombine.high %v2310_v39, %v2314_v44 }
 0x33c   : > { %v1655_v1 = vadd.f32 %v5615_v59, %v1654_v25  ;;  %v1766_v36 = vmax.f32 %v1652_v60, 0.0  ;;  %2832 = vmatprep.subr.bf16.mxu0 %v4231_v37  ;;  %2643 = vmatprep.subr.bf16.mxu1 %v4245_v24  ;;  %v4271_v33 = vcombine.high %v2302_v23, %v2306_v26  ;;  %v4270_v35 = vcombine.low %v2302_v23, %v2306_v26  ;;  %v2260_v26 = vld [vmem:[%s6203_s9 + $0x38] sm:$0xff] }
 0x33d   : > { %v1769_v27 = vmax.f32 %v1663_v9, 0.0  ;;  %v4244_v9 = vcombine.low %v2277_v55, %v2281_v50  ;;  %v4277_v37 = vcombine.high %v2309_v16, %v2313_v0  ;;  %v4225_v23 = vcombine.high %v5761_v22, %v2259_v20 }
 0x33e   : > { %v1767_v58 = vmax.f32 %v1655_v1, 0.0 }
 0x33f   : > { %v1878_v63 = vpack.c.bf16 %v1769_v27, %v1768_v3  ;;  %2833 = vmatpush1.bf16.msra.mxu0 %v4230_v38  ;;  %v4246_v3 = vcombine.low %v2278_v42, %v2282_v54  ;;  %2644 = vmatpush1.bf16.msra.mxu1 %v4244_v9  ;;  %v4278_v38 = vcombine.low %v2310_v39, %v2314_v44 }
 0x340   : > { %v1877_v56 = vpack.c.bf16 %v1767_v58, %v1766_v36  ;;  %2834 = vmatprep.subr.bf16.mxu0 %v4239_v2 }
 0x342   : > { %4445 = vmatprep.mubr.msk.bf16.mxu0 %vm1256_vm0, %v1877_v56 }
 0x343   : > { %4446 = vmatmul.mubr.msk.bf16.gmra.mrb[20].mxu0 %vm1256_vm0, %v1878_v63 }
 0x344   : > { %2835 = vmatpush1.bf16.msra.mxu0 %v4238_v19 }
 0x345   : > { %2836 = vmatprep.subr.bf16.mxu0 %v4247_v62 }
 0x348   : > { %2837 = vmatpush1.bf16.msra.mxu0 %v4246_v3 }
 0x358   : > { %v4411_v5 = vpop.f32.mrb[24].mxu1 }
 0x359   : > { %v1676_v6 = vadd.f32 %v4411_v5, %v5615_v59  ;;  %v1667_v34 = vpop.f32.mrb[25].mxu1 }
 0x35a   : > { %v1668_v10 = vadd.f32 %v5615_v59, %v1667_v34  ;;  %v4412_v31 = vpop.f32.mrb[26].mxu1  ;;  %v2285_v34 = vld [vmem:[%s6203_s9 + $0x100] sm:$0xff] }
 0x35b   : > { %v1679_v11 = vadd.f32 %v4412_v31, %v5615_v59  ;;  %v1670_v12 = vpop.f32.mrb[27].mxu1  ;;  %v1772_v13 = vmax.f32 %v1676_v6, 0.0 }
 0x35c   : > { %v1671_v8 = vadd.f32 %v5615_v59, %v1670_v12  ;;  %v1770_v29 = vmax.f32 %v1668_v10, 0.0  ;;  %v2289_v10 = vld [vmem:[%s6203_s9 + $0x120] sm:$0xff]  ;;  %v2290_v12 = vld [vmem:[%s6203_s9 + $0x128] sm:$0xff] }
 0x35d   : > { %v1773_v14 = vmax.f32 %v1679_v11, 0.0  ;;  %v4253_v31 = vcombine.high %v2285_v34, %v2289_v10  ;;  %v2286_v11 = vld [vmem:[%s6203_s9 + $0x108] sm:$0xff] }
 0x35e   : > { %v1771_v40 = vmax.f32 %v1671_v8, 0.0  ;;  %v4252_v8 = vcombine.low %v2285_v34, %v2289_v10 }
 0x35f   : > { %v1880_v57 = vpack.c.bf16 %v1773_v14, %v1772_v13  ;;  %v4255_v13 = vcombine.high %v2286_v11, %v2290_v12  ;;  %2645 = vmatprep.subr.bf16.mxu1 %v4253_v31  ;;  %v4254_v14 = vcombine.low %v2286_v11, %v2290_v12 }
 0x360   : > { %v1879_v15 = vpack.c.bf16 %v1771_v40, %v1770_v29  ;;  %2646 = vmatpush1.bf16.msra.mxu1 %v4252_v8  ;;  %v2293_v29 = vld [vmem:[%s6203_s9 + $0x140] sm:$0xff] }
 0x361   : > { %2838 = vmatprep.subr.bf16.mxu0 %v4255_v13  ;;  %v2297_v40 = vld [vmem:[%s6203_s9 + $0x160] sm:$0xff] }
 0x362   : > { %4449 = vmatprep.mubr.msk.bf16.mxu0 %vm1256_vm0, %v1879_v15  ;;  %2839 = vmatpush1.bf16.msra.mxu0 %v4254_v14  ;;  %v2294_v15 = vld [vmem:[%s6203_s9 + $0x148] sm:$0xff]  ;;  %v4260_v43 = vcombine.low %v2293_v29, %v2297_v40 }
 0x363   : > { %4450 = vmatmul.mubr.msk.bf16.gmra.mrb[24].mxu0 %vm1256_vm0, %v1880_v57  ;;  %v4261_v57 = vcombine.high %v2293_v29, %v2297_v40  ;;  %v4263_v18 = vcombine.high %v2294_v15, %v2298_v17  ;;  %v4262_v21 = vcombine.low %v2294_v15, %v2298_v17 }
 0x365   : > { %2647 = vmatprep.subr.bf16.mxu1 %v4261_v57  ;;  %2840 = vmatprep.subr.bf16.mxu0 %v4263_v18 }
 0x366   : > { %2648 = vmatpush1.bf16.msra.mxu1 %v4260_v43  ;;  %2841 = vmatpush1.bf16.msra.mxu0 %v4262_v21 }
 0x367   : > { %2649 = vmatprep.subr.bf16.mxu1 %v4269_v49  ;;  %2842 = vmatprep.subr.bf16.mxu0 %v4271_v33  ;;  %v5769_v49 = vld [vmem:[%s6203_s9 + $0x18] sm:$0xff] }
 0x36a   : > { %2650 = vmatpush1.bf16.msra.mxu1 %v4268_v32  ;;  %2843 = vmatpush1.bf16.msra.mxu0 %v4270_v35  ;;  %v4227_v32 = vcombine.high %v5769_v49, %v2260_v26 }
 0x36b   : > { %2651 = vmatprep.subr.bf16.mxu1 %v4277_v37  ;;  %2844 = vmatprep.subr.bf16.mxu0 %v4279_v28 }
 0x36e   : > { %2652 = vmatpush1.bf16.msra.mxu1 %v4276_v4  ;;  %2845 = vmatpush1.bf16.msra.mxu0 %v4278_v38 }
 0x36f   : > { %3023 = vmatprep.subr.bf16.mxu1 %v4225_v23  ;;  %3216 = vmatprep.subr.bf16.mxu0 %v4227_v32 }
 0x379   : > { %v4415_v61 = vpop.f32.mrb[28].mxu1 }
 0x37a   : > { %v1692_v53 = vadd.f32 %v4415_v61, %v5615_v59  ;;  %v1683_v30 = vpop.f32.mrb[29].mxu1 }
 0x37b   : > { %v1684_v60 = vadd.f32 %v5615_v59, %v1683_v30  ;;  %v4416_v51 = vpop.f32.mrb[30].mxu1 }
 0x37c   : > { %v1695_v25 = vadd.f32 %v4416_v51, %v5615_v59  ;;  %v1686_v1 = vpop.f32.mrb[31].mxu1  ;;  %v1776_v36 = vmax.f32 %v1692_v53, 0.0 }
 0x37d   : > { %v1687_v27 = vadd.f32 %v5615_v59, %v1686_v1  ;;  %v1774_v63 = vmax.f32 %v1684_v60, 0.0 }
 0x37e   : > { %v1777_v58 = vmax.f32 %v1695_v25, 0.0 }
 0x37f   : > { %v1775_v56 = vmax.f32 %v1687_v27, 0.0 }
 0x380   : > { %v1882_v5 = vpack.c.bf16 %v1777_v58, %v1776_v36 }
 0x381   : > { %v1881_v6 = vpack.c.bf16 %v1775_v56, %v1774_v63 }
 0x383   : > { %4453 = vmatprep.mubr.msk.bf16.mxu0 %vm1256_vm0, %v1881_v6 }
 0x384   : > { %4454 = vmatmul.mubr.msk.bf16.gmra.mrb[28].mxu0 %vm1256_vm0, %v1882_v5 }
 0x39e   : > { %v4419_v46 = vpop.f32.mrb[32].mxu1 }
 0x39f   : > { %v1708_v2 = vadd.f32 %v4419_v46, %v5615_v59  ;;  %v1699_v55 = vpop.f32.mrb[33].mxu1 }
 0x3a0   : > { %v1700_v50 = vadd.f32 %v5615_v59, %v1699_v55  ;;  %v4420_v42 = vpop.f32.mrb[34].mxu1  ;;  %v5780_v55 = vld [vmem:[#allocation12] ss:$0 sm:$0xff] }
 0x3a1   : > { %v1711_v54 = vadd.f32 %v4420_v42, %v5615_v59  ;;  %v1702_v52 = vpop.f32.mrb[35].mxu1  ;;  %v1780_v24 = vmax.f32 %v1708_v2, 0.0 }
 0x3a2   : > { %v1703_v19 = vadd.f32 %v5615_v59, %v1702_v52  ;;  %v1778_v62 = vmax.f32 %v1700_v50, 0.0 }
 0x3a3   : > { %v1781_v61 = vmax.f32 %v1711_v54, 0.0 }
 0x3a4   : > { %v1779_v53 = vmax.f32 %v1703_v19, 0.0 }
 0x3a5   : > { %v1884_v30 = vpack.c.bf16 %v1781_v61, %v1780_v24 }
 0x3a6   : > { %v1883_v60 = vpack.c.bf16 %v1779_v53, %v1778_v62 }
 0x3a8   : > { %4457 = vmatprep.mubr.msk.bf16.mxu0 %vm1256_vm0, %v1883_v60 }
 0x3a9   : > { %4458 = vmatmul.mubr.msk.bf16.gmra.mrb[32].mxu0 %vm1256_vm0, %v1884_v30 }
 0x3bf   : > { %v4423_v51 = vpop.f32.mrb[36].mxu1 }
 0x3c0   : > { %v1724_v9 = vadd.f32 %v4423_v51, %v5615_v59  ;;  %v1715_v25 = vpop.f32.mrb[37].mxu1 }
 0x3c1   : > { %v1716_v1 = vadd.f32 %v5615_v59, %v1715_v25  ;;  %v4424_v3 = vpop.f32.mrb[38].mxu1  ;;  %v2263_v25 = vld [vmem:[%s6203_s9 + $0x50] sm:$0xff] }
 0x3c2   : > { %v1727_v27 = vadd.f32 %v4424_v3, %v5615_v59  ;;  %v1718_v36 = vpop.f32.mrb[39].mxu1  ;;  %v1784_v63 = vmax.f32 %v1724_v9, 0.0 }
 0x3c3   : > { %v1719_v58 = vadd.f32 %v5615_v59, %v1718_v36  ;;  %v1782_v5 = vmax.f32 %v1716_v1, 0.0  ;;  %v2267_v1 = vld [vmem:[%s6203_s9 + $0x70] sm:$0xff]  ;;  %v2268_v36 = vld [vmem:[%s6203_s9 + $0x78] sm:$0xff] }
 0x3c4   : > { %v1785_v56 = vmax.f32 %v1727_v27, 0.0  ;;  %v2264_v27 = vld [vmem:[%s6203_s9 + $0x58] sm:$0xff] }
 0x3c5   : > { %v1783_v6 = vmax.f32 %v1719_v58, 0.0 }
 0x3c6   : > { %v1886_v34 = vpack.c.bf16 %v1785_v56, %v1784_v63  ;;  %v4224_v63 = vcombine.low %v5761_v22, %v2259_v20 }
 0x3c7   : > { %v1885_v10 = vpack.c.bf16 %v1783_v6, %v1782_v5  ;;  %v4226_v5 = vcombine.low %v5769_v49, %v2260_v26  ;;  %v4233_v6 = vcombine.high %v2263_v25, %v2267_v1 }
 0x3c9   : > { %4461 = vmatprep.mubr.msk.bf16.mxu0 %vm1256_vm0, %v1885_v10 }
 0x3ca   : > { %4462 = vmatmul.mubr.msk.bf16.gmra.mrb[36].mxu0 %vm1256_vm0, %v1886_v34 }
 0x3e4   : > { %v4427_v31 = vpop.f32.mrb[40].mxu1 }
 0x3e5   : > { %v1740_v11 = vadd.f32 %v4427_v31, %v5615_v59  ;;  %v1731_v12 = vpop.f32.mrb[41].mxu1  ;;  %v4235_v31 = vcombine.high %v2264_v27, %v2268_v36 }
 0x3e6   : > { %v1732_v8 = vadd.f32 %v5615_v59, %v1731_v12  ;;  %v4428_v13 = vpop.f32.mrb[42].mxu1  ;;  %v2275_v12 = vld [vmem:[%s6203_s9 + $0xb0] sm:$0xff] }
 0x3e7   : > { %v1743_v14 = vadd.f32 %v4428_v13, %v5615_v59  ;;  %v1734_v29 = vpop.f32.mrb[43].mxu1  ;;  %v1788_v57 = vmax.f32 %v1740_v11, 0.0  ;;  %v2271_v11 = vld [vmem:[%s6203_s9 + $0x90] sm:$0xff] }
 0x3e8   : > { %v1735_v40 = vadd.f32 %v5615_v59, %v1734_v29  ;;  %v1786_v17 = vmax.f32 %v1732_v8, 0.0  ;;  %v2276_v29 = vld [vmem:[%s6203_s9 + $0xb8] sm:$0xff]  ;;  %v4240_v32 = vcombine.low %v2271_v11, %v2275_v12 }
 0x3e9   : > { %v1789_v15 = vmax.f32 %v1743_v14, 0.0  ;;  %v2272_v14 = vld [vmem:[%s6203_s9 + $0x98] sm:$0xff] }
 0x3ea   : > { %v1787_v43 = vmax.f32 %v1735_v40, 0.0  ;;  %v4243_v20 = vcombine.high %v2272_v14, %v2276_v29 }
 0x3eb   : > { %v1888_v18 = vpack.c.bf16 %v1789_v15, %v1788_v57  ;;  %v4232_v15 = vcombine.low %v2263_v25, %v2267_v1 }
 0x3ec   : > { %v1887_v21 = vpack.c.bf16 %v1787_v43, %v1786_v17  ;;  %v4234_v43 = vcombine.low %v2264_v27, %v2268_v36 }
 0x3ee   : > { %4465 = vmatprep.mubr.msk.bf16.mxu0 %vm1256_vm0, %v1887_v21 }
 0x3ef   : > { %4466 = vmatmul.mubr.msk.bf16.gmra.mrb[40].mxu0 %vm1256_vm0, %v1888_v18  ;;  %v4241_v18 = vcombine.high %v2271_v11, %v2275_v12  ;;  %v2300_v11 = vld [vmem:[%s6203_s9 + $0x178] sm:$0xff] }
 0x405   : > { %v4431_v33 = vpop.f32.mrb[44].mxu1 }
 0x406   : > { %v1756_v35 = vadd.f32 %v4431_v33, %v5615_v59  ;;  %v1747_v16 = vpop.f32.mrb[45].mxu1 }
 0x407   : > { %v1748_v0 = vadd.f32 %v5615_v59, %v1747_v16  ;;  %v4432_v37 = vpop.f32.mrb[46].mxu1  ;;  %v2279_v16 = vld [vmem:[%s6203_s9 + $0xd0] sm:$0xff] }
 0x408   : > { %v1759_v39 = vadd.f32 %v4432_v37, %v5615_v59  ;;  %v1750_v44 = vpop.f32.mrb[47].mxu1  ;;  %v1792_v28 = vmax.f32 %v1756_v35, 0.0  ;;  %v4242_v35 = vcombine.low %v2272_v14, %v2276_v29  ;;  %v2280_v37 = vld [vmem:[%s6203_s9 + $0xd8] sm:$0xff]  ;;  %v2307_v14 = vld [vmem:[%s6203_s9 + $0x1b0] sm:$0xff] }
 0x409   : > { %v1751_v4 = vadd.f32 %v5615_v59, %v1750_v44  ;;  %v1790_v46 = vmax.f32 %v1748_v0, 0.0  ;;  %v2283_v0 = vld [vmem:[%s6203_s9 + $0xf0] sm:$0xff]  ;;  %v2304_v29 = vld [vmem:[%s6203_s9 + $0x198] sm:$0xff] }
 0x40a   : > { %v1793_v38 = vmax.f32 %v1759_v39, 0.0  ;;  %v4248_v39 = vcombine.low %v2279_v16, %v2283_v0  ;;  %v4249_v44 = vcombine.high %v2279_v16, %v2283_v0 }
 0x40b   : > { %v1791_v2 = vmax.f32 %v1751_v4, 0.0  ;;  %v2284_v4 = vld [vmem:[%s6203_s9 + $0xf8] sm:$0xff] }
 0x40c   : > { %v1890_v50 = vpack.c.bf16 %v1793_v38, %v1792_v28  ;;  %v4250_v28 = vcombine.low %v2280_v37, %v2284_v4  ;;  %v4251_v38 = vcombine.high %v2280_v37, %v2284_v4 }
 0x40d   : > { %v1889_v42 = vpack.c.bf16 %v1791_v2, %v1790_v46  ;;  %v4443_v54 = vpop.f32.mrb[16].mxu0  ;;  %v2287_v46 = vld [vmem:[%s6203_s9 + $0x110] sm:$0xff] }
 0x40e   : > { %v2021_v52 = vadd.f32 %v4443_v54, %v5780_v55  ;;  %v2012_v19 = vpop.f32.mrb[17].mxu0  ;;  %v2291_v2 = vld [vmem:[%s6203_s9 + $0x130] sm:$0xff] }
 0x40f   : > { %v2013_v24 = vadd.f32 %v5780_v55, %v2012_v19  ;;  %v4444_v61 = vpop.f32.mrb[18].mxu0  ;;  %4469 = vmatprep.mubr.msk.bf16.mxu0 %vm1256_vm0, %v1889_v42  ;;  %v4256_v42 = vcombine.low %v2287_v46, %v2291_v2  ;;  %v4257_v54 = vcombine.high %v2287_v46, %v2291_v2  ;;  %v2312_v46 = vld [vmem:[%s6203_s9 + $0x1d8] sm:$0xff] }
 0x410   : > { %v2024_v62 = vadd.f32 %v4444_v61, %v5780_v55  ;;  %v2015_v59 = vpop.f32.mrb[19].mxu0  ;;  %4470 = vmatmul.mubr.msk.bf16.gmra.mrb[44].mxu0 %vm1256_vm0, %v1890_v50  ;;  %v2141_v30 = vmax.f32 %v2021_v52, 0.0  ;;  %v2288_v50 = vld [vmem:[%s6203_s9 + $0x118] sm:$0xff] }
 0x411   : > { %v2016_v53 = vadd.f32 %v5780_v55, %v2015_v59  ;;  %2862 = vmatprep.mubr.bf16.mxu0 %v4903_v7  ;;  %v2139_v51 = vmax.f32 %v2013_v24, 0.0  ;;  %v2292_v52 = vld [vmem:[%s6203_s9 + $0x138] sm:$0xff] }
 0x412   : > { %v2142_v60 = vmax.f32 %v2024_v62, 0.0  ;;  %v4258_v19 = vcombine.low %v2288_v50, %v2292_v52  ;;  %v4259_v24 = vcombine.high %v2288_v50, %v2292_v52 }
 0x413   : > { %v2140_v9 = vmax.f32 %v2016_v53, 0.0 }
 0x414   : > { %v5795_v3 = vpack.c.bf16 %v2142_v60, %v2141_v30 }
 0x415   : > { %v5803_v58 = vpack.c.bf16 %v2140_v9, %v2139_v51 }
 0x416   : > { %v4447_v56 = vpop.f32.mrb[20].mxu0 }
 0x417   : > { %v2037_v34 = vadd.f32 %v4447_v56, %v5780_v55  ;;  %v2028_v10 = vpop.f32.mrb[21].mxu0  ;;  %2670 = vmatmul.mubr.bf16.vlgmr.msra.gmra.mrb[48].mxu1 %v5803_v58 }
 0x418   : > { %v2029_v8 = vadd.f32 %v5780_v55, %v2028_v10  ;;  %v4448_v13 = vpop.f32.mrb[22].mxu0  ;;  %2863 = vmatmul.mubr.bf16.vlgmr.msra.gmra.mrb[48].mxu0 %v5803_v58  ;;  %2679 = vmatprep.mubr.bf16.mxu1 %v4903_v7 }
 0x419   : > { %v2040_v40 = vadd.f32 %v4448_v13, %v5780_v55  ;;  %v2031_v57 = vpop.f32.mrb[23].mxu0  ;;  %2872 = vmatprep.mubr.bf16.mxu0 %v4903_v7  ;;  %3024 = vmatpush1.bf16.msra.mxu1 %v4224_v63  ;;  %v2145_v21 = vmax.f32 %v2037_v34, 0.0  ;;  %v2296_v34 = vld [vmem:[%s6203_s9 + $0x158] sm:$0xff]  ;;  %v2303_v13 = vld [vmem:[%s6203_s9 + $0x190] sm:$0xff] }
 0x41a   : > { %v2032_v17 = vadd.f32 %v5780_v55, %v2031_v57  ;;  %3217 = vmatpush1.bf16.msra.mxu0 %v4226_v5  ;;  %3025 = vmatprep.subr.bf16.mxu1 %v4233_v6  ;;  %v2143_v49 = vmax.f32 %v2029_v8, 0.0  ;;  %v2295_v5 = vld [vmem:[%s6203_s9 + $0x150] sm:$0xff]  ;;  %v4266_v12 = vcombine.low %v2296_v34, %v2300_v11  ;;  %v4267_v8 = vcombine.high %v2296_v34, %v2300_v11 }
 0x41b   : > { %v2146_v22 = vmax.f32 %v2040_v40, 0.0  ;;  %3218 = vmatprep.subr.bf16.mxu0 %v4235_v31  ;;  %v2299_v6 = vld [vmem:[%s6203_s9 + $0x170] sm:$0xff]  ;;  %v4272_v40 = vcombine.low %v2303_v13, %v2307_v14  ;;  %v4273_v57 = vcombine.high %v2303_v13, %v2307_v14 }
 0x41c   : > { %v2144_v23 = vmax.f32 %v2032_v17, 0.0  ;;  %v4264_v10 = vcombine.low %v2295_v5, %v2299_v6  ;;  %v4265_v31 = vcombine.high %v2295_v5, %v2299_v6 }
 0x41d   : > { %v5827_v26 = vpack.c.bf16 %v2146_v22, %v2145_v21  ;;  %3026 = vmatpush1.bf16.msra.mxu1 %v4232_v15  ;;  %v2308_v15 = vld [vmem:[%s6203_s9 + $0x1b8] sm:$0xff] }
 0x41e   : > { %v5829_v33 = vpack.c.bf16 %v2144_v23, %v2143_v49  ;;  %3219 = vmatpush1.bf16.msra.mxu0 %v4234_v43  ;;  %3027 = vmatprep.subr.bf16.mxu1 %v4241_v18  ;;  %v4274_v17 = vcombine.low %v2304_v29, %v2308_v15  ;;  %v4275_v43 = vcombine.high %v2304_v29, %v2308_v15 }
 0x41f   : > { %2680 = vmatmul.mubr.bf16.gmra.mrb[52].mxu1 %v5795_v3  ;;  %3220 = vmatprep.subr.bf16.mxu0 %v4243_v20 }
 0x420   : > { %2873 = vmatmul.mubr.bf16.gmra.mrb[52].mxu0 %v5795_v3  ;;  %2689 = vmatprep.mubr.bf16.mxu1 %v4903_v7 }
 0x421   : > { %2882 = vmatprep.mubr.bf16.mxu0 %v4903_v7  ;;  %3028 = vmatpush1.bf16.msra.mxu1 %v4240_v32 }
 0x422   : > { %3221 = vmatpush1.bf16.msra.mxu0 %v4242_v35  ;;  %3029 = vmatprep.subr.bf16.mxu1 %v4249_v44 }
 0x423   : > { %3222 = vmatprep.subr.bf16.mxu0 %v4251_v38  ;;  %v2315_v38 = vld [vmem:[%s6203_s9 + $0x1f0] sm:$0xff] }
 0x425   : > { %3030 = vmatpush1.bf16.msra.mxu1 %v4248_v39 }
 0x426   : > { %3223 = vmatpush1.bf16.msra.mxu0 %v4250_v28  ;;  %3031 = vmatprep.subr.bf16.mxu1 %v4257_v54  ;;  %v2311_v28 = vld [vmem:[%s6203_s9 + $0x1d0] sm:$0xff] }
 0x427   : > { %2690 = vmatmul.mubr.bf16.gmra.mrb[56].mxu1 %v5829_v33  ;;  %3224 = vmatprep.subr.bf16.mxu0 %v4259_v24  ;;  %v4280_v2 = vcombine.low %v2311_v28, %v2315_v38  ;;  %v4281_v50 = vcombine.high %v2311_v28, %v2315_v38 }
 0x428   : > { %2883 = vmatmul.mubr.bf16.gmra.mrb[56].mxu0 %v5829_v33  ;;  %2699 = vmatprep.mubr.bf16.mxu1 %v4903_v7 }
 0x429   : > { %2892 = vmatprep.mubr.bf16.mxu0 %v4903_v7  ;;  %3032 = vmatpush1.bf16.msra.mxu1 %v4256_v42  ;;  %v2316_v42 = vld [vmem:[%s6203_s9 + $0x1f8] sm:$0xff] }
 0x42a   : > { %3225 = vmatpush1.bf16.msra.mxu0 %v4258_v19  ;;  %3033 = vmatprep.subr.bf16.mxu1 %v4265_v31  ;;  %v4282_v54 = vcombine.low %v2312_v46, %v2316_v42  ;;  %v4283_v52 = vcombine.high %v2312_v46, %v2316_v42 }
 0x42b   : > { %3226 = vmatprep.subr.bf16.mxu0 %v4267_v8 }
 0x42d   : > { %3034 = vmatpush1.bf16.msra.mxu1 %v4264_v10 }
 0x42e   : > { %3227 = vmatpush1.bf16.msra.mxu0 %v4266_v12  ;;  %3035 = vmatprep.subr.bf16.mxu1 %v4273_v57 }
 0x42f   : > { %2700 = vmatmul.mubr.bf16.gmra.mrb[60].mxu1 %v5827_v26  ;;  %3228 = vmatprep.subr.bf16.mxu0 %v4275_v43 }
 0x430   : > { %2893 = vmatmul.mubr.bf16.gmra.mrb[60].mxu0 %v5827_v26  ;;  %2709 = vmatprep.mubr.bf16.mxu1 %v4903_v7 }
 0x431   : > { %2902 = vmatprep.mubr.bf16.mxu0 %v4903_v7  ;;  %3036 = vmatpush1.bf16.msra.mxu1 %v4272_v40 }
 0x432   : > { %3229 = vmatpush1.bf16.msra.mxu0 %v4274_v17  ;;  %3037 = vmatprep.subr.bf16.mxu1 %v4281_v50 }
 0x433   : > { %3230 = vmatprep.subr.bf16.mxu0 %v4283_v52 }
 0x435   : > { %3038 = vmatpush1.bf16.msra.mxu1 %v4280_v2 }
 0x436   : > { %v4451_v61 = vpop.f32.mrb[24].mxu0  ;;  %3231 = vmatpush1.bf16.msra.mxu0 %v4282_v54 }
 0x437   : > { %v2053_v62 = vadd.f32 %v4451_v61, %v5780_v55  ;;  %v2044_v59 = vpop.f32.mrb[25].mxu0 }
 0x438   : > { %v2045_v53 = vadd.f32 %v5780_v55, %v2044_v59  ;;  %v4452_v30 = vpop.f32.mrb[26].mxu0 }
 0x439   : > { %v2056_v60 = vadd.f32 %v4452_v30, %v5780_v55  ;;  %v2047_v51 = vpop.f32.mrb[27].mxu0  ;;  %v2149_v25 = vmax.f32 %v2053_v62, 0.0 }
 0x43a   : > { %v2048_v9 = vadd.f32 %v5780_v55, %v2047_v51  ;;  %v2147_v27 = vmax.f32 %v2045_v53, 0.0 }
 0x43b   : > { %v2150_v1 = vmax.f32 %v2056_v60, 0.0 }
 0x43c   : > { %v2148_v36 = vmax.f32 %v2048_v9, 0.0 }
 0x43d   : > { %v5871_v63 = vpack.c.bf16 %v2150_v1, %v2149_v25 }
 0x43e   : > { %v5873_v56 = vpack.c.bf16 %v2148_v36, %v2147_v27 }
 0x440   : > { %2710 = vmatmul.mubr.bf16.gmra.mrb[64].mxu1 %v5873_v56  ;;  %2903 = vmatmul.mubr.bf16.gmra.mrb[64].mxu0 %v5873_v56 }
 0x441   : > { %2719 = vmatprep.mubr.bf16.mxu1 %v4903_v7  ;;  %2912 = vmatprep.mubr.bf16.mxu0 %v4903_v7 }
 0x448   : > { %2720 = vmatmul.mubr.bf16.gmra.mrb[68].mxu1 %v5871_v63  ;;  %2913 = vmatmul.mubr.bf16.gmra.mrb[68].mxu0 %v5871_v63 }
 0x449   : > { %2729 = vmatprep.mubr.bf16.mxu1 %v4903_v7  ;;  %2922 = vmatprep.mubr.bf16.mxu0 %v4903_v7 }
 0x457   : > { %v4455_v18 = vpop.f32.mrb[28].mxu0 }
 0x458   : > { %v2069_v21 = vadd.f32 %v4455_v18, %v5780_v55  ;;  %v2060_v22 = vpop.f32.mrb[29].mxu0 }
 0x459   : > { %v2061_v20 = vadd.f32 %v5780_v55, %v2060_v22  ;;  %v4456_v49 = vpop.f32.mrb[30].mxu0 }
 0x45a   : > { %v2072_v23 = vadd.f32 %v4456_v49, %v5780_v55  ;;  %v2063_v32 = vpop.f32.mrb[31].mxu0  ;;  %v2153_v16 = vmax.f32 %v2069_v21, 0.0 }
 0x45b   : > { %v2064_v35 = vadd.f32 %v5780_v55, %v2063_v32  ;;  %v2151_v37 = vmax.f32 %v2061_v20, 0.0 }
 0x45c   : > { %v2154_v0 = vmax.f32 %v2072_v23, 0.0 }
 0x45d   : > { %v2152_v39 = vmax.f32 %v2064_v35, 0.0 }
 0x45e   : > { %v5911_v44 = vpack.c.bf16 %v2154_v0, %v2153_v16 }
 0x45f   : > { %v5913_v4 = vpack.c.bf16 %v2152_v39, %v2151_v37 }
 0x461   : > { %2730 = vmatmul.mubr.bf16.gmra.mrb[72].mxu1 %v5913_v4  ;;  %2923 = vmatmul.mubr.bf16.gmra.mrb[72].mxu0 %v5913_v4 }
 0x462   : > { %2739 = vmatprep.mubr.bf16.mxu1 %v4903_v7  ;;  %2932 = vmatprep.mubr.bf16.mxu0 %v4903_v7 }
 0x469   : > { %2740 = vmatmul.mubr.bf16.gmra.mrb[76].mxu1 %v5911_v44  ;;  %2933 = vmatmul.mubr.bf16.gmra.mrb[76].mxu0 %v5911_v44 }
 0x46a   : > { %2749 = vmatprep.mubr.bf16.mxu1 %v4903_v7  ;;  %2942 = vmatprep.mubr.bf16.mxu0 %v4903_v7 }
 0x47c   : > { %v4459_v19 = vpop.f32.mrb[32].mxu0 }
 0x47d   : > { %v2085_v24 = vadd.f32 %v4459_v19, %v5780_v55  ;;  %v2076_v61 = vpop.f32.mrb[33].mxu0 }
 0x47e   : > { %v2077_v62 = vadd.f32 %v5780_v55, %v2076_v61  ;;  %v4460_v59 = vpop.f32.mrb[34].mxu0 }
 0x47f   : > { %v2088_v53 = vadd.f32 %v4460_v59, %v5780_v55  ;;  %v2079_v30 = vpop.f32.mrb[35].mxu0  ;;  %v2157_v51 = vmax.f32 %v2085_v24, 0.0 }
 0x480   : > { %v2080_v60 = vadd.f32 %v5780_v55, %v2079_v30  ;;  %v2155_v25 = vmax.f32 %v2077_v62, 0.0 }
 0x481   : > { %v2158_v9 = vmax.f32 %v2088_v53, 0.0 }
 0x482   : > { %v2156_v1 = vmax.f32 %v2080_v60, 0.0 }
 0x483   : > { %v5939_v27 = vpack.c.bf16 %v2158_v9, %v2157_v51 }
 0x484   : > { %v5941_v36 = vpack.c.bf16 %v2156_v1, %v2155_v25 }
 0x486   : > { %2750 = vmatmul.mubr.bf16.gmra.mrb[80].mxu1 %v5941_v36  ;;  %2943 = vmatmul.mubr.bf16.gmra.mrb[80].mxu0 %v5941_v36 }
 0x487   : > { %2759 = vmatprep.mubr.bf16.mxu1 %v4903_v7  ;;  %2952 = vmatprep.mubr.bf16.mxu0 %v4903_v7 }
 0x48e   : > { %2760 = vmatmul.mubr.bf16.gmra.mrb[84].mxu1 %v5939_v27  ;;  %2953 = vmatmul.mubr.bf16.gmra.mrb[84].mxu0 %v5939_v27 }
 0x48f   : > { %2769 = vmatprep.mubr.bf16.mxu1 %v4903_v7  ;;  %2962 = vmatprep.mubr.bf16.mxu0 %v4903_v7 }
 0x49d   : > { %v4463_v5 = vpop.f32.mrb[36].mxu0 }
 0x49e   : > { %v2101_v6 = vadd.f32 %v4463_v5, %v5780_v55  ;;  %v2092_v34 = vpop.f32.mrb[37].mxu0 }
 0x49f   : > { %v2093_v10 = vadd.f32 %v5780_v55, %v2092_v34  ;;  %v4464_v31 = vpop.f32.mrb[38].mxu0 }
 0x4a0   : > { %v2104_v11 = vadd.f32 %v4464_v31, %v5780_v55  ;;  %v2095_v12 = vpop.f32.mrb[39].mxu0  ;;  %v2161_v13 = vmax.f32 %v2101_v6, 0.0 }
 0x4a1   : > { %v2096_v8 = vadd.f32 %v5780_v55, %v2095_v12  ;;  %v2159_v29 = vmax.f32 %v2093_v10, 0.0 }
 0x4a2   : > { %v2162_v14 = vmax.f32 %v2104_v11, 0.0 }
 0x4a3   : > { %v2160_v40 = vmax.f32 %v2096_v8, 0.0 }
 0x4a4   : > { %v5955_v57 = vpack.c.bf16 %v2162_v14, %v2161_v13 }
 0x4a5   : > { %v5957_v15 = vpack.c.bf16 %v2160_v40, %v2159_v29 }
 0x4a7   : > { %2770 = vmatmul.mubr.bf16.gmra.mrb[88].mxu1 %v5957_v15  ;;  %2963 = vmatmul.mubr.bf16.gmra.mrb[88].mxu0 %v5957_v15 }
 0x4a8   : > { %2779 = vmatprep.mubr.bf16.mxu1 %v4903_v7  ;;  %2972 = vmatprep.mubr.bf16.mxu0 %v4903_v7 }
 0x4af   : > { %2780 = vmatmul.mubr.bf16.gmra.mrb[92].mxu1 %v5955_v57  ;;  %2973 = vmatmul.mubr.bf16.gmra.mrb[92].mxu0 %v5955_v57 }
 0x4b0   : > { %2789 = vmatprep.mubr.bf16.mxu1 %v4903_v7  ;;  %2982 = vmatprep.mubr.bf16.mxu0 %v4903_v7 }
 0x4c2   : > { %v4467_v17 = vpop.f32.mrb[40].mxu0 }
 0x4c3   : > { %v2117_v43 = vadd.f32 %v4467_v17, %v5780_v55  ;;  %v2108_v18 = vpop.f32.mrb[41].mxu0 }
 0x4c4   : > { %v2109_v21 = vadd.f32 %v5780_v55, %v2108_v18  ;;  %v4468_v22 = vpop.f32.mrb[42].mxu0 }
 0x4c5   : > { %v2120_v20 = vadd.f32 %v4468_v22, %v5780_v55  ;;  %v2111_v49 = vpop.f32.mrb[43].mxu0  ;;  %v2165_v32 = vmax.f32 %v2117_v43, 0.0 }
 0x4c6   : > { %v2112_v23 = vadd.f32 %v5780_v55, %v2111_v49  ;;  %v2163_v16 = vmax.f32 %v2109_v21, 0.0 }
 0x4c7   : > { %v2166_v35 = vmax.f32 %v2120_v20, 0.0 }
 0x4c8   : > { %v2164_v0 = vmax.f32 %v2112_v23, 0.0 }
 0x4c9   : > { %v5971_v37 = vpack.c.bf16 %v2166_v35, %v2165_v32 }
 0x4ca   : > { %v5973_v39 = vpack.c.bf16 %v2164_v0, %v2163_v16 }
 0x4cc   : > { %2790 = vmatmul.mubr.bf16.gmra.mrb[96].mxu1 %v5973_v39  ;;  %2983 = vmatmul.mubr.bf16.gmra.mrb[96].mxu0 %v5973_v39 }
 0x4cd   : > { %2799 = vmatprep.mubr.bf16.mxu1 %v4903_v7  ;;  %2992 = vmatprep.mubr.bf16.mxu0 %v4903_v7 }
 0x4d4   : > { %2800 = vmatmul.mubr.bf16.gmra.mrb[100].mxu1 %v5971_v37  ;;  %2993 = vmatmul.mubr.bf16.gmra.mrb[100].mxu0 %v5971_v37 }
 0x4d5   : > { %2809 = vmatprep.mubr.bf16.mxu1 %v4903_v7  ;;  %3002 = vmatprep.mubr.bf16.mxu0 %v4903_v7 }
 0x4e3   : > { %v4471_v28 = vpop.f32.mrb[44].mxu0 }
 0x4e4   : > { %v2133_v38 = vadd.f32 %v4471_v28, %v5780_v55  ;;  %v2124_v46 = vpop.f32.mrb[45].mxu0 }
 0x4e5   : > { %v2125_v2 = vadd.f32 %v5780_v55, %v2124_v46  ;;  %v4472_v50 = vpop.f32.mrb[46].mxu0 }
 0x4e6   : > { %v2136_v42 = vadd.f32 %v4472_v50, %v5780_v55  ;;  %v2127_v54 = vpop.f32.mrb[47].mxu0  ;;  %v2169_v19 = vmax.f32 %v2133_v38, 0.0 }
 0x4e7   : > { %v2128_v52 = vadd.f32 %v5780_v55, %v2127_v54  ;;  %v2167_v61 = vmax.f32 %v2125_v2, 0.0 }
 0x4e8   : > { %v2170_v24 = vmax.f32 %v2136_v42, 0.0 }
 0x4e9   : > { %v2168_v62 = vmax.f32 %v2128_v52, 0.0 }
 0x4ea   : > { %v5987_v59 = vpack.c.bf16 %v2170_v24, %v2169_v19  ;;  %v2671_v53 = vpop.f32.mrb[48].mxu1 }
 0x4eb   : > { %v5989_v30 = vpack.c.bf16 %v2168_v62, %v2167_v61  ;;  %v2673_v60 = vpop.f32.mrb[49].mxu1  ;;  %v2864_v51 = vpop.f32.mrb[48].mxu0 }
 0x4ec   : > { %v2675_v9 = vpop.f32.mrb[50].mxu1  ;;  %v2866_v25 = vpop.f32.mrb[49].mxu0 }
 0x4ed   : > { %v3409_v1 = vmax.f32 %v2671_v53, %v2675_v9  ;;  %v2677_v5 = vpop.f32.mrb[51].mxu1  ;;  %2810 = vmatmul.mubr.bf16.gmra.mrb[104].mxu1 %v5989_v30  ;;  %v2868_v6 = vpop.f32.mrb[50].mxu0  ;;  %3003 = vmatmul.mubr.bf16.gmra.mrb[104].mxu0 %v5989_v30 }
 0x4ee   : > { %v3430_v55 = vmax.f32 %v2673_v60, %v2677_v5  ;;  %v3451_v34 = vmax.f32 %v2864_v51, %v2868_v6  ;;  %v2870_v10 = vpop.f32.mrb[51].mxu0  ;;  %2819 = vmatprep.mubr.bf16.mxu1 %v4903_v7  ;;  %3012 = vmatprep.mubr.bf16.mxu0 %v4903_v7 }
 0x4ef   : > { %v3472_v31 = vmax.f32 %v2866_v25, %v2870_v10 }
 0x4f2   : > { %v2681_v11 = vpop.f32.mrb[52].mxu1 }
 0x4f3   : > { %v3410_v12 = vmax.f32 %v3409_v1, %v2681_v11  ;;  %v2683_v8 = vpop.f32.mrb[53].mxu1  ;;  %v2874_v13 = vpop.f32.mrb[52].mxu0 }
 0x4f4   : > { %v3431_v14 = vmax.f32 %v3430_v55, %v2683_v8  ;;  %v3452_v29 = vmax.f32 %v3451_v34, %v2874_v13  ;;  %v2685_v40 = vpop.f32.mrb[54].mxu1  ;;  %v2876_v17 = vpop.f32.mrb[53].mxu0 }
 0x4f5   : > { %v3411_v43 = vmax.f32 %v3410_v12, %v2685_v40  ;;  %v3473_v18 = vmax.f32 %v3472_v31, %v2876_v17  ;;  %v2687_v21 = vpop.f32.mrb[55].mxu1  ;;  %2820 = vmatmul.mubr.bf16.gmra.mrb[108].mxu1 %v5987_v59  ;;  %v2878_v22 = vpop.f32.mrb[54].mxu0  ;;  %3013 = vmatmul.mubr.bf16.gmra.mrb[108].mxu0 %v5987_v59 }
 0x4f6   : > { %v3432_v20 = vmax.f32 %v3431_v14, %v2687_v21  ;;  %v3453_v49 = vmax.f32 %v3452_v29, %v2878_v22  ;;  %v2880_v23 = vpop.f32.mrb[55].mxu0  ;;  %3055 = vmatprep.mubr.bf16.mxu1 %v4903_v7  ;;  %3248 = vmatprep.mubr.bf16.mxu0 %v4903_v7 }
 0x4f7   : > { %v3474_v32 = vmax.f32 %v3473_v18, %v2880_v23 }
 0x4fa   : > { %v2691_v35 = vpop.f32.mrb[56].mxu1 }
 0x4fb   : > { %v3412_v16 = vmax.f32 %v3411_v43, %v2691_v35  ;;  %v2693_v0 = vpop.f32.mrb[57].mxu1  ;;  %v2884_v28 = vpop.f32.mrb[56].mxu0 }
 0x4fc   : > { %v3433_v38 = vmax.f32 %v3432_v20, %v2693_v0  ;;  %v3454_v46 = vmax.f32 %v3453_v49, %v2884_v28  ;;  %v2695_v2 = vpop.f32.mrb[58].mxu1  ;;  %v2886_v50 = vpop.f32.mrb[57].mxu0 }
 0x4fd   : > { %v3413_v42 = vmax.f32 %v3412_v16, %v2695_v2  ;;  %v3475_v54 = vmax.f32 %v3474_v32, %v2886_v50  ;;  %v2697_v52 = vpop.f32.mrb[59].mxu1  ;;  %v2888_v19 = vpop.f32.mrb[58].mxu0  ;;  %3056 = vmatmul.mubr.bf16.vlgmr.msra.gmra.mrb[112].mxu1 %v5803_v58  ;;  %3249 = vmatmul.mubr.bf16.vlgmr.msra.gmra.mrb[112].mxu0 %v5803_v58 }
 0x4fe   : > { %v3434_v24 = vmax.f32 %v3433_v38, %v2697_v52  ;;  %v3455_v61 = vmax.f32 %v3454_v46, %v2888_v19  ;;  %v2890_v62 = vpop.f32.mrb[59].mxu0  ;;  %3065 = vmatprep.mubr.bf16.mxu1 %v4903_v7  ;;  %3258 = vmatprep.mubr.bf16.mxu0 %v4903_v7 }
 0x4ff   : > { %v3476_v53 = vmax.f32 %v3475_v54, %v2890_v62 }
 0x502   : > { %v2701_v60 = vpop.f32.mrb[60].mxu1 }
 0x503   : > { %v3414_v51 = vmax.f32 %v3413_v42, %v2701_v60  ;;  %v2703_v9 = vpop.f32.mrb[61].mxu1  ;;  %v2894_v25 = vpop.f32.mrb[60].mxu0 }
 0x504   : > { %v3435_v1 = vmax.f32 %v3434_v24, %v2703_v9  ;;  %v3456_v5 = vmax.f32 %v3455_v61, %v2894_v25  ;;  %v2705_v6 = vpop.f32.mrb[62].mxu1  ;;  %v2896_v55 = vpop.f32.mrb[61].mxu0 }
 0x505   : > { %v3415_v34 = vmax.f32 %v3414_v51, %v2705_v6  ;;  %v3477_v10 = vmax.f32 %v3476_v53, %v2896_v55  ;;  %v2707_v31 = vpop.f32.mrb[63].mxu1  ;;  %v2898_v58 = vpop.f32.mrb[62].mxu0  ;;  %3066 = vmatmul.mubr.bf16.gmra.mrb[116].mxu1 %v5795_v3  ;;  %3259 = vmatmul.mubr.bf16.gmra.mrb[116].mxu0 %v5795_v3 }
 0x506   : > { %v3436_v11 = vmax.f32 %v3435_v1, %v2707_v31  ;;  %v3457_v12 = vmax.f32 %v3456_v5, %v2898_v58  ;;  %v2900_v8 = vpop.f32.mrb[63].mxu0  ;;  %3075 = vmatprep.mubr.bf16.mxu1 %v4903_v7  ;;  %3268 = vmatprep.mubr.bf16.mxu0 %v4903_v7 }
 0x507   : > { %v3478_v13 = vmax.f32 %v3477_v10, %v2900_v8 }
 0x50d   : > { %3076 = vmatmul.mubr.bf16.gmra.mrb[120].mxu1 %v5829_v33  ;;  %3269 = vmatmul.mubr.bf16.gmra.mrb[120].mxu0 %v5829_v33 }
 0x50e   : > { %3085 = vmatprep.mubr.bf16.mxu1 %v4903_v7  ;;  %3278 = vmatprep.mubr.bf16.mxu0 %v4903_v7 }
 0x513   : > { %v2711_v14 = vpop.f32.mrb[64].mxu1  ;;  %v2904_v29 = vpop.f32.mrb[64].mxu0 }
 0x514   : > { %v3416_v40 = vmax.f32 %v3415_v34, %v2711_v14  ;;  %v3458_v3 = vmax.f32 %v3457_v12, %v2904_v29  ;;  %v2713_v17 = vpop.f32.mrb[65].mxu1  ;;  %v2906_v43 = vpop.f32.mrb[65].mxu0 }
 0x515   : > { %v3437_v18 = vmax.f32 %v3436_v11, %v2713_v17  ;;  %v3479_v21 = vmax.f32 %v3478_v13, %v2906_v43  ;;  %v2715_v22 = vpop.f32.mrb[66].mxu1  ;;  %v2908_v20 = vpop.f32.mrb[66].mxu0  ;;  %3086 = vmatmul.mubr.bf16.gmra.mrb[124].mxu1 %v5827_v26  ;;  %3279 = vmatmul.mubr.bf16.gmra.mrb[124].mxu0 %v5827_v26 }
 0x516   : > { %v3417_v49 = vmax.f32 %v3416_v40, %v2715_v22  ;;  %v3459_v33 = vmax.f32 %v3458_v3, %v2908_v20  ;;  %v2717_v23 = vpop.f32.mrb[67].mxu1  ;;  %v2910_v32 = vpop.f32.mrb[67].mxu0  ;;  %3095 = vmatprep.mubr.bf16.mxu1 %v4903_v7  ;;  %3288 = vmatprep.mubr.bf16.mxu0 %v4903_v7 }
 0x517   : > { %v3438_v35 = vmax.f32 %v3437_v18, %v2717_v23  ;;  %v3480_v16 = vmax.f32 %v3479_v21, %v2910_v32 }
 0x51b   : > { %v2721_v0 = vpop.f32.mrb[68].mxu1  ;;  %v2914_v28 = vpop.f32.mrb[68].mxu0 }
 0x51c   : > { %v3418_v38 = vmax.f32 %v3417_v49, %v2721_v0  ;;  %v3460_v46 = vmax.f32 %v3459_v33, %v2914_v28  ;;  %v2723_v2 = vpop.f32.mrb[69].mxu1  ;;  %v2916_v50 = vpop.f32.mrb[69].mxu0 }
 0x51d   : > { %v3439_v42 = vmax.f32 %v3438_v35, %v2723_v2  ;;  %v3481_v54 = vmax.f32 %v3480_v16, %v2916_v50  ;;  %v2725_v52 = vpop.f32.mrb[70].mxu1  ;;  %v2918_v26 = vpop.f32.mrb[70].mxu0  ;;  %3096 = vmatmul.mubr.bf16.gmra.mrb[128].mxu1 %v5873_v56  ;;  %3289 = vmatmul.mubr.bf16.gmra.mrb[128].mxu0 %v5873_v56 }
 0x51e   : > { %v3419_v19 = vmax.f32 %v3418_v38, %v2725_v52  ;;  %v3461_v24 = vmax.f32 %v3460_v46, %v2918_v26  ;;  %v2727_v61 = vpop.f32.mrb[71].mxu1  ;;  %v2920_v62 = vpop.f32.mrb[71].mxu0  ;;  %3105 = vmatprep.mubr.bf16.mxu1 %v4903_v7  ;;  %3298 = vmatprep.mubr.bf16.mxu0 %v4903_v7  ;;  %v4904_v46 = vmov 1983009808  }
 0x51f   : > { %v3440_v53 = vmax.f32 %v3439_v42, %v2727_v61  ;;  %v3482_v60 = vmax.f32 %v3481_v54, %v2920_v62  ;;  %v3766_v2 = vunpack.c.l.s4 %v4904_v46 }
 0x521   : > { %v3767_v62 = vunpack.c.0.s8 %v3766_v2 }
 0x525   : > { %3106 = vmatmul.mubr.bf16.gmra.mrb[132].mxu1 %v5871_v63  ;;  %3299 = vmatmul.mubr.bf16.gmra.mrb[132].mxu0 %v5871_v63 }
 0x526   : > { %3115 = vmatprep.mubr.bf16.mxu1 %v4903_v7  ;;  %3308 = vmatprep.mubr.bf16.mxu0 %v4903_v7 }
 0x52d   : > { %3116 = vmatmul.mubr.bf16.gmra.mrb[136].mxu1 %v5913_v4  ;;  %3309 = vmatmul.mubr.bf16.gmra.mrb[136].mxu0 %v5913_v4 }
 0x52e   : > { %3125 = vmatprep.mubr.bf16.mxu1 %v4903_v7  ;;  %3318 = vmatprep.mubr.bf16.mxu0 %v4903_v7 }
 0x534   : > { %v2731_v56 = vpop.f32.mrb[72].mxu1  ;;  %v2924_v51 = vpop.f32.mrb[72].mxu0 }
 0x535   : > { %v3420_v9 = vmax.f32 %v3419_v19, %v2731_v56  ;;  %v3462_v25 = vmax.f32 %v3461_v24, %v2924_v51  ;;  %v2733_v1 = vpop.f32.mrb[73].mxu1  ;;  %v2926_v5 = vpop.f32.mrb[73].mxu0  ;;  %3126 = vmatmul.mubr.bf16.gmra.mrb[140].mxu1 %v5911_v44  ;;  %3319 = vmatmul.mubr.bf16.gmra.mrb[140].mxu0 %v5911_v44 }
 0x536   : > { %v3441_v63 = vmax.f32 %v3440_v53, %v2733_v1  ;;  %v3483_v6 = vmax.f32 %v3482_v60, %v2926_v5  ;;  %v2735_v55 = vpop.f32.mrb[74].mxu1  ;;  %v2928_v34 = vpop.f32.mrb[74].mxu0  ;;  %3135 = vmatprep.mubr.bf16.mxu1 %v4903_v7  ;;  %3328 = vmatprep.mubr.bf16.mxu0 %v4903_v7 }
 0x537   : > { %v3421_v4 = vmax.f32 %v3420_v9, %v2735_v55  ;;  %v3463_v10 = vmax.f32 %v3462_v25, %v2928_v34  ;;  %v2737_v31 = vpop.f32.mrb[75].mxu1  ;;  %v2930_v58 = vpop.f32.mrb[75].mxu0 }
 0x538   : > { %v3442_v11 = vmax.f32 %v3441_v63, %v2737_v31  ;;  %v3484_v12 = vmax.f32 %v3483_v6, %v2930_v58 }
 0x53c   : > { %v2741_v8 = vpop.f32.mrb[76].mxu1  ;;  %v2934_v13 = vpop.f32.mrb[76].mxu0 }
 0x53d   : > { %v3422_v14 = vmax.f32 %v3421_v4, %v2741_v8  ;;  %v3464_v29 = vmax.f32 %v3463_v10, %v2934_v13  ;;  %v2743_v40 = vpop.f32.mrb[77].mxu1  ;;  %v2936_v44 = vpop.f32.mrb[77].mxu0  ;;  %3136 = vmatmul.mubr.bf16.gmra.mrb[144].mxu1 %v5941_v36  ;;  %3329 = vmatmul.mubr.bf16.gmra.mrb[144].mxu0 %v5941_v36 }
 0x53e   : > { %v3443_v3 = vmax.f32 %v3442_v11, %v2743_v40  ;;  %v3485_v17 = vmax.f32 %v3484_v12, %v2936_v44  ;;  %v2745_v43 = vpop.f32.mrb[78].mxu1  ;;  %v2938_v18 = vpop.f32.mrb[78].mxu0  ;;  %3145 = vmatprep.mubr.bf16.mxu1 %v4903_v7  ;;  %3338 = vmatprep.mubr.bf16.mxu0 %v4903_v7 }
 0x53f   : > { %v3423_v21 = vmax.f32 %v3422_v14, %v2745_v43  ;;  %v3465_v22 = vmax.f32 %v3464_v29, %v2938_v18  ;;  %v2747_v20 = vpop.f32.mrb[79].mxu1  ;;  %v2940_v49 = vpop.f32.mrb[79].mxu0 }
 0x540   : > { %v3444_v33 = vmax.f32 %v3443_v3, %v2747_v20  ;;  %v3486_v23 = vmax.f32 %v3485_v17, %v2940_v49 }
 0x541   : > { %v3424_v32 = vrot.slane %v3423_v21, 4  ;;  %v3466_v35 = vrot.slane %v3465_v22, 4 }
 0x542   : > { %v3445_v16 = vrot.slane %v3444_v33, 4  ;;  %v3487_v0 = vrot.slane %v3486_v23, 4 }
 0x543   : > { %v3425_v28 = vmax.f32 %v3423_v21, %v3424_v32  ;;  %v3467_v36 = vmax.f32 %v3465_v22, %v3466_v35 }
 0x544   : > { %v3446_v38 = vmax.f32 %v3444_v33, %v3445_v16  ;;  %v3488_v50 = vmax.f32 %v3486_v23, %v3487_v0 }
 0x545   : > { %v3426_v42 = vrot.slane %v3425_v28, 2  ;;  %v3468_v54 = vrot.slane %v3467_v36, 2  ;;  %3146 = vmatmul.mubr.bf16.gmra.mrb[148].mxu1 %v5939_v27  ;;  %3339 = vmatmul.mubr.bf16.gmra.mrb[148].mxu0 %v5939_v27  ;;  %v6040_v27 = vsub.s32 %v3767_v62, %v5298_v41 }
 0x546   : > { %v3447_v52 = vrot.slane %v3446_v38, 2  ;;  %v3489_v26 = vrot.slane %v3488_v50, 2  ;;  %3155 = vmatprep.mubr.bf16.mxu1 %v4903_v7  ;;  %3348 = vmatprep.mubr.bf16.mxu0 %v4903_v7 }
 0x547   : > { %v3427_v19 = vmax.f32 %v3425_v28, %v3426_v42  ;;  %v3469_v24 = vmax.f32 %v3467_v36, %v3468_v54 }
 0x548   : > { %v3448_v61 = vmax.f32 %v3446_v38, %v3447_v52  ;;  %v3490_v53 = vmax.f32 %v3488_v50, %v3489_v26 }
 0x549   : > { %v3428_v60 = vrot.slane %v3427_v19, 1  ;;  %v3470_v56 = vrot.slane %v3469_v24, 1 }
 0x54a   : > { %v3449_v51 = vrot.slane %v3448_v61, 1  ;;  %v3491_v9 = vrot.slane %v3490_v53, 1 }
 0x54b   : > { %v3429_v25 = vmax.f32 %v3427_v19, %v3428_v60  ;;  %v3471_v1 = vmax.f32 %v3469_v24, %v3470_v56 }
 0x54c   : > { %v3450_v5 = vmax.f32 %v3448_v61, %v3449_v51  ;;  %v3492_v63 = vmax.f32 %v3490_v53, %v3491_v9 }
 0x54d   : > { %3156 = vmatmul.mubr.bf16.gmra.mrb[152].mxu1 %v5957_v15  ;;  %3349 = vmatmul.mubr.bf16.gmra.mrb[152].mxu0 %v5957_v15 }
 0x54e   : > { %v3763_v6 = vcombine.low %v3429_v25, %v3450_v5  ;;  %v3764_v55 = vcombine.low %v3471_v1, %v3492_v63  ;;  %3165 = vmatprep.mubr.bf16.mxu1 %v4903_v7  ;;  %3358 = vmatprep.mubr.bf16.mxu0 %v4903_v7 }
 0x550   : > { %v6047_v34 = vrot.slane %v3763_v6, %v6040_v27  ;;  %v6050_v4 = vrot.slane %v3764_v55, %v6040_v27 }
 0x552   : > { %v3779_v10 = vcombine.low %v6047_v34, %v6050_v4 }
 0x555   : > { %3166 = vmatmul.mubr.bf16.gmra.mrb[156].mxu1 %v5955_v57  ;;  %3359 = vmatmul.mubr.bf16.gmra.mrb[156].mxu0 %v5955_v57 }
 0x556   : > { %3175 = vmatprep.mubr.bf16.mxu1 %v4903_v7  ;;  %3368 = vmatprep.mubr.bf16.mxu0 %v4903_v7 }
 0x559   : > { %v2751_v15 = vpop.f32.mrb[80].mxu1  ;;  %v2944_v31 = vpop.f32.mrb[80].mxu0 }
 0x55a   : > { %v2753_v58 = vpop.f32.mrb[81].mxu1  ;;  %v2946_v11 = vpop.f32.mrb[81].mxu0 }
 0x55b   : > { %v2755_v12 = vpop.f32.mrb[82].mxu1  ;;  %v2948_v8 = vpop.f32.mrb[82].mxu0 }
 0x55c   : > { %v3577_v13 = vmax.f32 %v2751_v15, %v2755_v12  ;;  %v3619_v14 = vmax.f32 %v2944_v31, %v2948_v8  ;;  %v2757_v29 = vpop.f32.mrb[83].mxu1  ;;  %v2950_v40 = vpop.f32.mrb[83].mxu0 }
 0x55d   : > { %v3598_v44 = vmax.f32 %v2753_v58, %v2757_v29  ;;  %v3640_v3 = vmax.f32 %v2946_v11, %v2950_v40  ;;  %3176 = vmatmul.mubr.bf16.gmra.mrb[160].mxu1 %v5973_v39  ;;  %3369 = vmatmul.mubr.bf16.gmra.mrb[160].mxu0 %v5973_v39 }
 0x55e   : > { %3185 = vmatprep.mubr.bf16.mxu1 %v4903_v7  ;;  %3378 = vmatprep.mubr.bf16.mxu0 %v4903_v7 }
 0x561   : > { %v2761_v57 = vpop.f32.mrb[84].mxu1  ;;  %v2954_v17 = vpop.f32.mrb[84].mxu0 }
 0x562   : > { %v3578_v43 = vmax.f32 %v3577_v13, %v2761_v57  ;;  %v3620_v18 = vmax.f32 %v3619_v14, %v2954_v17  ;;  %v2763_v21 = vpop.f32.mrb[85].mxu1  ;;  %v2956_v22 = vpop.f32.mrb[85].mxu0 }
 0x563   : > { %v3599_v20 = vmax.f32 %v3598_v44, %v2763_v21  ;;  %v3641_v49 = vmax.f32 %v3640_v3, %v2956_v22  ;;  %v2765_v33 = vpop.f32.mrb[86].mxu1  ;;  %v2958_v23 = vpop.f32.mrb[86].mxu0 }
 0x564   : > { %v3579_v32 = vmax.f32 %v3578_v43, %v2765_v33  ;;  %v3621_v35 = vmax.f32 %v3620_v18, %v2958_v23  ;;  %v2767_v16 = vpop.f32.mrb[87].mxu1  ;;  %v2960_v0 = vpop.f32.mrb[87].mxu0 }
 0x565   : > { %v3600_v28 = vmax.f32 %v3599_v20, %v2767_v16  ;;  %v3642_v39 = vmax.f32 %v3641_v49, %v2960_v0  ;;  %3186 = vmatmul.mubr.bf16.gmra.mrb[164].mxu1 %v5971_v37  ;;  %3379 = vmatmul.mubr.bf16.gmra.mrb[164].mxu0 %v5971_v37 }
 0x566   : > { %3195 = vmatprep.mubr.bf16.mxu1 %v4903_v7  ;;  %3388 = vmatprep.mubr.bf16.mxu0 %v4903_v7 }
 0x56d   : > { %3196 = vmatmul.mubr.bf16.gmra.mrb[168].mxu1 %v5989_v30  ;;  %3389 = vmatmul.mubr.bf16.gmra.mrb[168].mxu0 %v5989_v30 }
 0x56e   : > { %3205 = vmatprep.mubr.bf16.mxu1 %v4903_v7  ;;  %3398 = vmatprep.mubr.bf16.mxu0 %v4903_v7 }
 0x575   : > { %3206 = vmatmul.mubr.bf16.gmra.mrb[172].mxu1 %v5987_v59  ;;  %3399 = vmatmul.mubr.bf16.gmra.mrb[172].mxu0 %v5987_v59 }
 0x57a   : > { %v2771_v36 = vpop.f32.mrb[88].mxu1  ;;  %v2964_v38 = vpop.f32.mrb[88].mxu0 }
 0x57b   : > { %v3580_v46 = vmax.f32 %v3579_v32, %v2771_v36  ;;  %v3622_v37 = vmax.f32 %v3621_v35, %v2964_v38  ;;  %v2773_v2 = vpop.f32.mrb[89].mxu1  ;;  %v2966_v50 = vpop.f32.mrb[89].mxu0 }
 0x57c   : > { %v3601_v42 = vmax.f32 %v3600_v28, %v2773_v2  ;;  %v3643_v54 = vmax.f32 %v3642_v39, %v2966_v50  ;;  %v2775_v52 = vpop.f32.mrb[90].mxu1  ;;  %v2968_v26 = vpop.f32.mrb[90].mxu0 }
 0x57d   : > { %v3581_v19 = vmax.f32 %v3580_v46, %v2775_v52  ;;  %v3623_v30 = vmax.f32 %v3622_v37, %v2968_v26  ;;  %v2777_v24 = vpop.f32.mrb[91].mxu1  ;;  %v2970_v61 = vpop.f32.mrb[91].mxu0 }
 0x57e   : > { %v3602_v62 = vmax.f32 %v3601_v42, %v2777_v24  ;;  %v3644_v7 = vmax.f32 %v3643_v54, %v2970_v61 }
 0x582   : > { %v2781_v53 = vpop.f32.mrb[92].mxu1  ;;  %v2974_v60 = vpop.f32.mrb[92].mxu0 }
 0x583   : > { %v3582_v56 = vmax.f32 %v3581_v19, %v2781_v53  ;;  %v3624_v59 = vmax.f32 %v3623_v30, %v2974_v60  ;;  %v2783_v51 = vpop.f32.mrb[93].mxu1  ;;  %v2976_v9 = vpop.f32.mrb[93].mxu0 }
 0x584   : > { %v3603_v25 = vmax.f32 %v3602_v62, %v2783_v51  ;;  %v3645_v1 = vmax.f32 %v3644_v7, %v2976_v9  ;;  %v2785_v5 = vpop.f32.mrb[94].mxu1  ;;  %v2978_v63 = vpop.f32.mrb[94].mxu0 }
 0x585   : > { %v3583_v6 = vmax.f32 %v3582_v56, %v2785_v5  ;;  %v3625_v55 = vmax.f32 %v3624_v59, %v2978_v63  ;;  %v2787_v15 = vpop.f32.mrb[95].mxu1  ;;  %v2980_v31 = vpop.f32.mrb[95].mxu0 }
 0x586   : > { %v3604_v58 = vmax.f32 %v3603_v25, %v2787_v15  ;;  %v3646_v11 = vmax.f32 %v3645_v1, %v2980_v31 }
 0x59f   : > { %v2791_v12 = vpop.f32.mrb[96].mxu1  ;;  %v2984_v8 = vpop.f32.mrb[96].mxu0 }
 0x5a0   : > { %v3584_v13 = vmax.f32 %v3583_v6, %v2791_v12  ;;  %v3626_v14 = vmax.f32 %v3625_v55, %v2984_v8  ;;  %v2793_v29 = vpop.f32.mrb[97].mxu1  ;;  %v2986_v40 = vpop.f32.mrb[97].mxu0 }
 0x5a1   : > { %v3605_v44 = vmax.f32 %v3604_v58, %v2793_v29  ;;  %v3647_v3 = vmax.f32 %v3646_v11, %v2986_v40  ;;  %v2795_v57 = vpop.f32.mrb[98].mxu1  ;;  %v2988_v17 = vpop.f32.mrb[98].mxu0 }
 0x5a2   : > { %v3585_v43 = vmax.f32 %v3584_v13, %v2795_v57  ;;  %v3627_v18 = vmax.f32 %v3626_v14, %v2988_v17  ;;  %v2797_v21 = vpop.f32.mrb[99].mxu1  ;;  %v2990_v22 = vpop.f32.mrb[99].mxu0 }
 0x5a3   : > { %v3606_v20 = vmax.f32 %v3605_v44, %v2797_v21  ;;  %v3648_v49 = vmax.f32 %v3647_v3, %v2990_v22 }
 0x5a7   : > { %v2801_v33 = vpop.f32.mrb[100].mxu1  ;;  %v2994_v23 = vpop.f32.mrb[100].mxu0 }
 0x5a8   : > { %v3586_v32 = vmax.f32 %v3585_v43, %v2801_v33  ;;  %v3628_v35 = vmax.f32 %v3627_v18, %v2994_v23  ;;  %v2803_v16 = vpop.f32.mrb[101].mxu1  ;;  %v2996_v0 = vpop.f32.mrb[101].mxu0 }
 0x5a9   : > { %v3607_v28 = vmax.f32 %v3606_v20, %v2803_v16  ;;  %v3649_v39 = vmax.f32 %v3648_v49, %v2996_v0  ;;  %v2805_v36 = vpop.f32.mrb[102].mxu1  ;;  %v2998_v38 = vpop.f32.mrb[102].mxu0 }
 0x5aa   : > { %v3587_v46 = vmax.f32 %v3586_v32, %v2805_v36  ;;  %v3629_v37 = vmax.f32 %v3628_v35, %v2998_v38  ;;  %v2807_v2 = vpop.f32.mrb[103].mxu1  ;;  %v3000_v50 = vpop.f32.mrb[103].mxu0 }
 0x5ab   : > { %v3608_v42 = vmax.f32 %v3607_v28, %v2807_v2  ;;  %v3650_v54 = vmax.f32 %v3649_v39, %v3000_v50 }
 0x5c0   : > { %v2811_v52 = vpop.f32.mrb[104].mxu1  ;;  %v3004_v26 = vpop.f32.mrb[104].mxu0 }
 0x5c1   : > { %v3588_v19 = vmax.f32 %v3587_v46, %v2811_v52  ;;  %v3630_v30 = vmax.f32 %v3629_v37, %v3004_v26  ;;  %v2813_v24 = vpop.f32.mrb[105].mxu1  ;;  %v3006_v61 = vpop.f32.mrb[105].mxu0 }
 0x5c2   : > { %v3609_v62 = vmax.f32 %v3608_v42, %v2813_v24  ;;  %v3651_v7 = vmax.f32 %v3650_v54, %v3006_v61  ;;  %v2815_v53 = vpop.f32.mrb[106].mxu1  ;;  %v3008_v60 = vpop.f32.mrb[106].mxu0 }
 0x5c3   : > { %v3589_v56 = vmax.f32 %v3588_v19, %v2815_v53  ;;  %v3631_v59 = vmax.f32 %v3630_v30, %v3008_v60  ;;  %v2817_v51 = vpop.f32.mrb[107].mxu1  ;;  %v3010_v9 = vpop.f32.mrb[107].mxu0 }
 0x5c4   : > { %v3610_v25 = vmax.f32 %v3609_v62, %v2817_v51  ;;  %v3652_v1 = vmax.f32 %v3651_v7, %v3010_v9  ;;  %v1850_v24 = vpop.trf.xlu0  ;;  %v1810_v61 = vpop.trf.xlu1 }
 0x5c5   : > { %4191 = vst [vmem:[%s6075_s17 + $0x40] sm:$0xff] %v1850_v24  ;;  %1826 = vst [vmem:[%s6075_s17] sm:$0xff] %v1810_v61 }
 0x5c8   : > { %v2821_v5 = vpop.f32.mrb[108].mxu1  ;;  %v3014_v63 = vpop.f32.mrb[108].mxu0 }
 0x5c9   : > { %v3590_v6 = vmax.f32 %v3589_v56, %v2821_v5  ;;  %v3632_v55 = vmax.f32 %v3631_v59, %v3014_v63  ;;  %v2823_v15 = vpop.f32.mrb[109].mxu1  ;;  %v3016_v31 = vpop.f32.mrb[109].mxu0 }
 0x5ca   : > { %v3611_v58 = vmax.f32 %v3610_v25, %v2823_v15  ;;  %v3653_v11 = vmax.f32 %v3652_v1, %v3016_v31  ;;  %v2825_v12 = vpop.f32.mrb[110].mxu1  ;;  %v3018_v8 = vpop.f32.mrb[110].mxu0 }
 0x5cb   : > { %v3591_v13 = vmax.f32 %v3590_v6, %v2825_v12  ;;  %v3633_v14 = vmax.f32 %v3632_v55, %v3018_v8  ;;  %v2827_v29 = vpop.f32.mrb[111].mxu1  ;;  %v3020_v40 = vpop.f32.mrb[111].mxu0 }
 0x5cc   : > { %v3612_v44 = vmax.f32 %v3611_v58, %v2827_v29  ;;  %v3654_v3 = vmax.f32 %v3653_v11, %v3020_v40 }
 0x5cd   : > { %v3592_v57 = vrot.slane %v3591_v13, 4  ;;  %v3634_v17 = vrot.slane %v3633_v14, 4 }
 0x5ce   : > { %v3613_v43 = vrot.slane %v3612_v44, 4  ;;  %v3655_v18 = vrot.slane %v3654_v3, 4 }
 0x5cf   : > { %v3593_v21 = vmax.f32 %v3591_v13, %v3592_v57  ;;  %v3635_v22 = vmax.f32 %v3633_v14, %v3634_v17 }
 0x5d0   : > { %v3614_v20 = vmax.f32 %v3612_v44, %v3613_v43  ;;  %v3656_v49 = vmax.f32 %v3654_v3, %v3655_v18  ;;  %v3057_v33 = vpop.f32.mrb[112].mxu1  ;;  %v3250_v23 = vpop.f32.mrb[112].mxu0 }
 0x5d1   : > { %v3594_v32 = vrot.slane %v3593_v21, 2  ;;  %v3636_v35 = vrot.slane %v3635_v22, 2  ;;  %v3059_v16 = vpop.f32.mrb[113].mxu1  ;;  %v3252_v0 = vpop.f32.mrb[113].mxu0 }
 0x5d2   : > { %v3615_v28 = vrot.slane %v3614_v20, 2  ;;  %v3657_v39 = vrot.slane %v3656_v49, 2  ;;  %v3061_v36 = vpop.f32.mrb[114].mxu1  ;;  %v3254_v38 = vpop.f32.mrb[114].mxu0 }
 0x5d3   : > { %v3595_v46 = vmax.f32 %v3593_v21, %v3594_v32  ;;  %v3637_v37 = vmax.f32 %v3635_v22, %v3636_v35  ;;  %v3493_v2 = vmax.f32 %v3057_v33, %v3061_v36  ;;  %v3535_v50 = vmax.f32 %v3250_v23, %v3254_v38  ;;  %v3063_v42 = vpop.f32.mrb[115].mxu1  ;;  %v3256_v54 = vpop.f32.mrb[115].mxu0 }
 0x5d4   : > { %v3616_v52 = vmax.f32 %v3614_v20, %v3615_v28  ;;  %v3658_v26 = vmax.f32 %v3656_v49, %v3657_v39  ;;  %v3514_v19 = vmax.f32 %v3059_v16, %v3063_v42  ;;  %v3556_v30 = vmax.f32 %v3252_v0, %v3256_v54  ;;  %v1851_v43 = vpop.trf.xlu0  ;;  %v1811_v18 = vpop.trf.xlu1 }
 0x5d5   : > { %v3596_v62 = vrot.slane %v3595_v46, 1  ;;  %v3638_v7 = vrot.slane %v3637_v37, 1  ;;  %4192 = vst [vmem:[%s6075_s17 + $0x48] sm:$0xff] %v1851_v43  ;;  %1827 = vst [vmem:[%s6075_s17 + $0x8] sm:$0xff] %v1811_v18 }
 0x5d6   : > { %v3617_v53 = vrot.slane %v3616_v52, 1  ;;  %v3659_v60 = vrot.slane %v3658_v26, 1 }
 0x5d7   : > { %v3597_v56 = vmax.f32 %v3595_v46, %v3596_v62  ;;  %v3639_v59 = vmax.f32 %v3637_v37, %v3638_v7 }
 0x5d8   : > { %v3618_v51 = vmax.f32 %v3616_v52, %v3617_v53  ;;  %v3660_v9 = vmax.f32 %v3658_v26, %v3659_v60  ;;  %v3067_v25 = vpop.f32.mrb[116].mxu1  ;;  %v3260_v1 = vpop.f32.mrb[116].mxu0 }
 0x5d9   : > { %v3494_v5 = vmax.f32 %v3493_v2, %v3067_v25  ;;  %v3536_v63 = vmax.f32 %v3535_v50, %v3260_v1  ;;  %v3069_v6 = vpop.f32.mrb[117].mxu1  ;;  %v3262_v55 = vpop.f32.mrb[117].mxu0 }
 0x5da   : > { %v3797_v15 = vcombine.low %v3597_v56, %v3618_v51  ;;  %v3798_v31 = vcombine.low %v3639_v59, %v3660_v9  ;;  %v3515_v58 = vmax.f32 %v3514_v19, %v3069_v6  ;;  %v3557_v11 = vmax.f32 %v3556_v30, %v3262_v55  ;;  %v3071_v12 = vpop.f32.mrb[118].mxu1  ;;  %v3264_v8 = vpop.f32.mrb[118].mxu0 }
 0x5db   : > { %v3495_v13 = vmax.f32 %v3494_v5, %v3071_v12  ;;  %v3537_v14 = vmax.f32 %v3536_v63, %v3264_v8  ;;  %v3073_v29 = vpop.f32.mrb[119].mxu1  ;;  %v3266_v40 = vpop.f32.mrb[119].mxu0 }
 0x5dc   : > { %v3805_v44 = vrot.slane %v3797_v15, %v6040_v27  ;;  %v3812_v3 = vrot.slane %v3798_v31, %v6040_v27  ;;  %v3516_v57 = vmax.f32 %v3515_v58, %v3073_v29  ;;  %v3558_v17 = vmax.f32 %v3557_v11, %v3266_v40  ;;  %v1852_v34 = vpop.trf.xlu0  ;;  %v1812_v4 = vpop.trf.xlu1 }
 0x5dd   : > { %4193 = vst [vmem:[%s6075_s17 + $0x50] sm:$0xff] %v1852_v34  ;;  %1828 = vst [vmem:[%s6075_s17 + $0x10] sm:$0xff] %v1812_v4 }
 0x5de   : > { %v3813_v21 = vcombine.low %v3805_v44, %v3812_v3 }
 0x5e0   : > { %v3835_v22 = vrot.slane %v3813_v21, 7  ;;  %v3077_v20 = vpop.f32.mrb[120].mxu1  ;;  %v3270_v49 = vpop.f32.mrb[120].mxu0 }
 0x5e1   : > { %v3496_v33 = vmax.f32 %v3495_v13, %v3077_v20  ;;  %v3538_v23 = vmax.f32 %v3537_v14, %v3270_v49  ;;  %v3079_v32 = vpop.f32.mrb[121].mxu1  ;;  %v3272_v35 = vpop.f32.mrb[121].mxu0 }
 0x5e2   : > { %v3837_v16 = vsel %vm3836_vm1, %v3835_v22, %v3779_v10  ;;  %v3517_v0 = vmax.f32 %v3516_v57, %v3079_v32  ;;  %v3559_v28 = vmax.f32 %v3558_v17, %v3272_v35  ;;  %v3081_v39 = vpop.f32.mrb[122].mxu1  ;;  %v3274_v36 = vpop.f32.mrb[122].mxu0 }
 0x5e3   : > { %v3839_v38 = vsel %vm3838_vm2, %v3835_v22, %v3837_v16  ;;  %v3497_v46 = vmax.f32 %v3496_v33, %v3081_v39  ;;  %v3539_v37 = vmax.f32 %v3538_v23, %v3274_v36  ;;  %v3083_v2 = vpop.f32.mrb[123].mxu1  ;;  %v3276_v50 = vpop.f32.mrb[123].mxu0 }
 0x5e4   : > { %v3841_v42 = vsel %vm3840_vm3, %v3835_v22, %v3839_v38  ;;  %v3518_v54 = vmax.f32 %v3517_v0, %v3083_v2  ;;  %v3560_v52 = vmax.f32 %v3559_v28, %v3276_v50  ;;  %v1853_v63 = vpop.trf.xlu0  ;;  %v1813_v6 = vpop.trf.xlu1 }
 0x5e5   : > { %v6090_v10 = vsel %vm3842_vm4, %v3835_v22, %v3841_v42  ;;  %4194 = vst [vmem:[%s6075_s17 + $0x58] sm:$0xff] %v1853_v63  ;;  %1829 = vst [vmem:[%s6075_s17 + $0x18] sm:$0xff] %v1813_v6 }
 0x5e8   : > { %v3087_v26 = vpop.f32.mrb[124].mxu1  ;;  %v3280_v19 = vpop.f32.mrb[124].mxu0 }
 0x5e9   : > { %v3498_v30 = vmax.f32 %v3497_v46, %v3087_v26  ;;  %v3540_v24 = vmax.f32 %v3539_v37, %v3280_v19  ;;  %v3089_v61 = vpop.f32.mrb[125].mxu1  ;;  %v3282_v62 = vpop.f32.mrb[125].mxu0 }
 0x5ea   : > { %v3519_v7 = vmax.f32 %v3518_v54, %v3089_v61  ;;  %v3561_v53 = vmax.f32 %v3560_v52, %v3282_v62  ;;  %v3091_v60 = vpop.f32.mrb[126].mxu1  ;;  %v3284_v56 = vpop.f32.mrb[126].mxu0 }
 0x5eb   : > { %v3499_v59 = vmax.f32 %v3498_v30, %v3091_v60  ;;  %v3541_v51 = vmax.f32 %v3540_v24, %v3284_v56  ;;  %v3093_v9 = vpop.f32.mrb[127].mxu1  ;;  %v3286_v25 = vpop.f32.mrb[127].mxu0 }
 0x5ec   : > { %v3520_v1 = vmax.f32 %v3519_v7, %v3093_v9  ;;  %v3562_v5 = vmax.f32 %v3561_v53, %v3286_v25  ;;  %v1854_v18 = vpop.trf.xlu0  ;;  %v1814_v21 = vpop.trf.xlu1 }
 0x5ed   : > { %4195 = vst [vmem:[%s6075_s17 + $0x60] sm:$0xff] %v1854_v18  ;;  %1830 = vst [vmem:[%s6075_s17 + $0x20] sm:$0xff] %v1814_v21 }
 0x5f0   : > { %v3097_v55 = vpop.f32.mrb[128].mxu1  ;;  %v3290_v15 = vpop.f32.mrb[128].mxu0 }
 0x5f1   : > { %v3500_v31 = vmax.f32 %v3499_v59, %v3097_v55  ;;  %v3542_v58 = vmax.f32 %v3541_v51, %v3290_v15  ;;  %v3099_v11 = vpop.f32.mrb[129].mxu1  ;;  %v3292_v12 = vpop.f32.mrb[129].mxu0 }
 0x5f2   : > { %v3521_v8 = vmax.f32 %v3520_v1, %v3099_v11  ;;  %v3563_v13 = vmax.f32 %v3562_v5, %v3292_v12  ;;  %v3101_v14 = vpop.f32.mrb[130].mxu1  ;;  %v3294_v29 = vpop.f32.mrb[130].mxu0 }
 0x5f3   : > { %v3501_v40 = vmax.f32 %v3500_v31, %v3101_v14  ;;  %v3543_v44 = vmax.f32 %v3542_v58, %v3294_v29  ;;  %v3103_v3 = vpop.f32.mrb[131].mxu1  ;;  %v3296_v57 = vpop.f32.mrb[131].mxu0 }
 0x5f4   : > { %v3522_v17 = vmax.f32 %v3521_v8, %v3103_v3  ;;  %v3564_v43 = vmax.f32 %v3563_v13, %v3296_v57  ;;  %v1855_v50 = vpop.trf.xlu0  ;;  %v1815_v42 = vpop.trf.xlu1 }
 0x5f5   : > { %4196 = vst [vmem:[%s6075_s17 + $0x68] sm:$0xff] %v1855_v50  ;;  %1831 = vst [vmem:[%s6075_s17 + $0x28] sm:$0xff] %v1815_v42 }
 0x5f8   : > { %v3107_v22 = vpop.f32.mrb[132].mxu1  ;;  %v3300_v20 = vpop.f32.mrb[132].mxu0 }
 0x5f9   : > { %v3502_v49 = vmax.f32 %v3501_v40, %v3107_v22  ;;  %v3544_v33 = vmax.f32 %v3543_v44, %v3300_v20  ;;  %v3109_v23 = vpop.f32.mrb[133].mxu1  ;;  %v3302_v32 = vpop.f32.mrb[133].mxu0 }
 0x5fa   : > { %v3523_v35 = vmax.f32 %v3522_v17, %v3109_v23  ;;  %v3565_v16 = vmax.f32 %v3564_v43, %v3302_v32  ;;  %v3111_v0 = vpop.f32.mrb[134].mxu1  ;;  %v3304_v28 = vpop.f32.mrb[134].mxu0 }
 0x5fb   : > { %v3503_v39 = vmax.f32 %v3502_v49, %v3111_v0  ;;  %v3545_v36 = vmax.f32 %v3544_v33, %v3304_v28  ;;  %v3113_v38 = vpop.f32.mrb[135].mxu1  ;;  %v3306_v46 = vpop.f32.mrb[135].mxu0 }
 0x5fc   : > { %v3524_v37 = vmax.f32 %v3523_v35, %v3113_v38  ;;  %v3566_v2 = vmax.f32 %v3565_v16, %v3306_v46  ;;  %v1856_v9 = vpop.trf.xlu0  ;;  %v1816_v25 = vpop.trf.xlu1 }
 0x5fd   : > { %4197 = vst [vmem:[%s6075_s17 + $0x70] sm:$0xff] %v1856_v9  ;;  %1832 = vst [vmem:[%s6075_s17 + $0x30] sm:$0xff] %v1816_v25 }
 0x600   : > { %v3117_v54 = vpop.f32.mrb[136].mxu1  ;;  %v3310_v52 = vpop.f32.mrb[136].mxu0 }
 0x601   : > { %v3504_v34 = vmax.f32 %v3503_v39, %v3117_v54  ;;  %v3546_v4 = vmax.f32 %v3545_v36, %v3310_v52  ;;  %v3119_v26 = vpop.f32.mrb[137].mxu1  ;;  %v3312_v19 = vpop.f32.mrb[137].mxu0 }
 0x602   : > { %v3525_v30 = vmax.f32 %v3524_v37, %v3119_v26  ;;  %v3567_v24 = vmax.f32 %v3566_v2, %v3312_v19  ;;  %v3121_v61 = vpop.f32.mrb[138].mxu1  ;;  %v3314_v62 = vpop.f32.mrb[138].mxu0 }
 0x603   : > { %v3505_v7 = vmax.f32 %v3504_v34, %v3121_v61  ;;  %v3547_v53 = vmax.f32 %v3546_v4, %v3314_v62  ;;  %v3123_v60 = vpop.f32.mrb[139].mxu1  ;;  %v3316_v56 = vpop.f32.mrb[139].mxu0 }
 0x604   : > { %v3526_v59 = vmax.f32 %v3525_v30, %v3123_v60  ;;  %v3568_v51 = vmax.f32 %v3567_v24, %v3316_v56  ;;  %v1857_v3 = vpop.trf.xlu0  ;;  %v1817_v57 = vpop.trf.xlu1 }
 0x605   : > { %4198 = vst [vmem:[%s6075_s17 + $0x78] sm:$0xff] %v1857_v3  ;;  %1833 = vst [vmem:[%s6075_s17 + $0x38] sm:$0xff] %v1817_v57 }
 0x608   : > { %v3127_v1 = vpop.f32.mrb[140].mxu1  ;;  %v3320_v5 = vpop.f32.mrb[140].mxu0 }
 0x609   : > { %v3506_v63 = vmax.f32 %v3505_v7, %v3127_v1  ;;  %v3548_v6 = vmax.f32 %v3547_v53, %v3320_v5  ;;  %v3129_v55 = vpop.f32.mrb[141].mxu1  ;;  %v3322_v15 = vpop.f32.mrb[141].mxu0 }
 0x60a   : > { %v3527_v31 = vmax.f32 %v3526_v59, %v3129_v55  ;;  %v3569_v58 = vmax.f32 %v3568_v51, %v3322_v15  ;;  %v3131_v11 = vpop.f32.mrb[142].mxu1  ;;  %v3324_v12 = vpop.f32.mrb[142].mxu0 }
 0x60b   : > { %v3507_v8 = vmax.f32 %v3506_v63, %v3131_v11  ;;  %v3549_v13 = vmax.f32 %v3548_v6, %v3324_v12  ;;  %v3133_v14 = vpop.f32.mrb[143].mxu1  ;;  %v3326_v29 = vpop.f32.mrb[143].mxu0 }
 0x60c   : > { %v3528_v40 = vmax.f32 %v3527_v31, %v3133_v14  ;;  %v3570_v44 = vmax.f32 %v3569_v58, %v3326_v29 }
 0x60d   : > { %v3508_v17 = vrot.slane %v3507_v8, 4  ;;  %v3550_v43 = vrot.slane %v3549_v13, 4 }
 0x60e   : > { %v3529_v18 = vrot.slane %v3528_v40, 4  ;;  %v3571_v21 = vrot.slane %v3570_v44, 4 }
 0x60f   : > { %4828 = shalt.err (!%p4825_p6)
}
 0x610   : > { %s4829_s14 = scalar_lea.hbm %s6107_s29, 2048  ;;  %s4833_s30 = scalar_lea.hbm %s6206_s12, 4096 }
 0x611   : > { %p4830_p5 = scmp.ne.s32.totalorder %s6107_s29, %s4829_s14  ;;  %p4834_p10 = scmp.lt.u32.totalorder %s6107_s29, %s6206_s12 }
 0x612   : > { %p4835_p2 = scmp.lt.u32.totalorder %s4833_s30, %s4829_s14  ;;  %p4837_p4 = scmp.lt.u32.totalorder %s4829_s14, %s6107_s29 }
 0x613   : > { %p4831_p9 = pnand %p4830_p5, %p6238_p7 }
 0x614   : > { %p4836_p3 = por %p4835_p2, %p4834_p10 }
 0x615   : > { %p4832_p12 = pneg %p4831_p9 }
 0x616   : > { %p4838_p8 = por %p4837_p4, %p4836_p3 }
 0x618   : > { %p4839_p11 = pnand %p4838_p8, %p4832_p12 }
 0x61a   : > { %4842 = shalt.err (!%p4839_p11)
}
 0x61b   : > { %s4906_s19 = smov 128   ;;  %s4907_s28 = smov 8   ;;  %v3509_v22 = vmax.f32 %v3507_v8, %v3508_v17  ;;  %v3551_v20 = vmax.f32 %v3549_v13, %v3550_v43  ;;  %v3530_v49 = vmax.f32 %v3528_v40, %v3529_v18  ;;  %v3572_v33 = vmax.f32 %v3570_v44, %v3571_v21  ;;  %v3137_v23 = vpop.f32.mrb[144].mxu1  ;;  %v3330_v32 = vpop.f32.mrb[144].mxu0 }
 0x61c   : > { %4505 = dma.vmem_to_hbm [thread:$0]  (%p6238_p7), %s6109_s21, 2048, %s6107_s29, %s6115_s25, %s4906_s19, %s4906_s19, %s4907_s28   ;;  %v3139_v0 = vpop.f32.mrb[145].mxu1  ;;  %v3332_v28 = vpop.f32.mrb[145].mxu0 }
 0x61d   : > { %v3510_v35 = vrot.slane %v3509_v22, 2  ;;  %v3552_v16 = vrot.slane %v3551_v20, 2  ;;  %v3531_v39 = vrot.slane %v3530_v49, 2  ;;  %v3573_v36 = vrot.slane %v3572_v33, 2  ;;  %v3141_v38 = vpop.f32.mrb[146].mxu1  ;;  %v3334_v46 = vpop.f32.mrb[146].mxu0 }
 0x61e   : > { %v3661_v50 = vmax.f32 %v3137_v23, %v3141_v38  ;;  %v3703_v42 = vmax.f32 %v3330_v32, %v3334_v46  ;;  %v3143_v54 = vpop.f32.mrb[147].mxu1  ;;  %v3336_v52 = vpop.f32.mrb[147].mxu0  ;;  %s4147_s13 = sshll.u32 %s6249_s15, 3 }
 0x61f   : > { %v3511_v37 = vmax.f32 %v3509_v22, %v3510_v35  ;;  %v3553_v2 = vmax.f32 %v3551_v20, %v3552_v16  ;;  %v3532_v34 = vmax.f32 %v3530_v49, %v3531_v39  ;;  %v3574_v4 = vmax.f32 %v3572_v33, %v3573_v36  ;;  %v3147_v59 = vpop.f32.mrb[148].mxu1  ;;  %v3340_v51 = vpop.f32.mrb[148].mxu0  ;;  %s505_s29 = scalar_lea.vmem %s6205_s11, %s4147_s13 }
 0x620   : > { %v3682_v26 = vmax.f32 %v3139_v0, %v3143_v54  ;;  %v3724_v19 = vmax.f32 %v3332_v28, %v3336_v52  ;;  %v3662_v9 = vmax.f32 %v3661_v50, %v3147_v59  ;;  %v3704_v25 = vmax.f32 %v3703_v42, %v3340_v51  ;;  %v3149_v1 = vpop.f32.mrb[149].mxu1  ;;  %v3342_v5 = vpop.f32.mrb[149].mxu0 }
 0x621   : > { %v3512_v30 = vrot.slane %v3511_v37, 1  ;;  %v3554_v24 = vrot.slane %v3553_v2, 1  ;;  %v3533_v61 = vrot.slane %v3532_v34, 1  ;;  %v3575_v62 = vrot.slane %v3574_v4, 1  ;;  %v3151_v31 = vpop.f32.mrb[150].mxu1  ;;  %v3344_v58 = vpop.f32.mrb[150].mxu0 }
 0x622   : > { %v3683_v55 = vmax.f32 %v3682_v26, %v3149_v1  ;;  %v3725_v15 = vmax.f32 %v3724_v19, %v3342_v5  ;;  %v3663_v11 = vmax.f32 %v3662_v9, %v3151_v31  ;;  %v3705_v12 = vmax.f32 %v3704_v25, %v3344_v58  ;;  %v3153_v8 = vpop.f32.mrb[151].mxu1  ;;  %v3346_v13 = vpop.f32.mrb[151].mxu0 }
 0x623   : > { %v3513_v7 = vmax.f32 %v3511_v37, %v3512_v30  ;;  %v3555_v53 = vmax.f32 %v3553_v2, %v3554_v24  ;;  %v3534_v60 = vmax.f32 %v3532_v34, %v3533_v61  ;;  %v3576_v56 = vmax.f32 %v3574_v4, %v3575_v62  ;;  %v3157_v57 = vpop.f32.mrb[152].mxu1  ;;  %v3350_v17 = vpop.f32.mrb[152].mxu0 }
 0x624   : > { %v3684_v40 = vmax.f32 %v3683_v55, %v3153_v8  ;;  %v3726_v44 = vmax.f32 %v3725_v15, %v3346_v13  ;;  %v3664_v43 = vmax.f32 %v3663_v11, %v3157_v57  ;;  %v3706_v18 = vmax.f32 %v3705_v12, %v3350_v17  ;;  %v3159_v21 = vpop.f32.mrb[153].mxu1  ;;  %v3352_v22 = vpop.f32.mrb[153].mxu0 }
 0x625   : > { %v3780_v63 = vcombine.low %v3513_v7, %v3534_v60  ;;  %v3781_v6 = vcombine.low %v3555_v53, %v3576_v56  ;;  %v3161_v33 = vpop.f32.mrb[154].mxu1  ;;  %v3354_v23 = vpop.f32.mrb[154].mxu0 }
 0x626   : > { %v3685_v20 = vmax.f32 %v3684_v40, %v3159_v21  ;;  %v3727_v49 = vmax.f32 %v3726_v44, %v3352_v22  ;;  %v3665_v32 = vmax.f32 %v3664_v43, %v3161_v33  ;;  %v3707_v35 = vmax.f32 %v3706_v18, %v3354_v23  ;;  %v3163_v16 = vpop.f32.mrb[155].mxu1  ;;  %v3356_v0 = vpop.f32.mrb[155].mxu0 }
 0x627   : > { %v6140_v14 = vrot.slane %v3780_v63, %v6040_v27  ;;  %v6143_v29 = vrot.slane %v3781_v6, %v6040_v27 }
 0x628   : > { %v3686_v28 = vmax.f32 %v3685_v20, %v3163_v16  ;;  %v3728_v39 = vmax.f32 %v3727_v49, %v3356_v0  ;;  %v3167_v36 = vpop.f32.mrb[156].mxu1  ;;  %v3360_v38 = vpop.f32.mrb[156].mxu0 }
 0x629   : > { %v3796_v3 = vcombine.low %v6140_v14, %v6143_v29  ;;  %v3666_v46 = vmax.f32 %v3665_v32, %v3167_v36  ;;  %v3708_v37 = vmax.f32 %v3707_v35, %v3360_v38  ;;  %v3169_v2 = vpop.f32.mrb[157].mxu1  ;;  %v3362_v50 = vpop.f32.mrb[157].mxu0 }
 0x62a   : > { %v3687_v42 = vmax.f32 %v3686_v28, %v3169_v2  ;;  %v3729_v54 = vmax.f32 %v3728_v39, %v3362_v50  ;;  %v3171_v52 = vpop.f32.mrb[158].mxu1  ;;  %v3364_v34 = vpop.f32.mrb[158].mxu0 }
 0x62b   : > { %v3667_v4 = vmax.f32 %v3666_v46, %v3171_v52  ;;  %v3709_v26 = vmax.f32 %v3708_v37, %v3364_v34  ;;  %v3173_v19 = vpop.f32.mrb[159].mxu1  ;;  %v3366_v30 = vpop.f32.mrb[159].mxu0 }
 0x62c   : > { %v3688_v24 = vmax.f32 %v3687_v42, %v3173_v19  ;;  %v3730_v61 = vmax.f32 %v3729_v54, %v3366_v30 }
 0x630   : > { %v3177_v62 = vpop.f32.mrb[160].mxu1  ;;  %v3370_v7 = vpop.f32.mrb[160].mxu0 }
 0x631   : > { %v3668_v53 = vmax.f32 %v3667_v4, %v3177_v62  ;;  %v3710_v60 = vmax.f32 %v3709_v26, %v3370_v7  ;;  %v3179_v56 = vpop.f32.mrb[161].mxu1  ;;  %v3372_v59 = vpop.f32.mrb[161].mxu0 }
 0x632   : > { %v3689_v51 = vmax.f32 %v3688_v24, %v3179_v56  ;;  %v3731_v9 = vmax.f32 %v3730_v61, %v3372_v59  ;;  %v3181_v25 = vpop.f32.mrb[162].mxu1  ;;  %v3374_v1 = vpop.f32.mrb[162].mxu0 }
 0x633   : > { %v3669_v5 = vmax.f32 %v3668_v53, %v3181_v25  ;;  %v3711_v63 = vmax.f32 %v3710_v60, %v3374_v1  ;;  %v3183_v6 = vpop.f32.mrb[163].mxu1  ;;  %v3376_v55 = vpop.f32.mrb[163].mxu0  ;;  %v3875_v25 = vsub.s32 3, %v5298_v41 }
 0x634   : > { %v3690_v15 = vmax.f32 %v3689_v51, %v3183_v6  ;;  %v3732_v31 = vmax.f32 %v3731_v9, %v3376_v55  ;;  %v3859_v9 = vld [vmem:[#allocation13] sm:$0xff] }
 0x638   : > { %v3187_v58 = vpop.f32.mrb[164].mxu1  ;;  %v3380_v11 = vpop.f32.mrb[164].mxu0 }
 0x639   : > { %v3670_v12 = vmax.f32 %v3669_v5, %v3187_v58  ;;  %v3712_v8 = vmax.f32 %v3711_v63, %v3380_v11  ;;  %v3189_v13 = vpop.f32.mrb[165].mxu1  ;;  %v3382_v40 = vpop.f32.mrb[165].mxu0  ;;  %v3868_v58 = vrot.slane %v3859_v9, %v868_v45  ;;  %v3891_v45 = vsub.s32 7, %v5298_v41 }
 0x63a   : > { %v3691_v44 = vmax.f32 %v3690_v15, %v3189_v13  ;;  %v3733_v57 = vmax.f32 %v3732_v31, %v3382_v40  ;;  %v3191_v17 = vpop.f32.mrb[166].mxu1  ;;  %v3384_v43 = vpop.f32.mrb[166].mxu0  ;;  %v3864_v31 = vrot.slane %v3859_v9, %v704_v48  ;;  %v3876_v13 = vrot.slane %v3859_v9, %v3875_v25 }
 0x63b   : > { %v3671_v18 = vmax.f32 %v3670_v12, %v3191_v17  ;;  %v3713_v21 = vmax.f32 %v3712_v8, %v3384_v43  ;;  %v3193_v22 = vpop.f32.mrb[167].mxu1  ;;  %v3386_v20 = vpop.f32.mrb[167].mxu0  ;;  %v3872_v8 = vrot.slane %v3859_v9, %v1064_v47  ;;  %v3879_v43 = vsub.s32 4, %v5298_v41 }
 0x63c   : > { %v3692_v49 = vmax.f32 %v3691_v44, %v3193_v22  ;;  %v3734_v33 = vmax.f32 %v3733_v57, %v3386_v20  ;;  %v3887_v48 = vsub.s32 6, %v5298_v41 }
 0x640   : > { %v3197_v23 = vpop.f32.mrb[168].mxu1  ;;  %v3390_v32 = vpop.f32.mrb[168].mxu0 }
 0x641   : > { %v3672_v35 = vmax.f32 %v3671_v18, %v3197_v23  ;;  %v3714_v16 = vmax.f32 %v3713_v21, %v3390_v32  ;;  %v3199_v0 = vpop.f32.mrb[169].mxu1  ;;  %v3392_v28 = vpop.f32.mrb[169].mxu0  ;;  %v3883_v18 = vsub.s32 5, %v5298_v41  ;;  %v3894_v23 = vcombine.low %v3872_v8, %v3876_v13 }
 0x642   : > { %v3693_v39 = vmax.f32 %v3692_v49, %v3199_v0  ;;  %v3735_v36 = vmax.f32 %v3734_v33, %v3392_v28  ;;  %v3201_v38 = vpop.f32.mrb[170].mxu1  ;;  %v3394_v46 = vpop.f32.mrb[170].mxu0  ;;  %v3893_v33 = vcombine.low %v3864_v31, %v3868_v58  ;;  %v3880_v0 = vrot.slane %v3859_v9, %v3879_v43 }
 0x643   : > { %v3673_v37 = vmax.f32 %v3672_v35, %v3201_v38  ;;  %v3715_v2 = vmax.f32 %v3714_v16, %v3394_v46  ;;  %v3203_v50 = vpop.f32.mrb[171].mxu1  ;;  %v3396_v42 = vpop.f32.mrb[171].mxu0  ;;  %v3884_v28 = vrot.slane %v3859_v9, %v3883_v18  ;;  %v3888_v38 = vrot.slane %v3859_v9, %v3887_v48 }
 0x644   : > { %v3694_v54 = vmax.f32 %v3693_v39, %v3203_v50  ;;  %v3736_v52 = vmax.f32 %v3735_v36, %v3396_v42  ;;  %v3892_v46 = vrot.slane %v3859_v9, %v3891_v45 }
 0x648   : > { %v3207_v34 = vpop.f32.mrb[172].mxu1  ;;  %v3400_v4 = vpop.f32.mrb[172].mxu0 }
 0x649   : > { %v3674_v26 = vmax.f32 %v3673_v37, %v3207_v34  ;;  %v3716_v19 = vmax.f32 %v3715_v2, %v3400_v4  ;;  %v3209_v30 = vpop.f32.mrb[173].mxu1  ;;  %v3402_v24 = vpop.f32.mrb[173].mxu0 }
 0x64a   : > { %v3695_v61 = vmax.f32 %v3694_v54, %v3209_v30  ;;  %v3737_v62 = vmax.f32 %v3736_v52, %v3402_v24  ;;  %v3211_v7 = vpop.f32.mrb[174].mxu1  ;;  %v3404_v53 = vpop.f32.mrb[174].mxu0  ;;  %v3901_v54 = vrot.slane %v3893_v33, %v6040_v27  ;;  %v3908_v52 = vrot.slane %v3894_v23, %v6040_v27 }
 0x64b   : > { %v3675_v60 = vmax.f32 %v3674_v26, %v3211_v7  ;;  %v3717_v56 = vmax.f32 %v3716_v19, %v3404_v53  ;;  %v3213_v59 = vpop.f32.mrb[175].mxu1  ;;  %v3406_v51 = vpop.f32.mrb[175].mxu0  ;;  %v3910_v26 = vcombine.low %v3880_v0, %v3884_v28  ;;  %v3911_v19 = vcombine.low %v3888_v38, %v3892_v46 }
 0x64c   : > { %v3696_v1 = vmax.f32 %v3695_v61, %v3213_v59  ;;  %v3738_v5 = vmax.f32 %v3737_v62, %v3406_v51  ;;  %v3909_v61 = vcombine.low %v3901_v54, %v3908_v52  ;;  %v4908_v62 = vmov 1966171168  }
 0x64d   : > { %v3676_v63 = vrot.slane %v3675_v60, 4  ;;  %v3718_v6 = vrot.slane %v3717_v56, 4  ;;  %v3936_v7 = vunpack.c.l.s4 %v4908_v62 }
 0x64e   : > { %v3697_v55 = vrot.slane %v3696_v1, 4  ;;  %v3739_v15 = vrot.slane %v3738_v5, 4  ;;  %v3929_v51 = vadd.f32 %v3909_v61, %v6090_v10 }
 0x64f   : > { %v3677_v11 = vmax.f32 %v3675_v60, %v3676_v63  ;;  %v3719_v12 = vmax.f32 %v3717_v56, %v3718_v6  ;;  %v3918_v60 = vrot.slane %v3910_v26, %v6040_v27  ;;  %v3925_v56 = vrot.slane %v3911_v19, %v6040_v27 }
 0x650   : > { %v3698_v40 = vmax.f32 %v3696_v1, %v3697_v55  ;;  %v3740_v44 = vmax.f32 %v3738_v5, %v3739_v15  ;;  %v3937_v9 = vunpack.c.0.s8 %v3936_v7  ;;  %v3931_v55 = vmax.f32 %v3929_v51, 0.0 }
 0x651   : > { %v3678_v57 = vrot.slane %v3677_v11, 2  ;;  %v3720_v17 = vrot.slane %v3719_v12, 2  ;;  %v3926_v1 = vcombine.low %v3918_v60, %v3925_v56 }
 0x652   : > { %v3699_v21 = vrot.slane %v3698_v40, 2  ;;  %v3741_v22 = vrot.slane %v3740_v44, 2  ;;  %v3940_v15 = vsub.s32 %v3937_v9, %v5298_v41 }
 0x653   : > { %v3679_v20 = vmax.f32 %v3677_v11, %v3678_v57  ;;  %v3721_v49 = vmax.f32 %v3719_v12, %v3720_v17 }
 0x654   : > { %v3700_v47 = vmax.f32 %v3698_v40, %v3699_v21  ;;  %v3742_v32 = vmax.f32 %v3740_v44, %v3741_v22  ;;  %v3941_v10 = vrot.slane %v3931_v55, %v3940_v15 }
 0x655   : > { %v3680_v35 = vrot.slane %v3679_v20, 1  ;;  %v3722_v16 = vrot.slane %v3721_v49, 1 }
 0x656   : > { %v3701_v39 = vrot.slane %v3700_v47, 1  ;;  %v3743_v36 = vrot.slane %v3742_v32, 1 }
 0x657   : > { %v3681_v37 = vmax.f32 %v3679_v20, %v3680_v35  ;;  %v3723_v2 = vmax.f32 %v3721_v49, %v3722_v16 }
 0x658   : > { %v3702_v50 = vmax.f32 %v3700_v47, %v3701_v39  ;;  %v3744_v42 = vmax.f32 %v3742_v32, %v3743_v36 }
 0x65a   : > { %v3814_v34 = vcombine.low %v3681_v37, %v3702_v50  ;;  %v3815_v4 = vcombine.low %v3723_v2, %v3744_v42 }
 0x65c   : > { %v3822_v30 = vrot.slane %v3814_v34, %v6040_v27  ;;  %v3829_v24 = vrot.slane %v3815_v4, %v6040_v27 }
 0x65e   : > { %v3830_v53 = vcombine.low %v3822_v30, %v3829_v24 }
 0x660   : > { %v3846_v59 = vrot.slane %v3830_v53, 7 }
 0x662   : > { %v3847_v25 = vsel %vm3836_vm1, %v3846_v59, %v3796_v3 }
 0x663   : > { %v3848_v5 = vsel %vm3838_vm2, %v3846_v59, %v3847_v25 }
 0x664   : > { %v3849_v63 = vsel %vm3840_vm3, %v3846_v59, %v3848_v5 }
 0x665   : > { %v3850_v6 = vsel %vm3842_vm4, %v3846_v59, %v3849_v63 }
 0x666   : > { %v3930_v27 = vadd.f32 %v3926_v1, %v3850_v6 }
 0x668   : > { %v3932_v31 = vmax.f32 %v3930_v27, 0.0 }
 0x66a   : > { %v3948_v58 = vrot.slane %v3932_v31, %v3940_v15 }
 0x66c   : > { %v3949_v14 = vcombine.low %v3941_v10, %v3948_v58  ;;  %v3950_v29 = vcombine.high %v3941_v10, %v3948_v58 }
 0x66e   : > { %3953 = vst [vmem:[%s505_s29] sm:$0xff] %v3949_v14  ;;  %3954 = vst [vmem:[%s505_s29 + $0x8] sm:$0xff] %v3950_v29 }
 0x66f PF: > { %s6239_s25 = sld [smem:[#allocation23_spill]]  ;;  %s6240_s24 = sld [smem:[#allocation21_spill]] }
 0x670   : > { %s6241_s20 = sld [smem:[#allocation26_spill]] }
 0x675   : > { %p4542_p7 = scmp.ge.s32.totalorder %s6239_s25, 2  ;;  %s4002_s18 = sand.u32 1, %s6240_s24  }
 0x676   : > { %p6242_p13 = scmp.ne.s32.totalorder %s6241_s20, 0  ;;  %s4003_s15 = scalar_lea.sflag [#allocation6], %s4002_s18 }
 0x678   : > { %p4527_p1 = pnand %p4542_p7, %p6242_p13 }
 0x67a   : > { %4876 = dma.done.wait (!%p4527_p1), %s4003_s15, 2048  }
 0x67b   : > { %4878 = vsyncadd (!%p4527_p1), %s4003_s15, 4294965248  ;;  %s6243_s24 = sld [smem:[#allocation24_spill]]  ;;  %s6244_s27 = sld [smem:[#allocation22_spill]] }
 0x67c   : > { %s6245_s23 = sld [smem:[#allocation25_spill]]  ;;  %s6246_s21 = smov %s4885_s22 }
 0x681   : > { %p27_p0 = scmp.ge.s32.totalorder %s6243_s24, 4   ;;  %s6247_s22 = smov %s6244_s27 }
 0x683   :  { %29 = sbr.rel (!%p27_p0) target bundleno = 9 (0x9), region = 137 }
 0x68a   :  { %4008 = vsyncpa [#allocation5], 1 }
 0x68b   :  { %4010 = vsyncpa [#allocation5 + $0x1], 1 }
 0x68c   :  { %4011 = vsyncpa [#allocation8], 1 }
 0x68d   :  { %4012 = vsyncpa [#allocation11], 1 }
 0x68e   :  { %4013 = vsyncpa [#allocation14], 1 }
 0x68f   :  { %4014 = vsyncpa [#allocation6], 1 }
 0x690   :  { %4016 = vsyncpa [#allocation6 + $0x1], 1 }

</bundles_post_ra>
